<compile_context>
chip_gen: v5e
topology: v5e:2x2
jax: 0.10.0
libtpu: 0.0.40
codegen_flags: <defaults>
</compile_context>

<pallas_src>
import functools
import math

import jax
import jax.numpy as jnp
from jax.experimental import pallas as pl
from jax.experimental.pallas import tpu as pltpu


def fused_encoder_kernel(src_ref, pos_ref,
                         wqk_ref, bqk_ref, wv_ref, bv_ref,
                         woh_ref, bo_ref, ln1g_ref, ln1b_ref,
                         w1_ref, b1_ref, w2_ref, b2_ref, ln2g_ref, ln2b_ref,
                         out_ref, *, nhead):
    l = pl.program_id(1)

    # Layer 0 seeds the resident activation.  The output block's index only
    # depends on the batch axis, so it stays resident in VMEM across the whole
    # layer axis and doubles as the layer-to-layer activation carry.
    @pl.when(l == 0)
    def _():
        out_ref[0] = src_ref[0]

    x = out_ref[0].astype(jnp.float32)          # (S, E) resident activation
    p = pos_ref[0].astype(jnp.float32)          # (S, E)
    S, E = x.shape
    hd = E // nhead
    scale = 1.0 / math.sqrt(hd)

    # --- self attention: q = k = src + pos, value = src -------------------
    qk_in = x + p
    # Fused Q|K projection: one (S,E)@(E,2E) MXU matmul instead of two (E,E).
    qk = jnp.dot(qk_in, wqk_ref[0], preferred_element_type=jnp.float32) + bqk_ref[0]   # (S, 2E)
    v = jnp.dot(x, wv_ref[0], preferred_element_type=jnp.float32) + bv_ref[0]          # (S, E)

    def split_heads(t, base):
        # (S, *) -> (nhead, S, hd): static lane slices stacked on a new
        # leading (untiled) axis; no lane-dim concatenation needed later.
        return jnp.stack(
            [t[:, base + h * hd: base + (h + 1) * hd] for h in range(nhead)], axis=0)

    qh = split_heads(qk, 0) * scale             # (H, S, hd)
    kh = split_heads(qk, E)                     # (H, S, hd)
    vh = split_heads(v, 0)                      # (H, S, hd)

    # Batched (over heads) attention — single dot_general per step.
    s = jnp.einsum('hqd,hkd->hqk', qh, kh, preferred_element_type=jnp.float32)   # (H, S, S)
    s = s - jnp.max(s, axis=-1, keepdims=True)
    e = jnp.exp(s)
    attn = e * pl.reciprocal(jnp.sum(e, axis=-1, keepdims=True), approx=True)
    ctx = jnp.einsum('hqk,hkd->hqd', attn, vh, preferred_element_type=jnp.float32)  # (H, S, hd)

    # Output projection with per-head weight slabs, then a cheap reduction over
    # the leading head axis (replaces concat-along-lanes + (E,E) matmul).
    attn_out = jnp.einsum('hsd,hde->hse', ctx, woh_ref[0],
                          preferred_element_type=jnp.float32).sum(axis=0) + bo_ref[0]

    # --- residual + LayerNorm1 (dropout is identity in eval mode) ----------
    y = x + attn_out
    mu = jnp.mean(y, axis=-1, keepdims=True)
    yc = y - mu
    var = jnp.mean(yc * yc, axis=-1, keepdims=True)
    y = yc * jax.lax.rsqrt(var + 1e-5) * ln1g_ref[0] + ln1b_ref[0]

    # --- feed-forward + residual + LayerNorm2 ------------------------------
    h1 = jnp.maximum(
        jnp.dot(y, w1_ref[0], preferred_element_type=jnp.float32) + b1_ref[0], 0.0)
    f = jnp.dot(h1, w2_ref[0], preferred_element_type=jnp.float32) + b2_ref[0]
    z = y + f
    mu2 = jnp.mean(z, axis=-1, keepdims=True)
    zc = z - mu2
    var2 = jnp.mean(zc * zc, axis=-1, keepdims=True)
    z = zc * jax.lax.rsqrt(var2 + 1e-5) * ln2g_ref[0] + ln2b_ref[0]

    out_ref[0] = z.astype(out_ref.dtype)


def transformer_encoder(src_sbe, pos_sbe, layer_params, nhead):
    """TransformerEncoder.forward. src/pos: (S, B, E) like PyTorch MHA."""
    S, B, E = src_sbe.shape
    L = len(layer_params)
    F = layer_params[0]["w1"].shape[1]
    assert E % nhead == 0, "d_model must be divisible by nhead"
    hd = E // nhead

    # One-time layout change (batch becomes the parallel grid axis); this is
    # amortized over all fused layers instead of paid per layer.
    x = jnp.transpose(src_sbe, (1, 0, 2))       # (B, S, E)
    p = jnp.transpose(pos_sbe, (1, 0, 2))

    # Stack per-layer weights along a leading L axis; fuse Wq|Wk; pre-split Wo
    # into per-head slabs so the kernel never re-concatenates heads.
    def stk(key):
        return jnp.stack([lp[key] for lp in layer_params], axis=0)
    wqk = jnp.stack([jnp.concatenate([lp["wq"], lp["wk"]], axis=1)
                     for lp in layer_params], axis=0)                      # (L, E, 2E)
    bqk = jnp.stack([jnp.concatenate([lp["bq"], lp["bk"]], axis=1)
                     for lp in layer_params], axis=0)                      # (L, 1, 2E)
    woh = jnp.stack([lp["wo"].reshape(nhead, hd, E) for lp in layer_params], axis=0)  # (L,H,hd,E)
    wv, bv, bo = stk("wv"), stk("bv"), stk("bo")
    ln1g, ln1b = stk("ln1g"), stk("ln1b")
    w1, b1, w2, b2 = stk("w1"), stk("b1"), stk("w2"), stk("b2")
    ln2g, ln2b = stk("ln2g"), stk("ln2b")

    act_spec = pl.BlockSpec((1, S, E), lambda b, l: (b, 0, 0))

    def wspec(shape):
        return pl.BlockSpec((1,) + shape, lambda b, l: (l, 0, 0))

    in_specs = [
        act_spec, act_spec,                                   # src, pos (resident per batch)
        wspec((E, 2 * E)), wspec((1, 2 * E)),                 # wqk, bqk
        wspec((E, E)), wspec((1, E)),                         # wv, bv
        pl.BlockSpec((1, nhead, hd, E), lambda b, l: (l, 0, 0, 0)),   # per-head wo
        wspec((1, E)),                                        # bo
        wspec((1, E)), wspec((1, E)),                         # ln1 gamma/beta
        wspec((E, F)), wspec((1, F)),                         # w1, b1
        wspec((F, E)), wspec((1, E)),                         # w2, b2
        wspec((1, E)), wspec((1, E)),                         # ln2 gamma/beta
    ]

    # Advisory cost estimate so XLA can schedule around the fused kernel.
    mm = lambda m, k, n: 2 * m * k * n
    flops_per = (mm(S, E, 2 * E) + mm(S, E, E)                # q/k + v projections
                 + nhead * (mm(S, hd, S) + mm(S, S, hd))      # scores + attn@V
                 + nhead * mm(S, hd, E)                       # output projection
                 + mm(S, E, F) + mm(S, F, E))                 # feed-forward
    weight_arrays = (wqk, bqk, wv, bv, woh, bo, ln1g, ln1b, w1, b1, w2, b2, ln2g, ln2b)
    weight_bytes = sum(int(a.size) * a.dtype.itemsize for a in weight_arrays)
    act_bytes = 3 * B * S * E * src_sbe.dtype.itemsize
    cost = pl.CostEstimate(
        flops=int(B * L * flops_per),
        transcendentals=int(B * L * (nhead * S * S + nhead * S + 2 * S)),
        bytes_accessed=int(B * weight_bytes + act_bytes),
    )

    out = pl.pallas_call(
        functools.partial(fused_encoder_kernel, nhead=nhead),
        out_shape=jax.ShapeDtypeStruct((B, S, E), src_sbe.dtype),
        grid_spec=pltpu.PrefetchScalarGridSpec(
            num_scalar_prefetch=0,
            grid=(B, L),                                      # batch outer, layers inner
            in_specs=in_specs,
            out_specs=pl.BlockSpec((1, S, E), lambda b, l: (b, 0, 0)),
        ),
        compiler_params=pltpu.CompilerParams(
            dimension_semantics=("parallel", "arbitrary"),
            vmem_limit_bytes=32 * 1024 * 1024,
        ),
        cost_estimate=cost,
    )(x, p, wqk, bqk, wv, bv, woh, bo, ln1g, ln1b, w1, b1, w2, b2, ln2g, ln2b)

    # TODO(synk): final `norm` is None (DETR post-norm default); src_mask /
    # src_key_padding_mask are not supported (assumed None), dropout is eval-mode identity.
    return jnp.transpose(out, (1, 0, 2))                      # back to (S, B, E)


def init_layer_params(key, d_model, nhead, dim_feedforward):
    ks = jax.random.split(key, 10)
    s = 0.02
    f32 = jnp.float32
    return dict(
        wq=jax.random.normal(ks[0], (d_model, d_model), f32) * s,
        wk=jax.random.normal(ks[1], (d_model, d_model), f32) * s,
        wv=jax.random.normal(ks[2], (d_model, d_model), f32) * s,
        bq=jax.random.normal(ks[3], (1, d_model), f32) * s,
        bk=jax.random.normal(ks[4], (1, d_model), f32) * s,
        bv=jax.random.normal(ks[5], (1, d_model), f32) * s,
        wo=jax.random.normal(ks[6], (d_model, d_model), f32) * s,
        bo=jnp.zeros((1, d_model), f32),
        ln1g=jnp.ones((1, d_model), f32),
        ln1b=jnp.zeros((1, d_model), f32),
        w1=jax.random.normal(ks[7], (d_model, dim_feedforward), f32) * s,
        b1=jax.random.normal(ks[8], (1, dim_feedforward), f32) * s,
        w2=jax.random.normal(ks[9], (dim_feedforward, d_model), f32) * s,
        b2=jnp.zeros((1, d_model), f32),
        ln2g=jnp.ones((1, d_model), f32),
        ln2b=jnp.zeros((1, d_model), f32),
    )


def reference_encoder(src_sbe, pos_sbe, layer_params, nhead):
    """Pure-JAX reference with identical semantics (for sanity checking)."""
    x = jnp.transpose(src_sbe, (1, 0, 2))
    p = jnp.transpose(pos_sbe, (1, 0, 2))
    B, S, E = x.shape
    hd = E // nhead
    for lp in layer_params:
        qk = x + p
        q = qk @ lp["wq"] + lp["bq"][0]
        k = qk @ lp["wk"] + lp["bk"][0]
        v = x @ lp["wv"] + lp["bv"][0]
        qh = q.reshape(B, S, nhead, hd).transpose(0, 2, 1, 3) / math.sqrt(hd)
        kh = k.reshape(B, S, nhead, hd).transpose(0, 2, 1, 3)
        vh = v.reshape(B, S, nhead, hd).transpose(0, 2, 1, 3)
        attn = jax.nn.softmax(jnp.einsum("bhsd,bhtd->bhst", qh, kh), axis=-1)
        ctx = jnp.einsum("bhst,bhtd->bhsd", attn, vh)
        ctx = ctx.transpose(0, 2, 1, 3).reshape(B, S, E)
        y = x + (ctx @ lp["wo"] + lp["bo"][0])
        mu = y.mean(-1, keepdims=True)
        y = (y - mu) * jax.lax.rsqrt(((y - mu) ** 2).mean(-1, keepdims=True) + 1e-5)
        y = y * lp["ln1g"][0] + lp["ln1b"][0]
        f = jnp.maximum(y @ lp["w1"] + lp["b1"][0], 0.0) @ lp["w2"] + lp["b2"][0]
        z = y + f
        mu2 = z.mean(-1, keepdims=True)
        z = (z - mu2) * jax.lax.rsqrt(((z - mu2) ** 2).mean(-1, keepdims=True) + 1e-5)
        x = z * lp["ln2g"][0] + lp["ln2b"][0]
    return jnp.transpose(x, (1, 0, 2))


if __name__ == "__main__":
    # Small DETR-like configuration: feature map 8x8 flattened to S=64 tokens.
    S, B, E = 64, 2, 32
    NHEAD, FFN, NUM_LAYERS = 4, 64, 2

    key = jax.random.PRNGKey(0)
    k_src, k_pos, k_par = jax.random.split(key, 3)
    src = jax.random.normal(k_src, (S, B, E), jnp.float32)   # (seq, batch, d_model)
    pos = jax.random.normal(k_pos, (S, B, E), jnp.float32)

    layer_keys = jax.random.split(k_par, NUM_LAYERS)
    params = [init_layer_params(k, E, NHEAD, FFN) for k in layer_keys]

    fwd = jax.jit(functools.partial(transformer_encoder, nhead=NHEAD))
    out = jax.block_until_ready(fwd(src, pos, params))

    ref = jax.block_until_ready(reference_encoder(src, pos, params, NHEAD))
    assert out.shape == (S, B, E)
    # Slightly relaxed tolerance: the softmax denominator uses the approximate
    # EUP reciprocal (pl.reciprocal(approx=True)), worth ~1e-4-level error.
    assert jnp.allclose(out, ref, atol=2e-3, rtol=2e-3), "mismatch vs JAX reference"

    print("KERNEL_OK")
</pallas_src>

<mosaic_0001>
module attributes {stable_mosaic.version = 11 : i64} {
  func.func @fused_encoder_kernel(%arg0: i32, %arg1: i32, %arg2: memref<1x64x32xf32, #tpu.memory_space<vmem>>, %arg3: memref<1x64x32xf32, #tpu.memory_space<vmem>>, %arg4: memref<1x32x64xf32, #tpu.memory_space<vmem>>, %arg5: memref<1x1x64xf32, #tpu.memory_space<vmem>>, %arg6: memref<1x32x32xf32, #tpu.memory_space<vmem>>, %arg7: memref<1x1x32xf32, #tpu.memory_space<vmem>>, %arg8: memref<1x4x8x32xf32, #tpu.memory_space<vmem>>, %arg9: memref<1x1x32xf32, #tpu.memory_space<vmem>>, %arg10: memref<1x1x32xf32, #tpu.memory_space<vmem>>, %arg11: memref<1x1x32xf32, #tpu.memory_space<vmem>>, %arg12: memref<1x32x64xf32, #tpu.memory_space<vmem>>, %arg13: memref<1x1x64xf32, #tpu.memory_space<vmem>>, %arg14: memref<1x64x32xf32, #tpu.memory_space<vmem>>, %arg15: memref<1x1x32xf32, #tpu.memory_space<vmem>>, %arg16: memref<1x1x32xf32, #tpu.memory_space<vmem>>, %arg17: memref<1x1x32xf32, #tpu.memory_space<vmem>>, %arg18: memref<1x64x32xf32, #tpu.memory_space<vmem>>) attributes {dimension_semantics = [#tpu.dimension_semantics<parallel>, #tpu.dimension_semantics<arbitrary>], iteration_bounds = array<i64: 2, 2>, scalar_prefetch = 0 : i64, scratch_operands = 0 : i64, tpu.core_type = #tpu.core_type<tc>, window_params = [{transform_indices = @transform_0, window_bounds = array<i64: 1, 64, 32>}, {transform_indices = @transform_1, window_bounds = array<i64: 1, 64, 32>}, {transform_indices = @transform_2, window_bounds = array<i64: 1, 32, 64>}, {transform_indices = @transform_3, window_bounds = array<i64: 1, 1, 64>}, {transform_indices = @transform_4, window_bounds = array<i64: 1, 32, 32>}, {transform_indices = @transform_5, window_bounds = array<i64: 1, 1, 32>}, {transform_indices = @transform_6, window_bounds = array<i64: 1, 4, 8, 32>}, {transform_indices = @transform_7, window_bounds = array<i64: 1, 1, 32>}, {transform_indices = @transform_8, window_bounds = array<i64: 1, 1, 32>}, {transform_indices = @transform_9, window_bounds = array<i64: 1, 1, 32>}, {transform_indices = @transform_10, window_bounds = array<i64: 1, 32, 64>}, {transform_indices = @transform_11, window_bounds = array<i64: 1, 1, 64>}, {transform_indices = @transform_12, window_bounds = array<i64: 1, 64, 32>}, {transform_indices = @transform_13, window_bounds = array<i64: 1, 1, 32>}, {transform_indices = @transform_14, window_bounds = array<i64: 1, 1, 32>}, {transform_indices = @transform_15, window_bounds = array<i64: 1, 1, 32>}, {transform_indices = @transform_16, window_bounds = array<i64: 1, 64, 32>}]} {
    %c0_i32 = arith.constant 0 : i32
    %0 = arith.cmpi eq, %arg1, %c0_i32 : i32
    %1 = arith.extui %0 : i1 to i32
    %c0_i32_0 = arith.constant 0 : i32
    %2 = arith.cmpi ne, %1, %c0_i32_0 : i32
    scf.if %2 {
      %c0_73 = arith.constant 0 : index
      %c0_74 = arith.constant 0 : index
      %c0_75 = arith.constant 0 : index
      %140 = vector.load %arg2[%c0_73, %c0_74, %c0_75] : memref<1x64x32xf32, #tpu.memory_space<vmem>>, vector<1x64x32xf32>
      %141 = vector.shape_cast %140 : vector<1x64x32xf32> to vector<64x32xf32>
      %c0_76 = arith.constant 0 : index
      %c0_77 = arith.constant 0 : index
      %c0_78 = arith.constant 0 : index
      %142 = vector.load %arg18[%c0_76, %c0_77, %c0_78] : memref<1x64x32xf32, #tpu.memory_space<vmem>>, vector<1x64x32xf32>
      %143 = vector.shape_cast %142 : vector<1x64x32xf32> to vector<64x32xf32>
      %144 = vector.shape_cast %141 : vector<64x32xf32> to vector<1x64x32xf32>
      tpu.vector_store %arg18[%c0_76, %c0_77, %c0_78], %144 {strides = array<i32>} : memref<1x64x32xf32, #tpu.memory_space<vmem>>, vector<1x64x32xf32>,
    } else {
    }
    %c0 = arith.constant 0 : index
    %c0_1 = arith.constant 0 : index
    %c0_2 = arith.constant 0 : index
    %3 = vector.load %arg18[%c0, %c0_1, %c0_2] : memref<1x64x32xf32, #tpu.memory_space<vmem>>, vector<1x64x32xf32>
    %4 = vector.shape_cast %3 : vector<1x64x32xf32> to vector<64x32xf32>
    %c0_3 = arith.constant 0 : index
    %c0_4 = arith.constant 0 : index
    %c0_5 = arith.constant 0 : index
    %5 = vector.load %arg3[%c0_3, %c0_4, %c0_5] : memref<1x64x32xf32, #tpu.memory_space<vmem>>, vector<1x64x32xf32>
    %6 = vector.shape_cast %5 : vector<1x64x32xf32> to vector<64x32xf32>
    %7 = arith.addf %4, %6 : vector<64x32xf32>
    %c0_6 = arith.constant 0 : index
    %c0_7 = arith.constant 0 : index
    %c0_8 = arith.constant 0 : index
    %8 = vector.load %arg4[%c0_6, %c0_7, %c0_8] : memref<1x32x64xf32, #tpu.memory_space<vmem>>, vector<1x32x64xf32>
    %9 = vector.shape_cast %8 : vector<1x32x64xf32> to vector<32x64xf32>
    %cst = arith.constant dense<0.000000e+00> : vector<64x64xf32>
    %10 = tpu.matmul %7, %9, %cst {dimension_numbers = #tpu.dot_dimension_numbers<[1], [0], [0], [1], [0, 0, 1, 1], [], []>} : vector<64x32xf32>, vector<32x64xf32>, vector<64x64xf32> -> vector<64x64xf32>
    %c0_9 = arith.constant 0 : index
    %c0_10 = arith.constant 0 : index
    %c0_11 = arith.constant 0 : index
    %11 = vector.load %arg5[%c0_9, %c0_10, %c0_11] : memref<1x1x64xf32, #tpu.memory_space<vmem>>, vector<1x1x64xf32>
    %12 = vector.shape_cast %11 : vector<1x1x64xf32> to vector<1x64xf32>
    %13 = vector.broadcast %12 : vector<1x64xf32> to vector<64x64xf32>
    %14 = arith.addf %10, %13 : vector<64x64xf32>
    %c0_12 = arith.constant 0 : index
    %c0_13 = arith.constant 0 : index
    %c0_14 = arith.constant 0 : index
    %15 = vector.load %arg6[%c0_12, %c0_13, %c0_14] : memref<1x32x32xf32, #tpu.memory_space<vmem>>, vector<1x32x32xf32>
    %16 = vector.shape_cast %15 : vector<1x32x32xf32> to vector<32x32xf32>
    %cst_15 = arith.constant dense<0.000000e+00> : vector<64x32xf32>
    %17 = tpu.matmul %4, %16, %cst_15 {dimension_numbers = #tpu.dot_dimension_numbers<[1], [0], [0], [1], [0, 0, 1, 1], [], []>} : vector<64x32xf32>, vector<32x32xf32>, vector<64x32xf32> -> vector<64x32xf32>
    %c0_16 = arith.constant 0 : index
    %c0_17 = arith.constant 0 : index
    %c0_18 = arith.constant 0 : index
    %18 = vector.load %arg7[%c0_16, %c0_17, %c0_18] : memref<1x1x32xf32, #tpu.memory_space<vmem>>, vector<1x1x32xf32>
    %19 = vector.shape_cast %18 : vector<1x1x32xf32> to vector<1x32xf32>
    %20 = vector.broadcast %19 : vector<1x32xf32> to vector<64x32xf32>
    %21 = arith.addf %17, %20 : vector<64x32xf32>
    %22 = vector.extract_strided_slice %14 {offsets = [0, 0], sizes = [64, 8], strides = [1, 1]} : vector<64x64xf32> to vector<64x8xf32>
    %23 = vector.extract_strided_slice %14 {offsets = [0, 8], sizes = [64, 8], strides = [1, 1]} : vector<64x64xf32> to vector<64x8xf32>
    %24 = vector.extract_strided_slice %14 {offsets = [0, 16], sizes = [64, 8], strides = [1, 1]} : vector<64x64xf32> to vector<64x8xf32>
    %25 = vector.extract_strided_slice %14 {offsets = [0, 24], sizes = [64, 8], strides = [1, 1]} : vector<64x64xf32> to vector<64x8xf32>
    %26 = vector.shape_cast %22 : vector<64x8xf32> to vector<1x64x8xf32>
    %27 = vector.shape_cast %23 : vector<64x8xf32> to vector<1x64x8xf32>
    %28 = vector.shape_cast %24 : vector<64x8xf32> to vector<1x64x8xf32>
    %29 = vector.shape_cast %25 : vector<64x8xf32> to vector<1x64x8xf32>
    %30 = tpu.concatenate %26, %27, %28, %29 in 0 : vector<1x64x8xf32>, vector<1x64x8xf32>, vector<1x64x8xf32>, vector<1x64x8xf32> -> vector<4x64x8xf32>
    %cst_19 = arith.constant 0.353553385 : f32
    %31 = vector.broadcast %cst_19 : f32 to vector<4x64x8xf32>
    %32 = arith.mulf %30, %31 : vector<4x64x8xf32>
    %33 = vector.extract_strided_slice %14 {offsets = [0, 32], sizes = [64, 8], strides = [1, 1]} : vector<64x64xf32> to vector<64x8xf32>
    %34 = vector.extract_strided_slice %14 {offsets = [0, 40], sizes = [64, 8], strides = [1, 1]} : vector<64x64xf32> to vector<64x8xf32>
    %35 = vector.extract_strided_slice %14 {offsets = [0, 48], sizes = [64, 8], strides = [1, 1]} : vector<64x64xf32> to vector<64x8xf32>
    %36 = vector.extract_strided_slice %14 {offsets = [0, 56], sizes = [64, 8], strides = [1, 1]} : vector<64x64xf32> to vector<64x8xf32>
    %37 = vector.shape_cast %33 : vector<64x8xf32> to vector<1x64x8xf32>
    %38 = vector.shape_cast %34 : vector<64x8xf32> to vector<1x64x8xf32>
    %39 = vector.shape_cast %35 : vector<64x8xf32> to vector<1x64x8xf32>
    %40 = vector.shape_cast %36 : vector<64x8xf32> to vector<1x64x8xf32>
    %41 = tpu.concatenate %37, %38, %39, %40 in 0 : vector<1x64x8xf32>, vector<1x64x8xf32>, vector<1x64x8xf32>, vector<1x64x8xf32> -> vector<4x64x8xf32>
    %42 = vector.extract_strided_slice %21 {offsets = [0, 0], sizes = [64, 8], strides = [1, 1]} : vector<64x32xf32> to vector<64x8xf32>
    %43 = vector.extract_strided_slice %21 {offsets = [0, 8], sizes = [64, 8], strides = [1, 1]} : vector<64x32xf32> to vector<64x8xf32>
    %44 = vector.extract_strided_slice %21 {offsets = [0, 16], sizes = [64, 8], strides = [1, 1]} : vector<64x32xf32> to vector<64x8xf32>
    %45 = vector.extract_strided_slice %21 {offsets = [0, 24], sizes = [64, 8], strides = [1, 1]} : vector<64x32xf32> to vector<64x8xf32>
    %46 = vector.shape_cast %42 : vector<64x8xf32> to vector<1x64x8xf32>
    %47 = vector.shape_cast %43 : vector<64x8xf32> to vector<1x64x8xf32>
    %48 = vector.shape_cast %44 : vector<64x8xf32> to vector<1x64x8xf32>
    %49 = vector.shape_cast %45 : vector<64x8xf32> to vector<1x64x8xf32>
    %50 = tpu.concatenate %46, %47, %48, %49 in 0 : vector<1x64x8xf32>, vector<1x64x8xf32>, vector<1x64x8xf32>, vector<1x64x8xf32> -> vector<4x64x8xf32>
    "tpu.trace_start"() <{level = 10 : i32, message = "hqd,hkd->hqk"}> : () -> ()
    %cst_20 = arith.constant dense<0.000000e+00> : vector<4x64x64xf32>
    %51 = tpu.matmul %32, %41, %cst_20 {dimension_numbers = #tpu.dot_dimension_numbers<[2], [2], [1], [1], [0, 0, 0, 1, 1, 1], [0], [0]>} : vector<4x64x8xf32>, vector<4x64x8xf32>, vector<4x64x64xf32> -> vector<4x64x64xf32>
    "tpu.trace_stop"() : () -> ()
    %cst_21 = arith.constant dense<0xFF800000> : vector<4x64xf32>
    %52 = vector.multi_reduction <maximumf>, %51, %cst_21 [2] : vector<4x64x64xf32> to vector<4x64xf32>
    %53 = vector.shape_cast %52 : vector<4x64xf32> to vector<4x64x1xf32>
    %54 = vector.broadcast %53 : vector<4x64x1xf32> to vector<4x64x64xf32>
    %55 = arith.subf %51, %54 : vector<4x64x64xf32>
    %56 = math.exp %55 : vector<4x64x64xf32>
    %cst_22 = arith.constant dense<0.000000e+00> : vector<4x64xf32>
    %57 = vector.multi_reduction <add>, %56, %cst_22 [2] : vector<4x64x64xf32> to vector<4x64xf32>
    %58 = vector.shape_cast %57 : vector<4x64xf32> to vector<4x64x1xf32>
    %59 = tpu.reciprocal %58 {approx = true} : vector<4x64x1xf32> -> vector<4x64x1xf32>
    %60 = vector.broadcast %59 : vector<4x64x1xf32> to vector<4x64x64xf32>
    %61 = arith.mulf %56, %60 : vector<4x64x64xf32>
    "tpu.trace_start"() <{level = 10 : i32, message = "hqk,hkd->hqd"}> : () -> ()
    %cst_23 = arith.constant dense<0.000000e+00> : vector<4x64x8xf32>
    %62 = tpu.matmul %61, %50, %cst_23 {dimension_numbers = #tpu.dot_dimension_numbers<[2], [1], [1], [2], [0, 0, 0, 1, 1, 2], [0], [0]>} : vector<4x64x64xf32>, vector<4x64x8xf32>, vector<4x64x8xf32> -> vector<4x64x8xf32>
    "tpu.trace_stop"() : () -> ()
    %c0_24 = arith.constant 0 : index
    %c0_25 = arith.constant 0 : index
    %c0_26 = arith.constant 0 : index
    %c0_27 = arith.constant 0 : index
    %63 = vector.load %arg8[%c0_24, %c0_25, %c0_26, %c0_27] : memref<1x4x8x32xf32, #tpu.memory_space<vmem>>, vector<1x4x8x32xf32>
    %64 = vector.shape_cast %63 : vector<1x4x8x32xf32> to vector<4x8x32xf32>
    "tpu.trace_start"() <{level = 10 : i32, message = "hsd,hde->hse"}> : () -> ()
    %cst_28 = arith.constant dense<0.000000e+00> : vector<4x64x32xf32>
    %65 = tpu.matmul %62, %64, %cst_28 {dimension_numbers = #tpu.dot_dimension_numbers<[2], [1], [1], [2], [0, 0, 0, 1, 1, 2], [0], [0]>} : vector<4x64x8xf32>, vector<4x8x32xf32>, vector<4x64x32xf32> -> vector<4x64x32xf32>
    "tpu.trace_stop"() : () -> ()
    %cst_29 = arith.constant dense<0.000000e+00> : vector<64x32xf32>
    %66 = vector.multi_reduction <add>, %65, %cst_29 [0] : vector<4x64x32xf32> to vector<64x32xf32>
    %c0_30 = arith.constant 0 : index
    %c0_31 = arith.constant 0 : index
    %c0_32 = arith.constant 0 : index
    %67 = vector.load %arg9[%c0_30, %c0_31, %c0_32] : memref<1x1x32xf32, #tpu.memory_space<vmem>>, vector<1x1x32xf32>
    %68 = vector.shape_cast %67 : vector<1x1x32xf32> to vector<1x32xf32>
    %69 = vector.broadcast %68 : vector<1x32xf32> to vector<64x32xf32>
    %70 = arith.addf %66, %69 : vector<64x32xf32>
    %71 = arith.addf %4, %70 : vector<64x32xf32>
    %cst_33 = arith.constant dense<0.000000e+00> : vector<64xf32>
    %72 = vector.multi_reduction <add>, %71, %cst_33 [1] : vector<64x32xf32> to vector<64xf32>
    %73 = vector.shape_cast %72 : vector<64xf32> to vector<64x1xf32>
    %cst_34 = arith.constant 3.200000e+01 : f32
    %74 = vector.broadcast %cst_34 : f32 to vector<64x1xf32>
    %75 = arith.divf %73, %74 : vector<64x1xf32>
    %76 = vector.broadcast %75 : vector<64x1xf32> to vector<64x32xf32>
    %77 = arith.subf %71, %76 : vector<64x32xf32>
    %78 = arith.mulf %77, %77 : vector<64x32xf32>
    %cst_35 = arith.constant dense<0.000000e+00> : vector<64xf32>
    %79 = vector.multi_reduction <add>, %78, %cst_35 [1] : vector<64x32xf32> to vector<64xf32>
    %80 = vector.shape_cast %79 : vector<64xf32> to vector<64x1xf32>
    %cst_36 = arith.constant 3.200000e+01 : f32
    %81 = vector.broadcast %cst_36 : f32 to vector<64x1xf32>
    %82 = arith.divf %80, %81 : vector<64x1xf32>
    %cst_37 = arith.constant 9.99999974E-6 : f32
    %83 = vector.broadcast %cst_37 : f32 to vector<64x1xf32>
    %84 = arith.addf %82, %83 : vector<64x1xf32>
    %85 = math.rsqrt %84 : vector<64x1xf32>
    %86 = vector.broadcast %85 : vector<64x1xf32> to vector<64x32xf32>
    %87 = arith.mulf %77, %86 : vector<64x32xf32>
    %c0_38 = arith.constant 0 : index
    %c0_39 = arith.constant 0 : index
    %c0_40 = arith.constant 0 : index
    %88 = vector.load %arg10[%c0_38, %c0_39, %c0_40] : memref<1x1x32xf32, #tpu.memory_space<vmem>>, vector<1x1x32xf32>
    %89 = vector.shape_cast %88 : vector<1x1x32xf32> to vector<1x32xf32>
    %90 = vector.broadcast %89 : vector<1x32xf32> to vector<64x32xf32>
    %91 = arith.mulf %87, %90 : vector<64x32xf32>
    %c0_41 = arith.constant 0 : index
    %c0_42 = arith.constant 0 : index
    %c0_43 = arith.constant 0 : index
    %92 = vector.load %arg11[%c0_41, %c0_42, %c0_43] : memref<1x1x32xf32, #tpu.memory_space<vmem>>, vector<1x1x32xf32>
    %93 = vector.shape_cast %92 : vector<1x1x32xf32> to vector<1x32xf32>
    %94 = vector.broadcast %93 : vector<1x32xf32> to vector<64x32xf32>
    %95 = arith.addf %91, %94 : vector<64x32xf32>
    %c0_44 = arith.constant 0 : index
    %c0_45 = arith.constant 0 : index
    %c0_46 = arith.constant 0 : index
    %96 = vector.load %arg12[%c0_44, %c0_45, %c0_46] : memref<1x32x64xf32, #tpu.memory_space<vmem>>, vector<1x32x64xf32>
    %97 = vector.shape_cast %96 : vector<1x32x64xf32> to vector<32x64xf32>
    %cst_47 = arith.constant dense<0.000000e+00> : vector<64x64xf32>
    %98 = tpu.matmul %95, %97, %cst_47 {dimension_numbers = #tpu.dot_dimension_numbers<[1], [0], [0], [1], [0, 0, 1, 1], [], []>} : vector<64x32xf32>, vector<32x64xf32>, vector<64x64xf32> -> vector<64x64xf32>
    %c0_48 = arith.constant 0 : index
    %c0_49 = arith.constant 0 : index
    %c0_50 = arith.constant 0 : index
    %99 = vector.load %arg13[%c0_48, %c0_49, %c0_50] : memref<1x1x64xf32, #tpu.memory_space<vmem>>, vector<1x1x64xf32>
    %100 = vector.shape_cast %99 : vector<1x1x64xf32> to vector<1x64xf32>
    %101 = vector.broadcast %100 : vector<1x64xf32> to vector<64x64xf32>
    %102 = arith.addf %98, %101 : vector<64x64xf32>
    %cst_51 = arith.constant 0.000000e+00 : f32
    %103 = vector.broadcast %cst_51 : f32 to vector<64x64xf32>
    %104 = arith.maximumf %102, %103 : vector<64x64xf32>
    %c0_52 = arith.constant 0 : index
    %c0_53 = arith.constant 0 : index
    %c0_54 = arith.constant 0 : index
    %105 = vector.load %arg14[%c0_52, %c0_53, %c0_54] : memref<1x64x32xf32, #tpu.memory_space<vmem>>, vector<1x64x32xf32>
    %106 = vector.shape_cast %105 : vector<1x64x32xf32> to vector<64x32xf32>
    %cst_55 = arith.constant dense<0.000000e+00> : vector<64x32xf32>
    %107 = tpu.matmul %104, %106, %cst_55 {dimension_numbers = #tpu.dot_dimension_numbers<[1], [0], [0], [1], [0, 0, 1, 1], [], []>} : vector<64x64xf32>, vector<64x32xf32>, vector<64x32xf32> -> vector<64x32xf32>
    %c0_56 = arith.constant 0 : index
    %c0_57 = arith.constant 0 : index
    %c0_58 = arith.constant 0 : index
    %108 = vector.load %arg15[%c0_56, %c0_57, %c0_58] : memref<1x1x32xf32, #tpu.memory_space<vmem>>, vector<1x1x32xf32>
    %109 = vector.shape_cast %108 : vector<1x1x32xf32> to vector<1x32xf32>
    %110 = vector.broadcast %109 : vector<1x32xf32> to vector<64x32xf32>
    %111 = arith.addf %107, %110 : vector<64x32xf32>
    %112 = arith.addf %95, %111 : vector<64x32xf32>
    %cst_59 = arith.constant dense<0.000000e+00> : vector<64xf32>
    %113 = vector.multi_reduction <add>, %112, %cst_59 [1] : vector<64x32xf32> to vector<64xf32>
    %114 = vector.shape_cast %113 : vector<64xf32> to vector<64x1xf32>
    %cst_60 = arith.constant 3.200000e+01 : f32
    %115 = vector.broadcast %cst_60 : f32 to vector<64x1xf32>
    %116 = arith.divf %114, %115 : vector<64x1xf32>
    %117 = vector.broadcast %116 : vector<64x1xf32> to vector<64x32xf32>
    %118 = arith.subf %112, %117 : vector<64x32xf32>
    %119 = arith.mulf %118, %118 : vector<64x32xf32>
    %cst_61 = arith.constant dense<0.000000e+00> : vector<64xf32>
    %120 = vector.multi_reduction <add>, %119, %cst_61 [1] : vector<64x32xf32> to vector<64xf32>
    %121 = vector.shape_cast %120 : vector<64xf32> to vector<64x1xf32>
    %cst_62 = arith.constant 3.200000e+01 : f32
    %122 = vector.broadcast %cst_62 : f32 to vector<64x1xf32>
    %123 = arith.divf %121, %122 : vector<64x1xf32>
    %cst_63 = arith.constant 9.99999974E-6 : f32
    %124 = vector.broadcast %cst_63 : f32 to vector<64x1xf32>
    %125 = arith.addf %123, %124 : vector<64x1xf32>
    %126 = math.rsqrt %125 : vector<64x1xf32>
    %127 = vector.broadcast %126 : vector<64x1xf32> to vector<64x32xf32>
    %128 = arith.mulf %118, %127 : vector<64x32xf32>
    %c0_64 = arith.constant 0 : index
    %c0_65 = arith.constant 0 : index
    %c0_66 = arith.constant 0 : index
    %129 = vector.load %arg16[%c0_64, %c0_65, %c0_66] : memref<1x1x32xf32, #tpu.memory_space<vmem>>, vector<1x1x32xf32>
    %130 = vector.shape_cast %129 : vector<1x1x32xf32> to vector<1x32xf32>
    %131 = vector.broadcast %130 : vector<1x32xf32> to vector<64x32xf32>
    %132 = arith.mulf %128, %131 : vector<64x32xf32>
    %c0_67 = arith.constant 0 : index
    %c0_68 = arith.constant 0 : index
    %c0_69 = arith.constant 0 : index
    %133 = vector.load %arg17[%c0_67, %c0_68, %c0_69] : memref<1x1x32xf32, #tpu.memory_space<vmem>>, vector<1x1x32xf32>
    %134 = vector.shape_cast %133 : vector<1x1x32xf32> to vector<1x32xf32>
    %135 = vector.broadcast %134 : vector<1x32xf32> to vector<64x32xf32>
    %136 = arith.addf %132, %135 : vector<64x32xf32>
    %c0_70 = arith.constant 0 : index
    %c0_71 = arith.constant 0 : index
    %c0_72 = arith.constant 0 : index
    %137 = vector.load %arg18[%c0_70, %c0_71, %c0_72] : memref<1x64x32xf32, #tpu.memory_space<vmem>>, vector<1x64x32xf32>
    %138 = vector.shape_cast %137 : vector<1x64x32xf32> to vector<64x32xf32>
    %139 = vector.shape_cast %136 : vector<64x32xf32> to vector<1x64x32xf32>
    tpu.vector_store %arg18[%c0_70, %c0_71, %c0_72], %139 {strides = array<i32>} : memref<1x64x32xf32, #tpu.memory_space<vmem>>, vector<1x64x32xf32>,
    return
  }
  func.func @transform_0(%arg0: i32, %arg1: i32) -> (i32, i32, i32) {
    %c0_i32 = arith.constant 0 : i32
    %c0_i32_0 = arith.constant 0 : i32
    %c0_i32_1 = arith.constant 0 : i32
    return %arg0, %c0_i32, %c0_i32_0 : i32, i32, i32
  }
  func.func @transform_1(%arg0: i32, %arg1: i32) -> (i32, i32, i32) {
    %c0_i32 = arith.constant 0 : i32
    %c0_i32_0 = arith.constant 0 : i32
    %c0_i32_1 = arith.constant 0 : i32
    return %arg0, %c0_i32, %c0_i32_0 : i32, i32, i32
  }
  func.func @transform_2(%arg0: i32, %arg1: i32) -> (i32, i32, i32) {
    %c0_i32 = arith.constant 0 : i32
    %c0_i32_0 = arith.constant 0 : i32
    %c0_i32_1 = arith.constant 0 : i32
    return %arg1, %c0_i32, %c0_i32_0 : i32, i32, i32
  }
  func.func @transform_3(%arg0: i32, %arg1: i32) -> (i32, i32, i32) {
    %c0_i32 = arith.constant 0 : i32
    %c0_i32_0 = arith.constant 0 : i32
    %c0_i32_1 = arith.constant 0 : i32
    return %arg1, %c0_i32, %c0_i32_0 : i32, i32, i32
  }
  func.func @transform_4(%arg0: i32, %arg1: i32) -> (i32, i32, i32) {
    %c0_i32 = arith.constant 0 : i32
    %c0_i32_0 = arith.constant 0 : i32
    %c0_i32_1 = arith.constant 0 : i32
    return %arg1, %c0_i32, %c0_i32_0 : i32, i32, i32
  }
  func.func @transform_5(%arg0: i32, %arg1: i32) -> (i32, i32, i32) {
    %c0_i32 = arith.constant 0 : i32
    %c0_i32_0 = arith.constant 0 : i32
    %c0_i32_1 = arith.constant 0 : i32
    return %arg1, %c0_i32, %c0_i32_0 : i32, i32, i32
  }
  func.func @transform_6(%arg0: i32, %arg1: i32) -> (i32, i32, i32, i32) {
    %c0_i32 = arith.constant 0 : i32
    %c0_i32_0 = arith.constant 0 : i32
    %c0_i32_1 = arith.constant 0 : i32
    %c0_i32_2 = arith.constant 0 : i32
    return %arg1, %c0_i32, %c0_i32_0, %c0_i32_1 : i32, i32, i32, i32
  }
  func.func @transform_7(%arg0: i32, %arg1: i32) -> (i32, i32, i32) {
    %c0_i32 = arith.constant 0 : i32
    %c0_i32_0 = arith.constant 0 : i32
    %c0_i32_1 = arith.constant 0 : i32
    return %arg1, %c0_i32, %c0_i32_0 : i32, i32, i32
  }
  func.func @transform_8(%arg0: i32, %arg1: i32) -> (i32, i32, i32) {
    %c0_i32 = arith.constant 0 : i32
    %c0_i32_0 = arith.constant 0 : i32
    %c0_i32_1 = arith.constant 0 : i32
    return %arg1, %c0_i32, %c0_i32_0 : i32, i32, i32
  }
  func.func @transform_9(%arg0: i32, %arg1: i32) -> (i32, i32, i32) {
    %c0_i32 = arith.constant 0 : i32
    %c0_i32_0 = arith.constant 0 : i32
    %c0_i32_1 = arith.constant 0 : i32
    return %arg1, %c0_i32, %c0_i32_0 : i32, i32, i32
  }
  func.func @transform_10(%arg0: i32, %arg1: i32) -> (i32, i32, i32) {
    %c0_i32 = arith.constant 0 : i32
    %c0_i32_0 = arith.constant 0 : i32
    %c0_i32_1 = arith.constant 0 : i32
    return %arg1, %c0_i32, %c0_i32_0 : i32, i32, i32
  }
  func.func @transform_11(%arg0: i32, %arg1: i32) -> (i32, i32, i32) {
    %c0_i32 = arith.constant 0 : i32
    %c0_i32_0 = arith.constant 0 : i32
    %c0_i32_1 = arith.constant 0 : i32
    return %arg1, %c0_i32, %c0_i32_0 : i32, i32, i32
  }
  func.func @transform_12(%arg0: i32, %arg1: i32) -> (i32, i32, i32) {
    %c0_i32 = arith.constant 0 : i32
    %c0_i32_0 = arith.constant 0 : i32
    %c0_i32_1 = arith.constant 0 : i32
    return %arg1, %c0_i32, %c0_i32_0 : i32, i32, i32
  }
  func.func @transform_13(%arg0: i32, %arg1: i32) -> (i32, i32, i32) {
    %c0_i32 = arith.constant 0 : i32
    %c0_i32_0 = arith.constant 0 : i32
    %c0_i32_1 = arith.constant 0 : i32
    return %arg1, %c0_i32, %c0_i32_0 : i32, i32, i32
  }
  func.func @transform_14(%arg0: i32, %arg1: i32) -> (i32, i32, i32) {
    %c0_i32 = arith.constant 0 : i32
    %c0_i32_0 = arith.constant 0 : i32
    %c0_i32_1 = arith.constant 0 : i32
    return %arg1, %c0_i32, %c0_i32_0 : i32, i32, i32
  }
  func.func @transform_15(%arg0: i32, %arg1: i32) -> (i32, i32, i32) {
    %c0_i32 = arith.constant 0 : i32
    %c0_i32_0 = arith.constant 0 : i32
    %c0_i32_1 = arith.constant 0 : i32
    return %arg1, %c0_i32, %c0_i32_0 : i32, i32, i32
  }
  func.func @transform_16(%arg0: i32, %arg1: i32) -> (i32, i32, i32) {
    %c0_i32 = arith.constant 0 : i32
    %c0_i32_0 = arith.constant 0 : i32
    %c0_i32_1 = arith.constant 0 : i32
    return %arg0, %c0_i32, %c0_i32_0 : i32, i32, i32
  }
}

</mosaic_0001>

<bundles_post_ra>
// kernel: transformer_encoder.1
= control target key start
LH: loop header
LB: loop body
LE: loop exit
PB: predicated region body
PF: predicated region fallthrough
CT: control target
= control target key end

     0   :  { %s3914_s21 = smov 0   ;;  %s3916_s22 = smov 0   ;;  %s5206_s0 = inlined_call_operand.vmem [shape: f32[2,64,32], index: 0, kind: input, shape index: {}]   ;;  %s5207_s1 = inlined_call_operand.vmem [shape: f32[2,64,32], index: 1, kind: input, shape index: {}]   ;;  %s5208_s2 = inlined_call_operand.vmem [shape: f32[2,32,64], index: 2, kind: input, shape index: {}]   ;;  %s5209_s3 = inlined_call_operand.vmem [shape: f32[2,1,64], index: 3, kind: input, shape index: {}]   ;;  %s5210_s4 = inlined_call_operand.vmem [shape: f32[2,32,32], index: 4, kind: input, shape index: {}]   ;;  %s5211_s5 = inlined_call_operand.vmem [shape: f32[2,1,32], index: 5, kind: input, shape index: {}]   ;;  %s5212_s6 = inlined_call_operand.vmem [shape: f32[2,4,8,32], index: 6, kind: input, shape index: {}]   ;;  %s5213_s7 = inlined_call_operand.vmem [shape: f32[2,1,32], index: 7, kind: input, shape index: {}]   ;;  %s5214_s8 = inlined_call_operand.vmem [shape: f32[2,1,32], index: 8, kind: input, shape index: {}]   ;;  %s5215_s9 = inlined_call_operand.vmem [shape: f32[2,1,32], index: 9, kind: input, shape index: {}]   ;;  %s5216_s10 = inlined_call_operand.vmem [shape: f32[2,32,64], index: 10, kind: input, shape index: {}]   ;;  %s5217_s11 = inlined_call_operand.vmem [shape: f32[2,1,64], index: 11, kind: input, shape index: {}]   ;;  %s5218_s12 = inlined_call_operand.vmem [shape: f32[2,64,32], index: 12, kind: input, shape index: {}]   ;;  %s5219_s13 = inlined_call_operand.vmem [shape: f32[2,1,32], index: 13, kind: input, shape index: {}]   ;;  %s5220_s14 = inlined_call_operand.vmem [shape: f32[2,1,32], index: 14, kind: input, shape index: {}]   ;;  %s5221_s15 = inlined_call_operand.vmem [shape: f32[2,1,32], index: 15, kind: input, shape index: {}]   ;;  %s5222_s16 = inlined_call_operand.vmem [shape: f32[2,64,32], index: 16, kind: output, shape index: {}]  }
   0x1   :  { %5230 = sst [smem:[#allocation11_spill]] %s5206_s0  ;;  %s3918_s23 = smov 0  }
   0x2   :  { %5231 = sst [smem:[#allocation12_spill]] %s5207_s1  ;;  %s3920_s24 = smov 0  }
   0x3   :  { %5232 = sst [smem:[#allocation13_spill]] %s5208_s2  ;;  %s3922_s25 = smov 0  }
   0x4   :  { %5233 = sst [smem:[#allocation14_spill]] %s5210_s4 }
   0x5   :  { %5234 = sst [smem:[#allocation15_spill]] %s5212_s6 }
   0x6   :  { %5235 = sst [smem:[#allocation16_spill]] %s5216_s10 }
   0x7   :  { %5236 = sst [smem:[#allocation17_spill]] %s5217_s11 }
   0x8   :  { %5237 = sst [smem:[#allocation18_spill]] %s5221_s15 }
   0x9   :  { %5238 = sst [smem:[#allocation19_spill]] %s5222_s16 }
   0xa LB: > { %5239 = sst [smem:[#allocation2_spill]] %s3806_s21  ;;  %s35_s26 = sadd.s32 1, %s3814_s23  ;;  %s3822_s25 = sphi %s3922_s25, %s26_s25   ;;  %s3818_s24 = sphi %s3920_s24, %s5273_s24   ;;  %s3814_s23 = sphi %s3918_s23, %s5272_s23   ;;  %s3810_s22 = sphi %s3916_s22, %s5271_s22   ;;  %s3806_s21 = sphi %s3914_s21, %s5270_s21  }
   0xb   : > { %5240 = sst [smem:[#allocation3_spill]] %s3814_s23  ;;  %s38_s27 = sadd.s32 1, %s3818_s24 }
   0xc   : > { %5241 = sst [smem:[#allocation4_spill]] %s3818_s24  ;;  %p36_p0 = scmp.ge.s32.totalorder %s35_s26, 2 }
   0xd   : > { %5242 = sst [smem:[#allocation5_spill]] %s3822_s25  ;;  %p3310_p1 = scmp.ge.s32.totalorder %s3822_s25, 1 }
   0xe   : > { %p606_p2 = scmp.lt.s32.totalorder %s3822_s25, 5  ;;  %s5275_s26 = smov (%p36_p0, %s35_s26), 0 }
   0xf   : > { %5243 = sst [smem:[#allocation6_spill]] %s5275_s26  ;;  %s5277_s27 = smov (!%p36_p0, %s38_s27), %s3818_s24 }
  0x10   : > { %p607_p3 = pnand %p3310_p1, %p606_p2  ;;  %p40_p4 = scmp.ge.s32.totalorder %s5277_s27, 2 }
  0x12   : > { %s5279_s27 = smov (%p40_p4, %s5277_s27), 0  ;;  %610 = sbr.rel (%p607_p3) target bundleno = 2163 (0x873), region = 84 }
  0x13   : > { %5244 = sst [smem:[#allocation7_spill]] %s5279_s27 }
  0x17   : > { %p713_p5 = scmp.lt.s32.totalorder %s3810_s22, 1  ;;  %p723_p6 = scmp.lt.s32.totalorder %s3806_s21, 1 }
  0x18   : > { %s5245_s17 = sld [smem:[#allocation11_spill]] }
  0x19   : > { %s5281_s22 = smov (!%p713_p5, %s3810_s22), 1  ;;  %s5247_s1 = sld [smem:[#allocation12_spill]] }
  0x1a   : > { %s3948_s28 = scalar_select %p723_p6, %s3806_s21, 1 }
  0x1b   : > { %s3490_s29 = sshll.u32 %s5281_s22, 6  ;;  %s5249_s2 = sld [smem:[#allocation13_spill]] }
  0x1c   : > { %s3492_s26 = sshll.u32 %s3948_s28, 5  ;;  %s5250_s4 = sld [smem:[#allocation14_spill]] }
  0x1d   : > { %s5252_s6 = sld [smem:[#allocation15_spill]]  ;;  %s768_s30 = scalar_lea.vmem %s5219_s13, %s3948_s28 }
  0x1e   : > { %s3953_s18 = scalar_lea.vmem %s5245_s17, %s3490_s29  ;;  %s5253_s10 = sld [smem:[#allocation16_spill]] }
  0x1f   : > { %5246 = sst [smem:[#allocation8_spill]] %s3953_s18  ;;  %s3958_s27 = scalar_lea.vmem %s5247_s1, %s3490_s29 }
  0x20   : > { %5248 = sst [smem:[#allocation9_spill]] %s3958_s27 }
  0x21   : > { %s3968_s16 = scalar_lea.vmem %s5249_s2, %s3492_s26  ;;  %s5255_s2 = sld [smem:[#allocation18_spill]] }
  0x22   : > { %s3973_s17 = scalar_lea.vmem %s5250_s4, %s3492_s26  ;;  %s5256_s1 = sld [smem:[#allocation19_spill]] }
  0x23   : > { %5251 = sst [smem:[#allocation10_spill]] %s3973_s17  ;;  %s3982_s15 = scalar_lea.vmem %s5252_s6, %s3492_s26 }
  0x24   : > { %s3999_s20 = scalar_lea.vmem %s5253_s10, %s3492_s26  ;;  %s3496_s6 = sshll.u32 %s3948_s28, 6 }
  0x25   : > { %s4009_s21 = scalar_lea.vmem %s5218_s12, %s3496_s6  ;;  %s771_s17 = scalar_lea.vmem %s5220_s14, %s3948_s28 }
  0x26   : > { %s5257_s23 = sld [smem:[#allocation2_spill]] }
  0x27   : > { %s774_s10 = scalar_lea.vmem %s5255_s2, %s3948_s28 }
  0x28   : > { %s4026_s11 = scalar_lea.vmem %s5256_s1, %s3490_s29 }
  0x2c   : > { %p3327_p7 = scmp.ne.s32.totalorder %s5257_s23, 0 }
  0x2d   : > { %s5258_s6 = sld [smem:[#allocation8_spill]] (!%p3327_p7) }
  0x2e   : > { %783 = sbr.rel (%p3327_p7) target bundleno = 60 (0x3c), region = 88 }
  0x33   : > { %v784_v0 = vld [vmem:[%s5258_s6] sm:$0xff]  ;;  %vm792_vm0 = vcmask 261120   ;;  %v785_v1 = vld [vmem:[%s5258_s6 + $0x8] sm:$0xff]  ;;  %v786_v2 = vld [vmem:[%s5258_s6 + $0x10] sm:$0xff] }
  0x34   : > { %793 = vst.msk [vmem:[%s4026_s11] sm:$0xff] %vm792_vm0, %v784_v0  ;;  %v787_v3 = vld [vmem:[%s5258_s6 + $0x18] sm:$0xff]  ;;  %v788_v4 = vld [vmem:[%s5258_s6 + $0x20] sm:$0xff]  ;;  %v789_v5 = vld [vmem:[%s5258_s6 + $0x28] sm:$0xff] }
  0x35   : > { %794 = vst.msk [vmem:[%s4026_s11 + $0x8] sm:$0xff] %vm792_vm0, %v785_v1  ;;  %v790_v6 = vld [vmem:[%s5258_s6 + $0x30] sm:$0xff]  ;;  %v791_v7 = vld [vmem:[%s5258_s6 + $0x38] sm:$0xff] }
  0x36   : > { %795 = vst.msk [vmem:[%s4026_s11 + $0x10] sm:$0xff] %vm792_vm0, %v786_v2 }
  0x37   : > { %796 = vst.msk [vmem:[%s4026_s11 + $0x18] sm:$0xff] %vm792_vm0, %v787_v3 }
  0x38   : > { %797 = vst.msk [vmem:[%s4026_s11 + $0x20] sm:$0xff] %vm792_vm0, %v788_v4 }
  0x39   : > { %798 = vst.msk [vmem:[%s4026_s11 + $0x28] sm:$0xff] %vm792_vm0, %v789_v5 }
  0x3a   : > { %799 = vst.msk [vmem:[%s4026_s11 + $0x30] sm:$0xff] %vm792_vm0, %v790_v6 }
  0x3b   : > { %800 = vst.msk [vmem:[%s4026_s11 + $0x38] sm:$0xff] %vm792_vm0, %v791_v7 }
  0x3c PF: > { %s5259_s1 = sld [smem:[#allocation9_spill]]  ;;  %v828_v8 = vld [vmem:[%s3968_s16 + $0x18] sm:$0xff]  ;;  %v827_v9 = vld [vmem:[%s3968_s16 + $0x10] sm:$0xff]  ;;  %v4048_v10 = vld [vmem:[%s4026_s11] sm:$0xff]  ;;  %vm833_vm1 = vcmask 261120   ;;  %s3824_s29 = smov 112  }
  0x3d   : > { %870 = vmatpush.msra.mxu0 %v828_v8  ;;  %v826_v12 = vld [vmem:[%s3968_s16 + $0x8] sm:$0xff]  ;;  %v825_v13 = vld [vmem:[%s3968_s16] sm:$0xff]  ;;  %v4062_v18 = vld [vmem:[%s4026_s11 + $0x10] sm:$0xff]  ;;  %s5260_s16 = scalar_lea.vmem %s5209_s3, %s3948_s28  ;;  %s3825_s24 = smov 120   ;;  %vm1180_vm2 = vcmask 64512   ;;  %vm1553_vm3 = vcmask 523264  }
  0x3e   : > { %v4056_v15 = vld [vmem:[%s4026_s11 + $0x8] sm:$0xff]  ;;  %v4068_v21 = vld [vmem:[%s4026_s11 + $0x18] sm:$0xff]  ;;  %v3605_v36 = vld [vmem:[%s5260_s16] ss:$0 sm:$0xff]  ;;  %s3826_s25 = smov 104   ;;  %s3827_s22 = smov 96  }
  0x3f   : > { %871 = vmatpush.msra.mxu0 %v827_v9  ;;  %v4074_v24 = vld [vmem:[%s4026_s11 + $0x20] sm:$0xff]  ;;  %s5261_s0 = sld [smem:[#allocation10_spill]]  ;;  %s5262_s27 = scalar_lea.vmem %s5211_s5, %s3948_s28 }
  0x40   : > { %v4080_v27 = vld [vmem:[%s4026_s11 + $0x28] sm:$0xff]  ;;  %s5263_s23 = scalar_lea.vmem %s5213_s7, %s3948_s28  ;;  %s5265_s16 = scalar_lea.vmem %s5215_s9, %s3948_s28 }
  0x41   : > { %872 = vmatpush.msra.mxu0 %v826_v12  ;;  %v4086_v30 = vld [vmem:[%s4026_s11 + $0x30] sm:$0xff] }
  0x42   : > { %v809_v11 = vld [vmem:[%s5259_s1] sm:$0xff]  ;;  %v810_v16 = vld [vmem:[%s5259_s1 + $0x8] sm:$0xff]  ;;  %v811_v19 = vld [vmem:[%s5259_s1 + $0x10] sm:$0xff] }
  0x43   : > { %v817_v14 = vadd.f32 %v809_v11, %v4048_v10  ;;  %873 = vmatpush.msra.mxu0 %v825_v13  ;;  %v818_v17 = vadd.f32 %v810_v16, %v4056_v15  ;;  %v819_v20 = vadd.f32 %v811_v19, %v4062_v18  ;;  %v812_v22 = vld [vmem:[%s5259_s1 + $0x18] sm:$0xff]  ;;  %v813_v25 = vld [vmem:[%s5259_s1 + $0x20] sm:$0xff]  ;;  %v814_v28 = vld [vmem:[%s5259_s1 + $0x28] sm:$0xff] }
  0x44   : > { %v820_v23 = vadd.f32 %v812_v22, %v4068_v21  ;;  %v821_v26 = vadd.f32 %v813_v25, %v4074_v24  ;;  %v822_v29 = vadd.f32 %v814_v28, %v4080_v27  ;;  %v815_v31 = vld [vmem:[%s5259_s1 + $0x30] sm:$0xff]  ;;  %v4092_v33 = vld [vmem:[%s4026_s11 + $0x38] sm:$0xff] }
  0x45   : > { %3328 = vmatmul.msk.f32.vlgmr.msra.gmra.mxu0 %vm833_vm1, %v817_v14  ;;  %v823_v32 = vadd.f32 %v815_v31, %v4086_v30  ;;  %v816_v34 = vld [vmem:[%s5259_s1 + $0x38] sm:$0xff]  ;;  %v901_v50 = vld [vmem:[%s5261_s0 + $0x10] sm:$0xff]  ;;  %v900_v51 = vld [vmem:[%s5261_s0 + $0x8] sm:$0xff]  ;;  %s5264_s1 = scalar_lea.vmem %s5214_s8, %s3948_s28 }
  0x46   : > { %v824_v35 = vadd.f32 %v816_v34, %v4092_v33  ;;  %v902_v49 = vld [vmem:[%s5261_s0 + $0x18] sm:$0xff]  ;;  %v899_v52 = vld [vmem:[%s5261_s0] sm:$0xff] }
  0x47   : > { %943 = vmatpush.msra.mxu1 %v902_v49 }
  0x49   : > { %944 = vmatpush.msra.mxu1 %v901_v50 }
  0x4b   : > { %945 = vmatpush.msra.mxu1 %v900_v51 }
  0x4d   : > { %3329 = vmatmul.msk.f32.gmra.mxu0 %vm833_vm1, %v818_v17  ;;  %946 = vmatpush.msra.mxu1 %v899_v52 }
  0x4e   : > { %3336 = vmatmul.msk.f32.vlgmr.msra.gmra.mxu1 %vm833_vm1, %v4048_v10 }
  0x55   : > { %3330 = vmatmul.msk.f32.gmra.mxu0 %vm833_vm1, %v819_v20 }
  0x56   : > { %3337 = vmatmul.msk.f32.gmra.mxu1 %vm833_vm1, %v4056_v15 }
  0x5d   : > { %3331 = vmatmul.msk.f32.gmra.mxu0 %vm833_vm1, %v820_v23 }
  0x5e   : > { %3338 = vmatmul.msk.f32.gmra.mxu1 %vm833_vm1, %v4062_v18 }
  0x65   : > { %3332 = vmatmul.msk.f32.gmra.mxu0 %vm833_vm1, %v821_v26 }
  0x66   : > { %3339 = vmatmul.msk.f32.gmra.mxu1 %vm833_vm1, %v4068_v21 }
  0x6d   : > { %3333 = vmatmul.msk.f32.gmra.mxu0 %vm833_vm1, %v822_v29 }
  0x6e   : > { %3340 = vmatmul.msk.f32.gmra.mxu1 %vm833_vm1, %v4074_v24 }
  0x75   : > { %3334 = vmatmul.msk.f32.gmra.mxu0 %vm833_vm1, %v823_v32 }
  0x76   : > { %3341 = vmatmul.msk.f32.gmra.mxu1 %vm833_vm1, %v4080_v27 }
  0x7d   : > { %3335 = vmatmul.msk.f32.gmra.mxu0 %vm833_vm1, %v824_v35 }
  0x7e   : > { %3342 = vmatmul.msk.f32.gmra.mxu1 %vm833_vm1, %v4086_v30  ;;  %v3606_v30 = vld [vmem:[%s5262_s27] ss:$0 sm:$0xff] }
  0x86   : > { %3343 = vmatmul.msk.f32.gmra.mxu1 %vm833_vm1, %v4092_v33 }
  0xc2   : > { %v875_v37 = vpop.f32.mrf.mxu0 }
  0xc3   : > { %v4102_v38 = vadd.f32 %v3605_v36, %v875_v37 }
  0xc5   : > { %1004 = vrot.lane.b32.xlu1 %v4102_v38, %s3824_s29  ;;  %980 = vrot.lane.b32.xlu2 %v4102_v38, %s3825_s24 }
  0xca   : > { %v878_v39 = vpop.f32.mrf.mxu0 }
  0xcb   : > { %v4108_v40 = vadd.f32 %v3605_v36, %v878_v39  ;;  %v948_v11 = vpop.f32.mrf.mxu1 }
  0xcd   : > { %1006 = vrot.lane.b32.xlu0 %v4108_v40, %s3824_s29  ;;  %1030 = vrot.lane.b32.xlu1 %v4108_v40, %s3826_s25 }
  0xce   : > { %1028 = vrot.lane.b32.xlu2 %v4102_v38, %s3826_s25 }
  0xd2   : > { %v881_v41 = vpop.f32.mrf.mxu0 }
  0xd3   : > { %v4116_v42 = vadd.f32 %v3605_v36, %v881_v41  ;;  %v951_v15 = vpop.f32.mrf.mxu1 }
  0xd5   : > { %1032 = vrot.lane.b32.xlu0 %v4116_v42, %s3826_s25  ;;  %1168 = vrot.lane.b32.xlu1 %v4116_v42, %s3827_s22 }
  0xd6   : > { %982 = vrot.lane.b32.xlu2 %v4108_v40, %s3825_s24 }
  0xda   : > { %v884_v43 = vpop.f32.mrf.mxu0 }
  0xdb   : > { %v4124_v44 = vadd.f32 %v3605_v36, %v884_v43  ;;  %v954_v19 = vpop.f32.mrf.mxu1  ;;  %v949_v43 = vadd.f32 %v3606_v30, %v948_v11  ;;  %v1052_v11 = vmul.f32 0.35355338, %v4102_v38 }
  0xdc   : > { %v955_v35 = vadd.f32 %v3606_v30, %v954_v19  ;;  %v1053_v19 = vmul.f32 0.35355338, %v4108_v40 }
  0xdd   : > { %1010 = vrot.lane.b32.xlu1 %v4124_v44, %s3824_s29 }
  0xde   : > { %984 = vrot.lane.b32.xlu2 %v4116_v42, %s3825_s24 }
  0xe2   : > { %v887_v45 = vpop.f32.mrf.mxu0 }
  0xe3   : > { %v4130_v46 = vadd.f32 %v3605_v36, %v887_v45  ;;  %v957_v22 = vpop.f32.mrf.mxu1  ;;  %v952_v45 = vadd.f32 %v3606_v30, %v951_v15 }
  0xe5   : > { %1036 = vrot.lane.b32.xlu0 %v4130_v46, %s3826_s25  ;;  %988 = vrot.lane.b32.xlu1 %v4130_v46, %s3825_s24  ;;  %v4311_v49 = vpack.i.bf16 %v949_v43, %v952_v45 }
  0xe6   : > { %1008 = vrot.lane.b32.xlu2 %v4116_v42, %s3824_s29 }
  0xea   : > { %v890_v47 = vpop.f32.mrf.mxu0 }
  0xeb   : > { %v4138_v48 = vadd.f32 %v3605_v36, %v890_v47  ;;  %v960_v27 = vpop.f32.mrf.mxu1 }
  0xec   : > { %v961_v31 = vadd.f32 %v3606_v30, %v960_v27 }
  0xed   : > { %1172 = vrot.lane.b32.xlu0 %v4130_v46, %s3827_s22  ;;  %990 = vrot.lane.b32.xlu1 %v4138_v48, %s3825_s24 }
  0xee   : > { %986 = vrot.lane.b32.xlu2 %v4124_v44, %s3825_s24 }
  0xf2   : > { %v893_v53 = vpop.f32.mrf.mxu0 }
  0xf3   : > { %v4158_v54 = vadd.f32 %v3605_v36, %v893_v53  ;;  %v963_v28 = vpop.f32.mrf.mxu1 }
  0xf4   : > { %v964_v32 = vadd.f32 %v3606_v30, %v963_v28  ;;  %v1056_v28 = vmul.f32 0.35355338, %v4130_v46 }
  0xf5   : > { %1014 = vrot.lane.b32.xlu0 %v4138_v48, %s3824_s29  ;;  %1038 = vrot.lane.b32.xlu1 %v4138_v48, %s3826_s25 }
  0xf6   : > { %1034 = vrot.lane.b32.xlu2 %v4124_v44, %s3826_s25  ;;  %v3550_v33 = vpack.i.bf16 %v961_v31, %v964_v32 }
  0xfa   : > { %v896_v55 = vpop.f32.mrf.mxu0 }
  0xfb   : > { %v4176_v56 = vadd.f32 %v3605_v36, %v896_v55  ;;  %v966_v29 = vpop.f32.mrf.mxu1  ;;  %v958_v36 = vadd.f32 %v3606_v30, %v957_v22  ;;  %v1054_v22 = vmul.f32 0.35355338, %v4116_v42 }
  0xfc   : > { %v967_v37 = vadd.f32 %v3606_v30, %v966_v29 }
  0xfd   : > { %992 = vrot.lane.b32.xlu0 %v4158_v54, %s3825_s24  ;;  %1040 = vrot.lane.b32.xlu1 %v4158_v54, %s3826_s25  ;;  %v3555_v41 = vpack.i.bf16 %v955_v35, %v958_v36 }
  0xfe   : > { %1170 = vrot.lane.b32.xlu2 %v4124_v44, %s3827_s22 }
 0x103   : > { %v969_v34 = vpop.f32.mrf.mxu1 }
 0x104   : > { %v970_v39 = vadd.f32 %v3606_v30, %v969_v34 }
 0x105   : > { %1016 = vrot.lane.b32.xlu0 %v4158_v54, %s3824_s29  ;;  %1176 = vrot.lane.b32.xlu1 %v4158_v54, %s3827_s22 }
 0x106   : > { %1012 = vrot.lane.b32.xlu2 %v4130_v46, %s3824_s29  ;;  %v3545_v47 = vpack.i.bf16 %v967_v37, %v970_v39 }
 0x10d   : > { %994 = vrot.lane.b32.xlu0 %v4176_v56, %s3825_s24  ;;  %1042 = vrot.lane.b32.xlu1 %v4176_v56, %s3826_s25 }
 0x10e   : > { %1174 = vrot.lane.b32.xlu2 %v4138_v48, %s3827_s22 }
 0x115   : > { %1018 = vrot.lane.b32.xlu0 %v4176_v56, %s3824_s29 }
 0x11d   : > { %1178 = vrot.lane.b32.xlu0 %v4176_v56, %s3827_s22 }
 0x11f   : > { %v4192_v57 = vpop.permute.xlu2 %980 }
 0x120   : > { %v1060_v46 = vmul.f32 0.35355338, %v4192_v57 }
 0x128   : > { %v4198_v58 = vpop.permute.xlu2 %1028 }
 0x130   : > { %v4202_v59 = vpop.permute.xlu2 %982 }
 0x137   : > { %v4204_v60 = vpop.permute.xlu1 %1004 }
 0x138   : > { %v4206_v61 = vpop.permute.xlu2 %984 }
 0x139   : > { %1266 = vrot.lane.b32.xlu2 %v4206_v61, %s3827_s22 }
 0x13f   : > { %v4210_v62 = vpop.permute.xlu1 %1030  ;;  %v4214_v0 = vpop.permute.xlu0 %1006 }
 0x140   : > { %v4212_v63 = vpop.permute.xlu2 %1008 }
 0x147   : > { %v1169_v1 = vpop.permute.xlu1 %1168  ;;  %v4220_v3 = vpop.permute.xlu0 %1032 }
 0x148   : > { %v4216_v2 = vpop.permute.xlu2 %986 }
 0x149   : > { %1268 = vrot.lane.b32.xlu0 %v4216_v2, %s3827_s22 }
 0x14f   : > { %v4222_v4 = vpop.permute.xlu1 %1010 }
 0x150   : > { %v4248_v14 = vpop.permute.xlu2 %1034 }
 0x157   : > { %v4224_v5 = vpop.permute.xlu0 %1036  ;;  %v4226_v6 = vpop.permute.xlu1 %988 }
 0x158   : > { %1270 = vrot.lane.b32.xlu1 %v4226_v6, %s3827_s22  ;;  %v1171_v18 = vpop.permute.xlu2 %1170 }
 0x15f   : > { %v1173_v7 = vpop.permute.xlu0 %1172  ;;  %v4230_v8 = vpop.permute.xlu1 %990 }
 0x160   : > { %1272 = vrot.lane.b32.xlu0 %v4230_v8, %s3827_s22  ;;  %v4268_v21 = vpop.permute.xlu2 %1012 }
 0x167   : > { %v4234_v9 = vpop.permute.xlu0 %1014  ;;  %v4244_v12 = vpop.permute.xlu1 %1038 }
 0x168   : > { %1264 = vrot.lane.b32.xlu0 %v4202_v59, %s3827_s22  ;;  %v1175_v25 = vpop.permute.xlu2 %1174 }
 0x16f   : > { %v4238_v10 = vpop.permute.xlu0 %992  ;;  %v4252_v16 = vpop.permute.xlu1 %1040 }
 0x170   : > { %1274 = vrot.lane.b32.xlu2 %v4238_v10, %s3827_s22  ;;  %1164 = vrot.lane.b32.xlu0 %v4102_v38, %s3827_s22 }
 0x177   : > { %v4246_v13 = vpop.permute.xlu0 %1016  ;;  %v1177_v23 = vpop.permute.xlu1 %1176 }
 0x178   : > { %1166 = vrot.lane.b32.xlu2 %v4108_v40, %s3827_s22  ;;  %v1055_v40 = vmul.f32 0.35355338, %v4124_v44 }
 0x17f   : > { %v4254_v17 = vpop.permute.xlu0 %994  ;;  %v4278_v26 = vpop.permute.xlu1 %1042 }
 0x180   : > { %1276 = vrot.lane.b32.xlu1 %v4254_v17, %s3827_s22  ;;  %1468 = vrot.lane.b32.xlu2 %v4252_v16, %s3827_s22 }
 0x187   : > { %v4260_v20 = vpop.permute.xlu0 %1018 }
 0x188   : > { %1371 = vrot.lane.b32.xlu1 %v4246_v13, %s3827_s22  ;;  %1369 = vrot.lane.b32.xlu2 %v4234_v9, %s3827_s22 }
 0x189   : > { %1373 = vrot.lane.b32.xlu0 %v4260_v20, %s3827_s22 }
 0x18f   : > { %v1179_v24 = vpop.permute.xlu0 %1178 }
 0x190   : > { %3344 = vmatpush.xpose.msk.msra.mxu2 %vm1180_vm2, %v1179_v24  ;;  %1262 = vrot.lane.b32.xlu1 %v4192_v57, %s3827_s22 }
 0x191   : > { %1464 = vrot.lane.b32.xlu2 %v4224_v5, %s3827_s22  ;;  %1466 = vrot.lane.b32.xlu0 %v4244_v12, %s3827_s22 }
 0x193   : > { %v1267_v50 = vpop.permute.xlu2 %1266 }
 0x194   : > { %3345 = vmatpush.xpose.msk.msra.mxu2 %vm1180_vm2, %v1177_v23 }
 0x198   : > { %1470 = vrot.lane.b32.xlu1 %v4278_v26, %s3827_s22  ;;  %3346 = vmatpush.xpose.msk.msra.mxu2 %vm1180_vm2, %v1175_v25 }
 0x199   : > { %1363 = vrot.lane.b32.xlu2 %v4212_v63, %s3827_s22  ;;  %1365 = vrot.lane.b32.xlu0 %v4222_v4, %s3827_s22 }
 0x19c   : > { %3347 = vmatpush.xpose.msk.msra.mxu2 %vm1180_vm2, %v1173_v7 }
 0x1a0   : > { %1367 = vrot.lane.b32.xlu1 %v4268_v21, %s3827_s22  ;;  %3348 = vmatpush.xpose.msk.msra.mxu2 %vm1180_vm2, %v1171_v18 }
 0x1a1   : > { %1458 = vrot.lane.b32.xlu2 %v4210_v62, %s3827_s22  ;;  %1460 = vrot.lane.b32.xlu0 %v4220_v3, %s3827_s22 }
 0x1a4   : > { %3349 = vmatpush.xpose.msk.msra.mxu2 %vm1180_vm2, %v1169_v1 }
 0x1a8   : > { %1462 = vrot.lane.b32.xlu1 %v4248_v14, %s3827_s22 }
 0x1a9   : > { %1359 = vrot.lane.b32.xlu0 %v4204_v60, %s3827_s22  ;;  %3561 = vrot.lane.b32.xlu2 %v4311_v49, %s3825_s24 }
 0x1b0   : > { %1361 = vrot.lane.b32.xlu1 %v4214_v0, %s3827_s22 }
 0x1b1   : > { %3551 = vrot.lane.b32.xlu0 %v3550_v33, %s3825_s24  ;;  %3566 = vrot.lane.b32.xlu2 %v3545_v47, %s3824_s29 }
 0x1b8   : > { %1456 = vrot.lane.b32.xlu1 %v4198_v58, %s3827_s22 }
 0x1b9   : > { %3556 = vrot.lane.b32.xlu0 %v3555_v41, %s3825_s24  ;;  %3586 = vrot.lane.b32.xlu2 %v3555_v41, %s3824_s29 }
 0x1bb   : > { %v1269_v51 = vpop.permute.xlu0 %1268 }
 0x1c0   : > { %3546 = vrot.lane.b32.xlu1 %v3545_v47, %s3825_s24  ;;  %s5266_s24 = sld [smem:[#allocation17_spill]] }
 0x1c1   : > { %3596 = vrot.lane.b32.xlu2 %v4311_v49, %s3824_s29  ;;  %3571 = vrot.lane.b32.xlu0 %v3545_v47, %s3826_s25 }
 0x1c8   : > { %3576 = vrot.lane.b32.xlu1 %v3550_v33, %s3824_s29 }
 0x1c9   : > { %3591 = vrot.lane.b32.xlu0 %v3555_v41, %s3826_s25 }
 0x1ca   : > { %v1275_v52 = vpop.permute.xlu2 %1274  ;;  %v1271_v15 = vpop.permute.xlu1 %1270 }
 0x1d0   : > { %3581 = vrot.lane.b32.xlu1 %v3550_v33, %s3826_s25 }
 0x1d2   : > { %v1273_v53 = vpop.permute.xlu0 %1272  ;;  %v1167_v55 = vpop.permute.xlu2 %1166 }
 0x1d3   : > { %3350 = vmatpush.xpose.msk.msra.mxu2 %vm1180_vm2, %v1167_v55 }
 0x1da   : > { %v1265_v1 = vpop.permute.xlu0 %1264  ;;  %v1469_v18 = vpop.permute.xlu2 %1468 }
 0x1e2   : > { %v1165_v7 = vpop.permute.xlu0 %1164  ;;  %v1370_v23 = vpop.permute.xlu2 %1369 }
 0x1e3   : > { %3351 = vmatpush.xpose.msk.msra.mxu2 %vm1180_vm2, %v1165_v7  ;;  %v1077_v7 = vmul.f32 0.35355338, %v4210_v62 }
 0x1e6   : > { %3352 = vmatmul.msk.f32.vlgmr.msra.gmra.mxu2 %vm1180_vm2, %v1052_v11 }
 0x1e7   : > { %1938 = vmatpush.msrb.mxu2 %v970_v39  ;;  %v1062_v39 = vmul.f32 0.35355338, %v4206_v61  ;;  %v1076_v61 = vmul.f32 0.35355338, %v4198_v58 }
 0x1e9   : > { %1939 = vmatpush.msrb.mxu2 %v967_v37 }
 0x1eb   : > { %1940 = vmatpush.msrb.mxu2 %v964_v32  ;;  %v1465_v27 = vpop.permute.xlu2 %1464 }
 0x1ed   : > { %1941 = vmatpush.msrb.mxu2 %v961_v31  ;;  %v1057_v31 = vmul.f32 0.35355338, %v4138_v48  ;;  %v1061_v48 = vmul.f32 0.35355338, %v4202_v59 }
 0x1ee   : > { %3353 = vmatmul.msk.f32.gmra.mxu2 %vm1180_vm2, %v1053_v19 }
 0x1ef   : > { %1942 = vmatpush.msrb.mxu2 %v958_v36 }
 0x1f1   : > { %1943 = vmatpush.msrb.mxu2 %v955_v35  ;;  %v1058_v35 = vmul.f32 0.35355338, %v4158_v54  ;;  %v1059_v54 = vmul.f32 0.35355338, %v4176_v56  ;;  %v1068_v56 = vmul.f32 0.35355338, %v4204_v60 }
 0x1f2   : > { %v1277_v38 = vpop.permute.xlu1 %1276  ;;  %v1064_v60 = vmul.f32 0.35355338, %v4226_v6  ;;  %v1065_v6 = vmul.f32 0.35355338, %v4230_v8 }
 0x1f3   : > { %1944 = vmatpush.msrb.mxu2 %v952_v45  ;;  %3360 = vmatpush.xpose.msk.msra.mxu3 %vm1180_vm2, %v1277_v38  ;;  %v1364_v44 = vpop.permute.xlu2 %1363 }
 0x1f5   : > { %1945 = vmatpush.msrb.mxu2 %v949_v43 }
 0x1f6   : > { %3354 = vmatmul.msk.f32.gmra.mxu2 %vm1180_vm2, %v1054_v22 }
 0x1f7   : > { %3361 = vmatpush.xpose.msk.msra.mxu3 %vm1180_vm2, %v1275_v52 }
 0x1fa   : > { %v1372_v24 = vpop.permute.xlu1 %1371 }
 0x1fb   : > { %v1374_v25 = vpop.permute.xlu0 %1373  ;;  %3362 = vmatpush.xpose.msk.msra.mxu3 %vm1180_vm2, %v1273_v53  ;;  %v1459_v34 = vpop.permute.xlu2 %1458  ;;  %v1069_v53 = vmul.f32 0.35355338, %v4214_v0  ;;  %v1070_v0 = vmul.f32 0.35355338, %v4212_v63 }
 0x1fc   : > { %3376 = vmatpush.xpose.msk.msrb.mxu0 %vm1180_vm2, %v1374_v25 }
 0x1fe   : > { %3355 = vmatmul.msk.f32.gmra.mxu2 %vm1180_vm2, %v1055_v40 }
 0x1ff   : > { %3363 = vmatpush.xpose.msk.msra.mxu3 %vm1180_vm2, %v1271_v15 }
 0x200   : > { %3377 = vmatpush.xpose.msk.msrb.mxu0 %vm1180_vm2, %v1372_v24  ;;  %v1078_v24 = vmul.f32 0.35355338, %v4220_v3 }
 0x202   : > { %v1263_v42 = vpop.permute.xlu1 %1262 }
 0x203   : > { %3364 = vmatpush.xpose.msk.msra.mxu3 %vm1180_vm2, %v1269_v51  ;;  %v1467_v29 = vpop.permute.xlu0 %1466  ;;  %v4363_v37 = vpop.permute.xlu2 %3561 }
 0x204   : > { %3378 = vmatpush.xpose.msk.msrb.mxu0 %vm1180_vm2, %v1370_v23  ;;  %v3563_v63 = vunpack.i.l.bf16 %v4363_v37 }
 0x206   : > { %3356 = vmatmul.msk.f32.gmra.mxu2 %vm1180_vm2, %v1056_v28  ;;  %v1066_v28 = vmul.f32 0.35355338, %v4238_v10  ;;  %v1067_v10 = vmul.f32 0.35355338, %v4254_v17 }
 0x207   : > { %3365 = vmatpush.xpose.msk.msra.mxu3 %vm1180_vm2, %v1267_v50  ;;  %v1063_v50 = vmul.f32 0.35355338, %v4216_v2 }
 0x20a   : > { %v1471_v30 = vpop.permute.xlu1 %1470 }
 0x20b   : > { %3366 = vmatpush.xpose.msk.msra.mxu3 %vm1180_vm2, %v1265_v1  ;;  %3392 = vmatpush.xpose.msk.msrb.mxu1 %vm1180_vm2, %v1471_v30  ;;  %v1366_v32 = vpop.permute.xlu0 %1365  ;;  %v3567_v43 = vpop.permute.xlu2 %3566  ;;  %v1080_v30 = vmul.f32 0.35355338, %v4224_v5 }
 0x20c   : > { %v3568_v45 = vunpack.i.l.bf16 %v3567_v43  ;;  %v3569_v47 = vunpack.i.h.bf16 %v3567_v43 }
 0x20e   : > { %3357 = vmatmul.msk.f32.gmra.mxu2 %vm1180_vm2, %v1057_v31  ;;  %v1073_v31 = vmul.f32 0.35355338, %v4234_v9  ;;  %v1082_v9 = vmul.f32 0.35355338, %v4252_v16 }
 0x20f   : > { %3367 = vmatpush.xpose.msk.msra.mxu3 %vm1180_vm2, %v1263_v42  ;;  %3393 = vmatpush.xpose.msk.msrb.mxu1 %vm1180_vm2, %v1469_v18  ;;  %v1071_v42 = vmul.f32 0.35355338, %v4222_v4  ;;  %v1072_v4 = vmul.f32 0.35355338, %v4268_v21  ;;  %v1074_v21 = vmul.f32 0.35355338, %v4246_v13 }
 0x210   : > { %v1083_v13 = vmul.f32 0.35355338, %v4278_v26 }
 0x212   : > { %v1368_v33 = vpop.permute.xlu1 %1367  ;;  %3368 = vmatmul.msk.f32.vlgmr.msra.gmra.mxu3 %vm1180_vm2, %v1060_v46  ;;  %v1081_v46 = vmul.f32 0.35355338, %v4244_v12  ;;  %v1075_v12 = vmul.f32 0.35355338, %v4260_v20 }
 0x213   : > { %3379 = vmatpush.xpose.msk.msrb.mxu0 %vm1180_vm2, %v1368_v33  ;;  %3394 = vmatpush.xpose.msk.msrb.mxu1 %vm1180_vm2, %v1467_v29  ;;  %v1461_v57 = vpop.permute.xlu0 %1460  ;;  %v3587_v11 = vpop.permute.xlu2 %3586 }
 0x214   : > { %v3588_v25 = vunpack.i.l.bf16 %v3587_v11  ;;  %v3589_v40 = vunpack.i.h.bf16 %v3587_v11 }
 0x216   : > { %3358 = vmatmul.msk.f32.gmra.mxu2 %vm1180_vm2, %v1058_v35 }
 0x217   : > { %3380 = vmatpush.xpose.msk.msrb.mxu0 %vm1180_vm2, %v1366_v32  ;;  %3395 = vmatpush.xpose.msk.msrb.mxu1 %vm1180_vm2, %v1465_v27  ;;  %v3564_v27 = vunpack.i.h.bf16 %v4363_v37 }
 0x21a   : > { %v1463_v36 = vpop.permute.xlu1 %1462  ;;  %3369 = vmatmul.msk.f32.gmra.mxu3 %vm1180_vm2, %v1061_v48 }
 0x21b   : > { %3381 = vmatpush.xpose.msk.msrb.mxu0 %vm1180_vm2, %v1364_v44  ;;  %3396 = vmatpush.xpose.msk.msrb.mxu1 %vm1180_vm2, %v1463_v36  ;;  %v1360_v59 = vpop.permute.xlu0 %1359  ;;  %v3597_v8 = vpop.permute.xlu2 %3596  ;;  %v1079_v44 = vmul.f32 0.35355338, %v4248_v14 }
 0x21c   : > { %v3598_v29 = vunpack.i.l.bf16 %v3597_v8  ;;  %v3599_v3 = vunpack.i.h.bf16 %v3597_v8 }
 0x21e   : > { %3359 = vmatmul.msk.f32.gmra.mxu2 %vm1180_vm2, %v1059_v54 }
 0x21f   : > { %3397 = vmatpush.xpose.msk.msrb.mxu1 %vm1180_vm2, %v1461_v57 }
 0x222   : > { %v1362_v41 = vpop.permute.xlu1 %1361  ;;  %3370 = vmatmul.msk.f32.gmra.mxu3 %vm1180_vm2, %v1062_v39 }
 0x223   : > { %3382 = vmatpush.xpose.msk.msrb.mxu0 %vm1180_vm2, %v1362_v41  ;;  %3398 = vmatpush.xpose.msk.msrb.mxu1 %vm1180_vm2, %v1459_v34  ;;  %v3552_v52 = vpop.permute.xlu0 %3551 }
 0x224   : > { %v3553_v15 = vunpack.i.l.bf16 %v3552_v52  ;;  %v3554_v18 = vunpack.i.h.bf16 %v3552_v52 }
 0x227   : > { %3383 = vmatpush.xpose.msk.msrb.mxu0 %vm1180_vm2, %v1360_v59 }
 0x22a   : > { %v1457_v51 = vpop.permute.xlu1 %1456  ;;  %3371 = vmatmul.msk.f32.gmra.mxu3 %vm1180_vm2, %v1063_v50  ;;  %3384 = vmatmul.msk.f32.vlgmr.msrb.gmra.mxu0 %vm1180_vm2, %v1068_v56 }
 0x22b   : > { %2068 = vmatpush.msra.mxu0 %v3568_v45  ;;  %3399 = vmatpush.xpose.msk.msrb.mxu1 %vm1180_vm2, %v1457_v51  ;;  %v3557_v58 = vpop.permute.xlu0 %3556 }
 0x22c   : > { %v3558_v19 = vunpack.i.l.bf16 %v3557_v58  ;;  %v3559_v23 = vunpack.i.h.bf16 %v3557_v58 }
 0x22d   : > { %2069 = vmatpush.msra.mxu0 %v3569_v47 }
 0x22e   : > { %3400 = vmatmul.msk.f32.vlgmr.msrb.gmra.mxu1 %vm1180_vm2, %v1076_v61 }
 0x232   : > { %3372 = vmatmul.msk.f32.gmra.mxu3 %vm1180_vm2, %v1064_v60  ;;  %3385 = vmatmul.msk.f32.gmra.mxu0 %vm1180_vm2, %v1069_v53  ;;  %v3547_v2 = vpop.permute.xlu1 %3546 }
 0x233   : > { %v3548_v55 = vunpack.i.l.bf16 %v3547_v2  ;;  %v3549_v1 = vunpack.i.h.bf16 %v3547_v2  ;;  %v3572_v14 = vpop.permute.xlu0 %3571 }
 0x234   : > { %v3573_v32 = vunpack.i.l.bf16 %v3572_v14  ;;  %v3574_v33 = vunpack.i.h.bf16 %v3572_v14 }
 0x235   : > { %2003 = vmatpush.msrb.mxu3 %v3548_v55 }
 0x236   : > { %3401 = vmatmul.msk.f32.gmra.mxu1 %vm1180_vm2, %v1077_v7 }
 0x237   : > { %2004 = vmatpush.msrb.mxu3 %v3549_v1  ;;  %2133 = vmatpush.msra.mxu1 %v3573_v32 }
 0x239   : > { %2005 = vmatpush.msrb.mxu3 %v3553_v15  ;;  %2134 = vmatpush.msra.mxu1 %v3574_v33 }
 0x23a   : > { %3373 = vmatmul.msk.f32.gmra.mxu3 %vm1180_vm2, %v1065_v6  ;;  %3386 = vmatmul.msk.f32.gmra.mxu0 %vm1180_vm2, %v1070_v0  ;;  %v3577_v38 = vpop.permute.xlu1 %3576 }
 0x23b   : > { %v3579_v62 = vunpack.i.h.bf16 %v3577_v38  ;;  %v3578_v22 = vunpack.i.l.bf16 %v3577_v38  ;;  %2006 = vmatpush.msrb.mxu3 %v3554_v18  ;;  %v3592_v5 = vpop.permute.xlu0 %3591 }
 0x23c   : > { %v3593_v48 = vunpack.i.l.bf16 %v3592_v5  ;;  %v3594_v57 = vunpack.i.h.bf16 %v3592_v5 }
 0x23d   : > { %2070 = vmatpush.msra.mxu0 %v3578_v22  ;;  %2007 = vmatpush.msrb.mxu3 %v3558_v19 }
 0x23e   : > { %3402 = vmatmul.msk.f32.gmra.mxu1 %vm1180_vm2, %v1078_v24 }
 0x23f   : > { %2071 = vmatpush.msra.mxu0 %v3579_v62  ;;  %2008 = vmatpush.msrb.mxu3 %v3559_v23 }
 0x241   : > { %2072 = vmatpush.msra.mxu0 %v3588_v25  ;;  %2009 = vmatpush.msrb.mxu3 %v3563_v63 }
 0x242   : > { %3374 = vmatmul.msk.f32.gmra.mxu3 %vm1180_vm2, %v1066_v28  ;;  %3387 = vmatmul.msk.f32.gmra.mxu0 %vm1180_vm2, %v1071_v42  ;;  %v3582_v17 = vpop.permute.xlu1 %3581 }
 0x243   : > { %2073 = vmatpush.msra.mxu0 %v3589_v40  ;;  %2010 = vmatpush.msrb.mxu3 %v3564_v27  ;;  %v3583_v34 = vunpack.i.l.bf16 %v3582_v17  ;;  %v3584_v35 = vunpack.i.h.bf16 %v3582_v17 }
 0x245   : > { %2074 = vmatpush.msra.mxu0 %v3598_v29  ;;  %2135 = vmatpush.msra.mxu1 %v3583_v34 }
 0x246   : > { %3403 = vmatmul.msk.f32.gmra.mxu1 %vm1180_vm2, %v1079_v44 }
 0x247   : > { %2075 = vmatpush.msra.mxu0 %v3599_v3  ;;  %2136 = vmatpush.msra.mxu1 %v3584_v35 }
 0x249   : > { %2137 = vmatpush.msra.mxu1 %v3593_v48 }
 0x24a   : > { %3375 = vmatmul.msk.f32.gmra.mxu3 %vm1180_vm2, %v1067_v10  ;;  %3388 = vmatmul.msk.f32.gmra.mxu0 %vm1180_vm2, %v1072_v4 }
 0x24b   : > { %2138 = vmatpush.msra.mxu1 %v3594_v57 }
 0x24e   : > { %3404 = vmatmul.msk.f32.gmra.mxu1 %vm1180_vm2, %v1080_v30 }
 0x252   : > { %3389 = vmatmul.msk.f32.gmra.mxu0 %vm1180_vm2, %v1073_v31 }
 0x256   : > { %3405 = vmatmul.msk.f32.gmra.mxu1 %vm1180_vm2, %v1081_v46 }
 0x25a   : > { %3390 = vmatmul.msk.f32.gmra.mxu0 %vm1180_vm2, %v1074_v21 }
 0x25e   : > { %3406 = vmatmul.msk.f32.gmra.mxu1 %vm1180_vm2, %v1082_v9 }
 0x262   : > { %3391 = vmatmul.msk.f32.gmra.mxu0 %vm1180_vm2, %v1075_v12 }
 0x266   : > { %3407 = vmatmul.msk.f32.gmra.mxu1 %vm1180_vm2, %v1083_v13 }
 0x269   : > { %v4418_v36 = vpop.f32.mrf.mxu2 }
 0x26a   : > { %v1554_v16 = vsel %vm1553_vm3, %v4418_v36, -inf }
 0x26b   : > { %1555 = vmax.xlane.f32.xlu2 %v1554_v16 }
 0x271   : > { %v4422_v37 = vpop.f32.mrf.mxu2 }
 0x272   : > { %v1557_v54 = vsel %vm1553_vm3, %v4422_v37, -inf }
 0x273   : > { %1558 = vmax.xlane.f32.xlu1 %v1557_v54 }
 0x279   : > { %v4426_v20 = vpop.f32.mrf.mxu2 }
 0x27a   : > { %v1560_v26 = vsel %vm1553_vm3, %v4426_v20, -inf }
 0x27b   : > { %1561 = vmax.xlane.f32.xlu0 %v1560_v26 }
 0x281   : > { %v4430_v39 = vpop.f32.mrf.mxu2 }
 0x282   : > { %v1563_v41 = vsel %vm1553_vm3, %v4430_v39, -inf }
 0x283   : > { %1564 = vmax.xlane.f32.xlu1 %v1563_v41 }
 0x289   : > { %v4434_v59 = vpop.f32.mrf.mxu2 }
 0x28a   : > { %v1566_v43 = vsel %vm1553_vm3, %v4434_v59, -inf }
 0x28b   : > { %1567 = vmax.xlane.f32.xlu2 %v1566_v43 }
 0x291   : > { %v4438_v45 = vpop.f32.mrf.mxu2 }
 0x292   : > { %v1569_v47 = vsel %vm1553_vm3, %v4438_v45, -inf }
 0x293   : > { %1570 = vmax.xlane.f32.xlu0 %v1569_v47 }
 0x295   : > { %v4442_v56 = vpop.f32.mrf.mxu3 }
 0x296   : > { %v1578_v51 = vsel %vm1553_vm3, %v4442_v56, -inf }
 0x299   : > { %v4444_v50 = vpop.f32.mrf.mxu2 }
 0x29a   : > { %v1572_v61 = vsel %vm1553_vm3, %v4444_v50, -inf }
 0x29b   : > { %1579 = vmax.xlane.f32.xlu0 %v1578_v51  ;;  %1573 = vmax.xlane.f32.xlu2 %v1572_v61 }
 0x29d   : > { %v4454_v60 = vpop.f32.mrf.mxu3 }
 0x29e   : > { %v1581_v62 = vsel %vm1553_vm3, %v4454_v60, -inf }
 0x2a1   : > { %v4450_v52 = vpop.f32.mrf.mxu2 }
 0x2a2   : > { %v1575_v53 = vsel %vm1553_vm3, %v4450_v52, -inf }
 0x2a3   : > { %1576 = vmax.xlane.f32.xlu2 %v1575_v53 }
 0x2a5   : > { %v4462_v7 = vpop.f32.mrf.mxu3 }
 0x2a6   : > { %v1584_v8 = vsel %vm1553_vm3, %v4462_v7, -inf }
 0x2a7   : > { %v4456_v2 = vpop.f32.mrf.mxu0 }
 0x2a8   : > { %v1602_v55 = vsel %vm1553_vm3, %v4456_v2, -inf }
 0x2ab   : > { %v4460_v1 = vpop.f32.mrf.mxu1  ;;  %1603 = vmax.xlane.f32.xlu2 %v1602_v55 }
 0x2ac   : > { %v1626_v58 = vsel %vm1553_vm3, %v4460_v1, -inf }
 0x2ad   : > { %v4472_v0 = vpop.f32.mrf.mxu3 }
 0x2ae   : > { %v1587_v43 = vsel %vm1553_vm3, %v4472_v0, -inf }
 0x2af   : > { %v4464_v11 = vpop.f32.mrf.mxu0 }
 0x2b0   : > { %v1605_v15 = vsel %vm1553_vm3, %v4464_v11, -inf }
 0x2b1   : > { %1606 = vmax.xlane.f32.xlu0 %v1605_v15 }
 0x2b3   : > { %v4470_v18 = vpop.f32.mrf.mxu1  ;;  %1627 = vmax.xlane.f32.xlu2 %v1626_v58 }
 0x2b4   : > { %v1629_v38 = vsel %vm1553_vm3, %v4470_v18, -inf }
 0x2b5   : > { %v4488_v25 = vpop.f32.mrf.mxu3 }
 0x2b6   : > { %v1590_v28 = vsel %vm1553_vm3, %v4488_v25, -inf }
 0x2b7   : > { %v4474_v6 = vpop.f32.mrf.mxu0 }
 0x2b8   : > { %v1608_v19 = vsel %vm1553_vm3, %v4474_v6, -inf }
 0x2b9   : > { %1609 = vmax.xlane.f32.xlu1 %v1608_v19  ;;  %1630 = vmax.xlane.f32.xlu0 %v1629_v38 }
 0x2bb   : > { %1582 = vmax.xlane.f32.xlu2 %v1581_v62  ;;  %v4482_v22 = vpop.f32.mrf.mxu1 }
 0x2bc   : > { %v1632_v24 = vsel %vm1553_vm3, %v4482_v22, -inf }
 0x2bd   : > { %v4496_v27 = vpop.f32.mrf.mxu3 }
 0x2be   : > { %v1593_v41 = vsel %vm1553_vm3, %v4496_v27, -inf }
 0x2bf   : > { %v4484_v23 = vpop.f32.mrf.mxu0 }
 0x2c0   : > { %v1611_v16 = vsel %vm1553_vm3, %v4484_v23, -inf }
 0x2c1   : > { %1633 = vmax.xlane.f32.xlu1 %v1632_v24 }
 0x2c3   : > { %v4515_v33 = vpop.f32.mrf.mxu1 }
 0x2c5   : > { %v4502_v29 = vpop.f32.mrf.mxu3 }
 0x2c6   : > { %v1596_v44 = vsel %vm1553_vm3, %v4502_v29, -inf }
 0x2c7   : > { %v4490_v63 = vpop.f32.mrf.mxu0 }
 0x2c8   : > { %v1614_v40 = vsel %vm1553_vm3, %v4490_v63, -inf }
 0x2c9   : > { %1585 = vmax.xlane.f32.xlu1 %v1584_v8  ;;  %1615 = vmax.xlane.f32.xlu0 %v1614_v40 }
 0x2cb   : > { %v4527_v12 = vpop.f32.mrf.mxu1 }
 0x2cc   : > { %v1638_v55 = vsel %vm1553_vm3, %v4527_v12, -inf }
 0x2cd   : > { %v4513_v46 = vpop.f32.mrf.mxu3 }
 0x2ce   : > { %v1599_v21 = vsel %vm1553_vm3, %v4513_v46, -inf }
 0x2cf   : > { %v4498_v42 = vpop.f32.mrf.mxu0 }
 0x2d0   : > { %v1617_v8 = vsel %vm1553_vm3, %v4498_v42, -inf }
 0x2d1   : > { %1591 = vmax.xlane.f32.xlu0 %v1590_v28 }
 0x2d3   : > { %v4539_v26 = vpop.f32.mrf.mxu1 }
 0x2d7   : > { %v4504_v3 = vpop.f32.mrf.mxu0 }
 0x2d8   : > { %v1620_v53 = vsel %vm1553_vm3, %v4504_v3, -inf }
 0x2d9   : > { %1597 = vmax.xlane.f32.xlu0 %v1596_v44 }
 0x2db   : > { %v4545_v47 = vpop.f32.mrf.mxu1 }
 0x2de   : > { %v1556_v4 = vpop.xlane.xlu2 %1555 }
 0x2df   : > { %v1650_v10 = vsub.f32 %v4418_v36, %v1556_v4  ;;  %v4509_v30 = vpop.f32.mrf.mxu0 }
 0x2e0   : > { %v1623_v31 = vsel %vm1553_vm3, %v4509_v30, -inf }
 0x2e1   : > { %v1682_v14 = vmul.f32 1.442695, %v1650_v10  ;;  %1624 = vmax.xlane.f32.xlu0 %v1623_v31  ;;  %v1641_v10 = vsel %vm1553_vm3, %v4539_v26, -inf }
 0x2e3   : > { %3614 = vpow2.f32 %v1682_v14  ;;  %v4553_v19 = vpop.f32.mrf.mxu1 }
 0x2e4   : > { %v1647_v24 = vsel %vm1553_vm3, %v4553_v19, -inf }
 0x2e6   : > { %v1559_v32 = vpop.xlane.xlu1 %1558 }
 0x2e7   : > { %v1651_v17 = vsub.f32 %v4422_v37, %v1559_v32 }
 0x2e9   : > { %v4520_v34 = vpop.eup %3614  ;;  %v1684_v35 = vmul.f32 1.442695, %v1651_v17  ;;  %1600 = vmax.xlane.f32.xlu0 %v1599_v21  ;;  %v1644_v21 = vsel %vm1553_vm3, %v4545_v47, -inf }
 0x2ea   : > { %v1746_v5 = vsel %vm1553_vm3, %v4520_v34, 0.0 }
 0x2eb   : > { %3616 = vpow2.f32 %v1684_v35  ;;  %1747 = vadd.xlane.f32.xlu2 %v1746_v5 }
 0x2ee   : > { %v1562_v9 = vpop.xlane.xlu0 %1561 }
 0x2ef   : > { %v1652_v48 = vsub.f32 %v4426_v20, %v1562_v9  ;;  %v1635_v20 = vsel %vm1553_vm3, %v4515_v33, -inf }
 0x2f1   : > { %v4525_v57 = vpop.eup %3616  ;;  %v1686_v13 = vmul.f32 1.442695, %v1652_v48 }
 0x2f2   : > { %v1749_v36 = vsel %vm1553_vm3, %v4525_v57, 0.0 }
 0x2f3   : > { %3618 = vpow2.f32 %v1686_v13  ;;  %1750 = vadd.xlane.f32.xlu1 %v1749_v36  ;;  %1612 = vmax.xlane.f32.xlu2 %v1611_v16 }
 0x2f6   : > { %v1565_v40 = vpop.xlane.xlu1 %1564 }
 0x2f7   : > { %v1653_v4 = vsub.f32 %v4430_v39, %v1565_v40 }
 0x2f9   : > { %v4533_v37 = vpop.eup %3618  ;;  %v1688_v31 = vmul.f32 1.442695, %v1653_v4 }
 0x2fa   : > { %v1752_v54 = vsel %vm1553_vm3, %v4533_v37, 0.0 }
 0x2fb   : > { %1753 = vadd.xlane.f32.xlu1 %v1752_v54  ;;  %1636 = vmax.xlane.f32.xlu2 %v1635_v20 }
 0x2fe   : > { %v1568_v51 = vpop.xlane.xlu2 %1567 }
 0x2ff   : > { %v1654_v48 = vsub.f32 %v4434_v59, %v1568_v51 }
 0x303   : > { %1594 = vmax.xlane.f32.xlu1 %v1593_v41  ;;  %1588 = vmax.xlane.f32.xlu2 %v1587_v43  ;;  %v1690_v41 = vmul.f32 1.442695, %v1654_v48 }
 0x306   : > { %v1571_v61 = vpop.xlane.xlu0 %1570 }
 0x307   : > { %v1655_v59 = vsub.f32 %v4438_v45, %v1571_v61 }
 0x30b   : > { %1621 = vmax.xlane.f32.xlu1 %v1620_v53  ;;  %1639 = vmax.xlane.f32.xlu2 %v1638_v55  ;;  %v1692_v55 = vmul.f32 1.442695, %v1655_v59 }
 0x30e   : > { %v1580_v15 = vpop.xlane.xlu0 %1579  ;;  %v4551_v58 = vpop.xlane.xlu2 %1573 }
 0x30f   : > { %v1658_v38 = vsub.f32 %v4442_v56, %v1580_v15 }
 0x311   : > { %v1698_v62 = vmul.f32 1.442695, %v1658_v38 }
 0x313   : > { %3620 = vpow2.f32 %v1698_v62  ;;  %1648 = vmax.xlane.f32.xlu1 %v1647_v24  ;;  %1618 = vmax.xlane.f32.xlu2 %v1617_v8 }
 0x314   : > { %3622 = vpow2.f32 %v1688_v31 }
 0x316   : > { %v4560_v28 = vpop.xlane.xlu2 %1576 }
 0x319   : > { %v4562_v44 = vpop.eup %3620 }
 0x31a   : > { %v1770_v56 = vsel %vm1553_vm3, %v4562_v44, 0.0  ;;  %v4573_v9 = vpop.eup %3622 }
 0x31b   : > { %1771 = vadd.xlane.f32.xlu1 %v1770_v56  ;;  %1642 = vmax.xlane.f32.xlu2 %v1641_v10  ;;  %v1755_v54 = vsel %vm1553_vm3, %v4573_v9, 0.0 }
 0x31e   : > { %v1604_v14 = vpop.xlane.xlu2 %1603 }
 0x31f   : > { %v1666_v32 = vsub.f32 %v4456_v2, %v1604_v14 }
 0x321   : > { %v1714_v17 = vmul.f32 1.442695, %v1666_v32 }
 0x323   : > { %3624 = vpow2.f32 %v1714_v17  ;;  %1645 = vmax.xlane.f32.xlu2 %v1644_v21 }
 0x324   : > { %v1607_v39 = vpop.xlane.xlu0 %1606 }
 0x325   : > { %v1667_v35 = vsub.f32 %v4464_v11, %v1607_v39 }
 0x326   : > { %v1628_v5 = vpop.xlane.xlu2 %1627 }
 0x327   : > { %v1716_v13 = vmul.f32 1.442695, %v1667_v35  ;;  %v1674_v36 = vsub.f32 %v4460_v1, %v1628_v5 }
 0x329   : > { %v4577_v16 = vpop.eup %3624  ;;  %3626 = vpow2.f32 %v1716_v13  ;;  %v1730_v2 = vmul.f32 1.442695, %v1674_v36 }
 0x32a   : > { %v1794_v20 = vsel %vm1553_vm3, %v4577_v16, 0.0 }
 0x32b   : > { %3628 = vpow2.f32 %v1730_v2  ;;  %1756 = vadd.xlane.f32.xlu2 %v1755_v54  ;;  %1795 = vadd.xlane.f32.xlu0 %v1794_v20 }
 0x32c   : > { %v1610_v11 = vpop.xlane.xlu1 %1609  ;;  %3630 = vpow2.f32 %v1690_v41  ;;  %v1631_v35 = vpop.xlane.xlu0 %1630 }
 0x32d   : > { %3632 = vpow2.f32 %v1692_v55  ;;  %v1668_v56 = vsub.f32 %v4474_v6, %v1610_v11  ;;  %v1656_v55 = vsub.f32 %v4444_v50, %v4551_v58 }
 0x32e   : > { %v1583_v15 = vpop.xlane.xlu2 %1582 }
 0x32f   : > { %v4583_v43 = vpop.eup %3626  ;;  %v1659_v24 = vsub.f32 %v4454_v60, %v1583_v15  ;;  %v1718_v31 = vmul.f32 1.442695, %v1668_v56 }
 0x330   : > { %v1797_v1 = vsel %vm1553_vm3, %v4583_v43, 0.0 }
 0x331   : > { %v4588_v51 = vpop.eup %3628  ;;  %1798 = vadd.xlane.f32.xlu1 %v1797_v1  ;;  %v1700_v61 = vmul.f32 1.442695, %v1659_v24  ;;  %v1694_v24 = vmul.f32 1.442695, %v1656_v55 }
 0x332   : > { %v1818_v53 = vsel %vm1553_vm3, %v4588_v51, 0.0  ;;  %v4592_v62 = vpop.eup %3630 }
 0x333   : > { %1819 = vadd.xlane.f32.xlu2 %v1818_v53  ;;  %v1758_v45 = vsel %vm1553_vm3, %v4592_v62, 0.0  ;;  %v4597_v40 = vpop.eup %3632  ;;  %3634 = vpow2.f32 %v1700_v61 }
 0x334   : > { %v1634_v38 = vpop.xlane.xlu1 %1633  ;;  %v1761_v60 = vsel %vm1553_vm3, %v4597_v40, 0.0 }
 0x339   : > { %1759 = vadd.xlane.f32.xlu1 %v1758_v45  ;;  %v4605_v14 = vpop.eup %3634 }
 0x33a   : > { %v1773_v17 = vsel %vm1553_vm3, %v4605_v14, 0.0 }
 0x33c   : > { %v1586_v8 = vpop.xlane.xlu1 %1585  ;;  %v4623_v13 = vpop.xlane.xlu0 %1615 }
 0x33d   : > { %v1660_v4 = vsub.f32 %v4462_v7, %v1586_v8  ;;  %v1676_v7 = vsub.f32 %v4482_v22, %v1634_v38  ;;  %v1675_v22 = vsub.f32 %v4470_v18, %v1631_v35 }
 0x33f   : > { %v1702_v10 = vmul.f32 1.442695, %v1660_v4  ;;  %3601 = vrot.lane.b32.xlu0 %v4311_v49, %s3826_s25  ;;  %v1734_v49 = vmul.f32 1.442695, %v1676_v7  ;;  %v1732_v36 = vmul.f32 1.442695, %v1675_v22  ;;  %s5267_s25 = scalar_lea.vmem %s5266_s24, %s3948_s28 }
 0x341   : > { %3636 = vpow2.f32 %v1702_v10  ;;  %1762 = vadd.xlane.f32.xlu1 %v1761_v60 }
 0x342   : > { %3638 = vpow2.f32 %v1718_v31 }
 0x343   : > { %3640 = vpow2.f32 %v1734_v49  ;;  %v1657_v49 = vsub.f32 %v4450_v52, %v4560_v28 }
 0x344   : > { %3642 = vpow2.f32 %v1732_v36  ;;  %v1592_v54 = vpop.xlane.xlu0 %1591 }
 0x345   : > { %v1662_v22 = vsub.f32 %v4488_v25, %v1592_v54 }
 0x347   : > { %v4607_v32 = vpop.eup %3636 }
 0x348   : > { %v1776_v6 = vsel %vm1553_vm3, %v4607_v32, 0.0  ;;  %v4614_v21 = vpop.eup %3638 }
 0x349   : > { %1777 = vadd.xlane.f32.xlu2 %v1776_v6  ;;  %1774 = vadd.xlane.f32.xlu1 %v1773_v17  ;;  %v1800_v39 = vsel %vm1553_vm3, %v4614_v21, 0.0  ;;  %v4618_v5 = vpop.eup %3640 }
 0x34a   : > { %v1824_v48 = vsel %vm1553_vm3, %v4618_v5, 0.0  ;;  %v4625_v20 = vpop.eup %3642 }
 0x34b   : > { %v1821_v53 = vsel %vm1553_vm3, %v4625_v20, 0.0 }
 0x34c   : > { %v1598_v45 = vpop.xlane.xlu0 %1597 }
 0x34d   : > { %v1664_v50 = vsub.f32 %v4502_v29, %v1598_v45 }
 0x34f   : > { %v1710_v60 = vmul.f32 1.442695, %v1664_v50 }
 0x351   : > { %1801 = vadd.xlane.f32.xlu1 %v1800_v39 }
 0x359   : > { %1825 = vadd.xlane.f32.xlu1 %v1824_v48  ;;  %v1706_v48 = vmul.f32 1.442695, %v1662_v22 }
 0x35e   : > { %v1748_v2 = vpop.xlane.xlu2 %1747 }
 0x35f   : > { %3644 = vrcp.f32 %v1748_v2 }
 0x365   : > { %v3645_v41 = vpop.eup %3644 }
 0x366   : > { %v1751_v11 = vpop.xlane.xlu1 %1750  ;;  %v1613_v59 = vpop.xlane.xlu2 %1612  ;;  %v1874_v1 = vmul.f32 %v3645_v41, %v4520_v34  ;;  %v1670_v41 = vsub.f32 %v4490_v63, %v4623_v13 }
 0x367   : > { %3646 = vrcp.f32 %v1751_v11  ;;  %v1669_v18 = vsub.f32 %v4484_v23, %v1613_v59 }
 0x368   : > { %3408 = vmatmul.msk.f32.vlgmr.msrb.gmra.mxu2 %vm1553_vm3, %v1874_v1 }
 0x369   : > { %v1720_v15 = vmul.f32 1.442695, %v1669_v18  ;;  %1822 = vadd.xlane.f32.xlu0 %v1821_v53  ;;  %v1625_v18 = vpop.xlane.xlu0 %1624  ;;  %v1722_v53 = vmul.f32 1.442695, %v1670_v41 }
 0x36b   : > { %3648 = vpow2.f32 %v1720_v15 }
 0x36d   : > { %v3647_v38 = vpop.eup %3646 }
 0x36e   : > { %v1754_v61 = vpop.xlane.xlu1 %1753  ;;  %v1637_v8 = vpop.xlane.xlu2 %1636  ;;  %v1875_v34 = vmul.f32 %v3647_v38, %v4525_v57 }
 0x36f   : > { %3650 = vrcp.f32 %v1754_v61  ;;  %v1677_v23 = vsub.f32 %v4515_v33, %v1637_v8 }
 0x370   : > { %3409 = vmatmul.msk.f32.gmra.mxu2 %vm1553_vm3, %v1875_v34  ;;  %3652 = vpow2.f32 %v1694_v24 }
 0x371   : > { %v4637_v4 = vpop.eup %3648  ;;  %v1736_v58 = vmul.f32 1.442695, %v1677_v23 }
 0x372   : > { %v1803_v56 = vsel %vm1553_vm3, %v4637_v4, 0.0 }
 0x373   : > { %3654 = vpow2.f32 %v1736_v58  ;;  %1804 = vadd.xlane.f32.xlu2 %v1803_v56 }
 0x374   : > { %3656 = vpow2.f32 %v1710_v60  ;;  %v1673_v60 = vsub.f32 %v4509_v30, %v1625_v18 }
 0x375   : > { %v3651_v10 = vpop.eup %3650 }
 0x376   : > { %v1595_v31 = vpop.xlane.xlu1 %1594  ;;  %v1589_v57 = vpop.xlane.xlu2 %1588  ;;  %v1876_v7 = vmul.f32 %v3651_v10, %v4533_v37 }
 0x377   : > { %v4643_v33 = vpop.eup %3652  ;;  %v1663_v6 = vsub.f32 %v4496_v27, %v1595_v31  ;;  %v1661_v17 = vsub.f32 %v4472_v0, %v1589_v57  ;;  %v1696_v0 = vmul.f32 1.442695, %v1657_v49  ;;  %v1728_v49 = vmul.f32 1.442695, %v1673_v60 }
 0x378   : > { %3410 = vmatmul.msk.f32.gmra.mxu2 %vm1553_vm3, %v1876_v7  ;;  %v1764_v37 = vsel %vm1553_vm3, %v4643_v33, 0.0 }
 0x379   : > { %v4648_v29 = vpop.eup %3654  ;;  %v1708_v39 = vmul.f32 1.442695, %v1663_v6  ;;  %v1704_v35 = vmul.f32 1.442695, %v1661_v17 }
 0x37a   : > { %v1827_v27 = vsel %vm1553_vm3, %v4648_v29, 0.0  ;;  %v4657_v52 = vpop.eup %3656 }
 0x37b   : > { %3658 = vpow2.f32 %v1708_v39  ;;  %1765 = vadd.xlane.f32.xlu2 %v1764_v37  ;;  %1828 = vadd.xlane.f32.xlu0 %v1827_v27  ;;  %v1788_v59 = vsel %vm1553_vm3, %v4657_v52, 0.0 }
 0x37c   : > { %3660 = vpow2.f32 %v1704_v35 }
 0x37d   : > { %3662 = vpow2.f32 %v1696_v0 }
 0x37e   : > { %v1622_v36 = vpop.xlane.xlu1 %1621  ;;  %v1640_v2 = vpop.xlane.xlu2 %1639  ;;  %3664 = vpow2.f32 %v1706_v48 }
 0x37f   : > { %v1672_v25 = vsub.f32 %v4504_v3, %v1622_v36  ;;  %v1678_v61 = vsub.f32 %v4527_v12, %v1640_v2 }
 0x381   : > { %v4659_v28 = vpop.eup %3658  ;;  %v1726_v3 = vmul.f32 1.442695, %v1672_v25 }
 0x382   : > { %v4662_v54 = vpop.eup %3660  ;;  %v1785_v11 = vsel %vm1553_vm3, %v4659_v28, 0.0 }
 0x383   : > { %1786 = vadd.xlane.f32.xlu2 %v1785_v11  ;;  %1789 = vadd.xlane.f32.xlu0 %v1788_v59  ;;  %v1779_v1 = vsel %vm1553_vm3, %v4662_v54, 0.0  ;;  %v4672_v38 = vpop.eup %3662  ;;  %3666 = vpow2.f32 %v1726_v3 }
 0x384   : > { %1780 = vadd.xlane.f32.xlu1 %v1779_v1  ;;  %v4675_v13 = vpop.eup %3664  ;;  %3668 = vpow2.f32 %v1722_v53  ;;  %v1767_v8 = vsel %vm1553_vm3, %v4672_v38, 0.0 }
 0x385   : > { %v1782_v34 = vsel %vm1553_vm3, %v4675_v13, 0.0 }
 0x386   : > { %v1649_v55 = vpop.xlane.xlu1 %1648  ;;  %v1619_v15 = vpop.xlane.xlu2 %1618 }
 0x387   : > { %v1671_v63 = vsub.f32 %v4498_v42, %v1619_v15  ;;  %v1681_v24 = vsub.f32 %v4553_v19, %v1649_v55  ;;  %v1738_v42 = vmul.f32 1.442695, %v1678_v61  ;;  %v1601_v19 = vpop.xlane.xlu0 %1600 }
 0x388   : > { %v1665_v7 = vsub.f32 %v4513_v46, %v1601_v19 }
 0x389   : > { %v1724_v45 = vmul.f32 1.442695, %v1671_v63  ;;  %v1744_v23 = vmul.f32 1.442695, %v1681_v24  ;;  %v4683_v56 = vpop.eup %3666 }
 0x38a   : > { %v4686_v12 = vpop.eup %3668  ;;  %v1812_v6 = vsel %vm1553_vm3, %v4683_v56, 0.0  ;;  %v1712_v39 = vmul.f32 1.442695, %v1665_v7 }
 0x38b   : > { %1768 = vadd.xlane.f32.xlu0 %v1767_v8  ;;  %3670 = vpow2.f32 %v1724_v45  ;;  %v1806_v17 = vsel %vm1553_vm3, %v4686_v12, 0.0 }
 0x38c   : > { %1783 = vadd.xlane.f32.xlu1 %v1782_v34 }
 0x38e   : > { %v1772_v50 = vpop.xlane.xlu1 %1771  ;;  %v1643_v58 = vpop.xlane.xlu2 %1642 }
 0x38f   : > { %3672 = vrcp.f32 %v1772_v50  ;;  %v1679_v10 = vsub.f32 %v4539_v26, %v1643_v58 }
 0x390   : > { %3674 = vpow2.f32 %v1744_v23 }
 0x391   : > { %v1740_v31 = vmul.f32 1.442695, %v1679_v10  ;;  %v4689_v57 = vpop.eup %3670  ;;  %3676 = vpow2.f32 %v1738_v42 }
 0x392   : > { %v1809_v26 = vsel %vm1553_vm3, %v4689_v57, 0.0 }
 0x393   : > { %3678 = vpow2.f32 %v1740_v31  ;;  %1813 = vadd.xlane.f32.xlu0 %v1812_v6  ;;  %1810 = vadd.xlane.f32.xlu2 %v1809_v26 }
 0x394   : > { %1807 = vadd.xlane.f32.xlu1 %v1806_v17  ;;  %3680 = vpow2.f32 %v1728_v49  ;;  %v2166_v49 = vld [vmem:[%s3982_s15] sm:$0xff] }
 0x395   : > { %v3673_v30 = vpop.eup %3672  ;;  %3682 = vpow2.f32 %v1712_v39  ;;  %v2167_v39 = vld [vmem:[%s3982_s15 + $0x8] sm:$0xff]  ;;  %2209 = vmatpush.msrb.mxu0 %v2166_v49  ;;  %3498 = vmatpush.msra.mxu2 %v2166_v49 }
 0x396   : > { %v1646_v35 = vpop.xlane.xlu2 %1645  ;;  %v1882_v46 = vmul.f32 %v3673_v30, %v4562_v44  ;;  %v4699_v22 = vpop.eup %3674  ;;  %3499 = vmatpush.msra.mxu3 %v2167_v39 }
 0x397   : > { %v4701_v37 = vpop.eup %3676  ;;  %v1680_v0 = vsub.f32 %v4545_v47, %v1646_v35  ;;  %v1839_v48 = vsel %vm1553_vm3, %v4699_v22, 0.0 }
 0x398   : > { %3416 = vmatmul.msk.f32.vlgmr.msrb.gmra.mxu3 %vm1553_vm3, %v1882_v46  ;;  %v1830_v44 = vsel %vm1553_vm3, %v4701_v37, 0.0 }
 0x399   : > { %v4704_v27 = vpop.eup %3678  ;;  %v1742_v2 = vmul.f32 1.442695, %v1680_v0 }
 0x39a   : > { %v1833_v36 = vsel %vm1553_vm3, %v4704_v27, 0.0  ;;  %v4713_v11 = vpop.eup %3680 }
 0x39b   : > { %1840 = vadd.xlane.f32.xlu0 %v1839_v48  ;;  %1834 = vadd.xlane.f32.xlu2 %v1833_v36  ;;  %v4715_v59 = vpop.eup %3682  ;;  %v1815_v1 = vsel %vm1553_vm3, %v4713_v11, 0.0 }
 0x39c   : > { %1831 = vadd.xlane.f32.xlu1 %v1830_v44  ;;  %v1791_v47 = vsel %vm1553_vm3, %v4715_v59, 0.0 }
 0x39e   : > { %v1796_v25 = vpop.xlane.xlu0 %1795  ;;  %v1757_v41 = vpop.xlane.xlu2 %1756 }
 0x39f   : > { %3684 = vrcp.f32 %v1796_v25 }
 0x3a0   : > { %3686 = vrcp.f32 %v1757_v41 }
 0x3a1   : > { %3688 = vpow2.f32 %v1742_v2 }
 0x3a3   : > { %1816 = vadd.xlane.f32.xlu2 %v1815_v1 }
 0x3a4   : > { %1792 = vadd.xlane.f32.xlu1 %v1791_v47  ;;  %v1799_v18 = vpop.xlane.xlu1 %1798 }
 0x3a5   : > { %v3685_v3 = vpop.eup %3684  ;;  %3690 = vrcp.f32 %v1799_v18 }
 0x3a6   : > { %v3687_v53 = vpop.eup %3686  ;;  %v1890_v55 = vmul.f32 %v3685_v3, %v4577_v16  ;;  %v1820_v24 = vpop.xlane.xlu2 %1819 }
 0x3a7   : > { %v1877_v15 = vmul.f32 %v3687_v53, %v4573_v9  ;;  %v4723_v63 = vpop.eup %3688  ;;  %3692 = vrcp.f32 %v1820_v24 }
 0x3a8   : > { %3424 = vmatmul.msk.f32.vlgmr.msra.gmra.mxu0 %vm1553_vm3, %v1890_v55  ;;  %v1836_v61 = vsel %vm1553_vm3, %v4723_v63, 0.0 }
 0x3a9   : > { %3411 = vmatmul.msk.f32.gmra.mxu2 %vm1553_vm3, %v1877_v15 }
 0x3ab   : > { %v3691_v45 = vpop.eup %3690 }
 0x3ac   : > { %1837 = vadd.xlane.f32.xlu1 %v1836_v61  ;;  %v1760_v8 = vpop.xlane.xlu1 %1759  ;;  %v1891_v34 = vmul.f32 %v3691_v45, %v4583_v43 }
 0x3ad   : > { %3694 = vrcp.f32 %v1760_v8  ;;  %v3693_v16 = vpop.eup %3692 }
 0x3ae   : > { %v1898_v10 = vmul.f32 %v3693_v16, %v4588_v51 }
 0x3b0   : > { %3425 = vmatmul.msk.f32.gmra.mxu0 %vm1553_vm3, %v1891_v34 }
 0x3b1   : > { %v3602_v9 = vpop.permute.xlu0 %3601 }
 0x3b2   : > { %v3603_v23 = vunpack.i.l.bf16 %v3602_v9  ;;  %v3604_v50 = vunpack.i.h.bf16 %v3602_v9 }
 0x3b3   : > { %v3695_v42 = vpop.eup %3694 }
 0x3b4   : > { %v1763_v58 = vpop.xlane.xlu1 %1762  ;;  %2139 = vmatpush.msra.mxu1 %v3603_v23  ;;  %v1878_v19 = vmul.f32 %v3695_v42, %v4592_v62 }
 0x3b5   : > { %3696 = vrcp.f32 %v1763_v58 }
 0x3b6   : > { %3412 = vmatmul.msk.f32.gmra.mxu2 %vm1553_vm3, %v1878_v19  ;;  %2140 = vmatpush.msra.mxu1 %v3604_v50 }
 0x3b7   : > { %3432 = vmatmul.msk.f32.vlgmr.msra.gmra.mxu1 %vm1553_vm3, %v1898_v10  ;;  %v2168_v10 = vld [vmem:[%s3982_s15 + $0x10] sm:$0xff] }
 0x3b8   : > { %2274 = vmatpush.msrb.mxu1 %v2167_v39  ;;  %2339 = vmatpush.msra.mxu0 %v2168_v10 }
 0x3bb   : > { %v3697_v43 = vpop.eup %3696 }
 0x3bc   : > { %v1775_v60 = vpop.xlane.xlu1 %1774  ;;  %v1879_v31 = vmul.f32 %v3697_v43, %v4597_v40  ;;  %v1778_v7 = vpop.xlane.xlu2 %1777 }
 0x3bd   : > { %3698 = vrcp.f32 %v1775_v60 }
 0x3be   : > { %3413 = vmatmul.msk.f32.gmra.mxu2 %vm1553_vm3, %v1879_v31  ;;  %3700 = vrcp.f32 %v1778_v7 }
 0x3c3   : > { %v3699_v6 = vpop.eup %3698 }
 0x3c4   : > { %v1802_v62 = vpop.xlane.xlu1 %1801  ;;  %v1883_v51 = vmul.f32 %v3699_v6, %v4605_v14  ;;  %v3701_v17 = vpop.eup %3700  ;;  %v2169_v6 = vld [vmem:[%s3982_s15 + $0x18] sm:$0xff] }
 0x3c5   : > { %3702 = vrcp.f32 %v1802_v62  ;;  %v1884_v30 = vmul.f32 %v3701_v17, %v4607_v32  ;;  %2404 = vmatpush.msra.mxu1 %v2169_v6 }
 0x3c6   : > { %3417 = vmatmul.msk.f32.gmra.mxu3 %vm1553_vm3, %v1883_v51 }
 0x3cb   : > { %v3703_v26 = vpop.eup %3702 }
 0x3cc   : > { %v1892_v40 = vmul.f32 %v3703_v26, %v4614_v21  ;;  %v1826_v14 = vpop.xlane.xlu1 %1825 }
 0x3ce   : > { %3418 = vmatmul.msk.f32.gmra.mxu3 %vm1553_vm3, %v1884_v30  ;;  %3426 = vmatmul.msk.f32.gmra.mxu0 %vm1553_vm3, %v1892_v40 }
 0x3dc   : > { %v1823_v35 = vpop.xlane.xlu0 %1822 }
 0x3dd   : > { %3704 = vrcp.f32 %v1823_v35 }
 0x3de   : > { %3706 = vrcp.f32 %v1826_v14 }
 0x3e3   : > { %v3705_v46 = vpop.eup %3704 }
 0x3e4   : > { %v1899_v0 = vmul.f32 %v3705_v46, %v4625_v20  ;;  %v3707_v21 = vpop.eup %3706 }
 0x3e5   : > { %v1900_v48 = vmul.f32 %v3707_v21, %v4618_v5 }
 0x3e6   : > { %3433 = vmatmul.msk.f32.gmra.mxu1 %vm1553_vm3, %v1899_v0  ;;  %v1805_v32 = vpop.xlane.xlu2 %1804 }
 0x3e7   : > { %3708 = vrcp.f32 %v1805_v32 }
 0x3eb   : > { %v4757_v24 = vpop.f32.mrf.mxu2 }
 0x3ed   : > { %v3709_v36 = vpop.eup %3708 }
 0x3ee   : > { %v1829_v44 = vpop.xlane.xlu0 %1828  ;;  %3434 = vmatmul.msk.f32.gmra.mxu1 %vm1553_vm3, %v1900_v48  ;;  %v1766_v2 = vpop.xlane.xlu2 %1765  ;;  %v1893_v25 = vmul.f32 %v3709_v36, %v4637_v4 }
 0x3ef   : > { %3710 = vrcp.f32 %v1829_v44 }
 0x3f0   : > { %3712 = vrcp.f32 %v1766_v2  ;;  %3427 = vmatmul.msk.f32.gmra.mxu0 %vm1553_vm3, %v1893_v25 }
 0x3f3   : > { %v1950_v9 = vpop.f32.mrf.mxu2 }
 0x3f5   : > { %v3711_v41 = vpop.eup %3710 }
 0x3f6   : > { %v3713_v20 = vpop.eup %3712  ;;  %v1790_v47 = vpop.xlane.xlu0 %1789  ;;  %v1901_v1 = vmul.f32 %v3711_v41, %v4648_v29 }
 0x3f7   : > { %v1781_v18 = vpop.xlane.xlu1 %1780  ;;  %v1880_v3 = vmul.f32 %v3713_v20, %v4643_v33  ;;  %v1787_v4 = vpop.xlane.xlu2 %1786 }
 0x3f8   : > { %3714 = vrcp.f32 %v1781_v18  ;;  %3435 = vmatmul.msk.f32.gmra.mxu1 %vm1553_vm3, %v1901_v1 }
 0x3f9   : > { %3414 = vmatmul.msk.f32.gmra.mxu2 %vm1553_vm3, %v1880_v3 }
 0x3fb   : > { %v1953_v60 = vpop.f32.mrf.mxu2 }
 0x3fe   : > { %v3715_v5 = vpop.eup %3714  ;;  %v1769_v53 = vpop.xlane.xlu0 %1768 }
 0x3ff   : > { %3716 = vrcp.f32 %v1769_v53  ;;  %v1784_v55 = vpop.xlane.xlu1 %1783  ;;  %v1885_v15 = vmul.f32 %v3715_v5, %v4662_v54 }
 0x400   : > { %3718 = vrcp.f32 %v1784_v55 }
 0x401   : > { %3419 = vmatmul.msk.f32.gmra.mxu3 %vm1553_vm3, %v1885_v15  ;;  %3720 = vrcp.f32 %v1787_v4 }
 0x405   : > { %v3717_v29 = vpop.eup %3716 }
 0x406   : > { %v3719_v45 = vpop.eup %3718  ;;  %v1881_v33 = vmul.f32 %v3717_v29, %v4672_v38  ;;  %v1811_v8 = vpop.xlane.xlu2 %1810 }
 0x407   : > { %v1808_v61 = vpop.xlane.xlu1 %1807  ;;  %v1886_v34 = vmul.f32 %v3719_v45, %v4675_v13  ;;  %v3721_v54 = vpop.eup %3720 }
 0x408   : > { %3722 = vrcp.f32 %v1808_v61  ;;  %3415 = vmatmul.msk.f32.gmra.mxu2 %vm1553_vm3, %v1881_v33  ;;  %v1887_v42 = vmul.f32 %v3721_v54, %v4659_v28  ;;  %v1814_v58 = vpop.xlane.xlu0 %1813 }
 0x409   : > { %3420 = vmatmul.msk.f32.gmra.mxu3 %vm1553_vm3, %v1886_v34  ;;  %3724 = vrcp.f32 %v1790_v47 }
 0x40a   : > { %3726 = vrcp.f32 %v1811_v8 }
 0x40e   : > { %v3723_v16 = vpop.eup %3722  ;;  %v1835_v13 = vpop.xlane.xlu2 %1834 }
 0x40f   : > { %v1832_v23 = vpop.xlane.xlu1 %1831  ;;  %v1894_v38 = vmul.f32 %v3723_v16, %v4686_v12  ;;  %v3725_v50 = vpop.eup %3724 }
 0x410   : > { %3728 = vrcp.f32 %v1832_v23  ;;  %3441 = vmatmul.msk.f32.vlgmr.msra.gmra.mxu2 %vm1180_vm2, %v1950_v9  ;;  %v3727_v19 = vpop.eup %3726  ;;  %v1888_v12 = vmul.f32 %v3725_v50, %v4657_v52  ;;  %v1841_v49 = vpop.xlane.xlu0 %1840  ;;  %v4828_v50 = vld [vmem:[%s5263_s23] ss:$0 sm:$0xff] }
 0x411   : > { %3421 = vmatmul.msk.f32.gmra.mxu3 %vm1553_vm3, %v1887_v42  ;;  %3428 = vmatmul.msk.f32.gmra.mxu0 %vm1553_vm3, %v1894_v38  ;;  %3730 = vrcp.f32 %v1814_v58  ;;  %v1895_v31 = vmul.f32 %v3727_v19, %v4689_v57 }
 0x412   : > { %3732 = vrcp.f32 %v1835_v13 }
 0x416   : > { %v3729_v43 = vpop.eup %3728  ;;  %v1817_v62 = vpop.xlane.xlu2 %1816 }
 0x417   : > { %v1793_v28 = vpop.xlane.xlu1 %1792  ;;  %v1902_v7 = vmul.f32 %v3729_v43, %v4701_v37  ;;  %v3731_v51 = vpop.eup %3730  ;;  %v3776_v43 = vld [vmem:[%s4026_s11] sm:$0xff] }
 0x418   : > { %3734 = vrcp.f32 %v1793_v28  ;;  %3442 = vmatmul.msk.f32.gmra.mxu2 %vm1180_vm2, %v1953_v60  ;;  %v3733_v17 = vpop.eup %3732  ;;  %v1896_v37 = vmul.f32 %v3731_v51, %v4683_v56 }
 0x419   : > { %3422 = vmatmul.msk.f32.gmra.mxu3 %vm1553_vm3, %v1888_v12  ;;  %3429 = vmatmul.msk.f32.gmra.mxu0 %vm1553_vm3, %v1895_v31  ;;  %3736 = vrcp.f32 %v1817_v62  ;;  %v1903_v30 = vmul.f32 %v3733_v17, %v4704_v27 }
 0x41a   : > { %3436 = vmatmul.msk.f32.gmra.mxu1 %vm1553_vm3, %v1902_v7 }
 0x41b   : > { %v2012_v0 = vpop.f32.mrf.mxu3 }
 0x41e   : > { %v3735_v26 = vpop.eup %3734 }
 0x41f   : > { %v1838_v52 = vpop.xlane.xlu1 %1837  ;;  %v1889_v57 = vmul.f32 %v3735_v26, %v4715_v59  ;;  %v3737_v40 = vpop.eup %3736 }
 0x420   : > { %3738 = vrcp.f32 %v1838_v52  ;;  %v1897_v35 = vmul.f32 %v3737_v40, %v4713_v11 }
 0x421   : > { %3423 = vmatmul.msk.f32.gmra.mxu3 %vm1553_vm3, %v1889_v57  ;;  %3430 = vmatmul.msk.f32.gmra.mxu0 %vm1553_vm3, %v1896_v37  ;;  %3740 = vrcp.f32 %v1841_v49 }
 0x422   : > { %3437 = vmatmul.msk.f32.gmra.mxu1 %vm1553_vm3, %v1903_v30 }
 0x425   : > { %v2077_v46 = vpop.f32.mrf.mxu0 }
 0x426   : > { %v3739_v39 = vpop.eup %3738 }
 0x427   : > { %v1904_v14 = vmul.f32 %v3739_v39, %v4723_v63  ;;  %v3741_v27 = vpop.eup %3740 }
 0x428   : > { %v1905_v59 = vmul.f32 %v3741_v27, %v4699_v22  ;;  %v3777_v27 = vld [vmem:[%s4026_s11 + $0x8] sm:$0xff] }
 0x429   : > { %3431 = vmatmul.msk.f32.gmra.mxu0 %vm1553_vm3, %v1897_v35 }
 0x42a   : > { %3438 = vmatmul.msk.f32.gmra.mxu1 %vm1553_vm3, %v1904_v14 }
 0x42c   : > { %v1956_v56 = vpop.f32.mrf.mxu2 }
 0x42d   : > { %3443 = vmatmul.msk.f32.gmra.mxu2 %vm1180_vm2, %v1956_v56  ;;  %v2080_v63 = vpop.f32.mrf.mxu0 }
 0x431   : > { %3440 = vmatmul.msk.f32.vlgmr.msrb.gmra.mxu0 %vm1180_vm2, %v4757_v24 }
 0x432   : > { %3439 = vmatmul.msk.f32.gmra.mxu1 %vm1553_vm3, %v1905_v59 }
 0x434   : > { %v2142_v32 = vpop.f32.mrf.mxu1 }
 0x439   : > { %3456 = vmatmul.msk.f32.vlgmr.msra.gmra.mxu0 %vm1180_vm2, %v2077_v46  ;;  %v1959_v11 = vpop.f32.mrf.mxu2 }
 0x43a   : > { %3448 = vmatmul.msk.f32.vlgmr.msrb.gmra.mxu1 %vm1180_vm2, %v2012_v0  ;;  %3444 = vmatmul.msk.f32.gmra.mxu2 %vm1180_vm2, %v1959_v11 }
 0x441   : > { %3457 = vmatmul.msk.f32.gmra.mxu0 %vm1180_vm2, %v2080_v63  ;;  %v1962_v21 = vpop.f32.mrf.mxu2 }
 0x442   : > { %3464 = vmatmul.msk.f32.vlgmr.msra.gmra.mxu1 %vm1180_vm2, %v2142_v32  ;;  %3445 = vmatmul.msk.f32.gmra.mxu2 %vm1180_vm2, %v1962_v21 }
 0x449   : > { %v2015_v22 = vpop.f32.mrf.mxu3 }
 0x44a   : > { %3449 = vmatmul.msk.f32.vlgmr.msra.gmra.mxu3 %vm1180_vm2, %v2015_v22 }
 0x44b   : > { %v2083_v48 = vpop.f32.mrf.mxu0 }
 0x44c   : > { %3458 = vmatmul.msk.f32.gmra.mxu0 %vm1180_vm2, %v2083_v48  ;;  %v3778_v48 = vld [vmem:[%s4026_s11 + $0x10] sm:$0xff] }
 0x451   : > { %v2018_v36 = vpop.f32.mrf.mxu3 }
 0x452   : > { %3450 = vmatmul.msk.f32.gmra.mxu3 %vm1180_vm2, %v2018_v36 }
 0x463   : > { %v2145_v44 = vpop.f32.mrf.mxu1 }
 0x464   : > { %3465 = vmatmul.msk.f32.gmra.mxu1 %vm1180_vm2, %v2145_v44 }
 0x46b   : > { %v2148_v2 = vpop.f32.mrf.mxu1 }
 0x46c   : > { %3466 = vmatmul.msk.f32.gmra.mxu1 %vm1180_vm2, %v2148_v2 }
 0x46d   : > { %v2086_v25 = vpop.f32.mrf.mxu0 }
 0x46e   : > { %3459 = vmatmul.msk.f32.gmra.mxu0 %vm1180_vm2, %v2086_v25 }
 0x475   : > { %v2151_v41 = vpop.f32.mrf.mxu1 }
 0x476   : > { %3467 = vmatmul.msk.f32.gmra.mxu1 %vm1180_vm2, %v2151_v41 }
 0x47c   : > { %v1965_v20 = vpop.f32.mrf.mxu2 }
 0x47d   : > { %3446 = vmatmul.msk.f32.gmra.mxu2 %vm1180_vm2, %v1965_v20 }
 0x484   : > { %v2021_v47 = vpop.f32.mrf.mxu3 }
 0x485   : > { %3451 = vmatmul.msk.f32.gmra.mxu3 %vm1180_vm2, %v2021_v47 }
 0x48b   : > { %v1968_v1 = vpop.f32.mrf.mxu2 }
 0x48c   : > { %v2024_v18 = vpop.f32.mrf.mxu3  ;;  %3447 = vmatmul.msk.f32.gmra.mxu2 %vm1180_vm2, %v1968_v1 }
 0x48d   : > { %3452 = vmatmul.msk.f32.gmra.mxu3 %vm1180_vm2, %v2024_v18 }
 0x48e   : > { %v2089_v3 = vpop.f32.mrf.mxu0 }
 0x48f   : > { %3460 = vmatmul.msk.f32.gmra.mxu0 %vm1180_vm2, %v2089_v3 }
 0x493   : > { %v2214_v31 = vpop.f32.mrf.mxu2 }
 0x494   : > { %v2027_v5 = vpop.f32.mrf.mxu3  ;;  %v2437_v6 = vsel %vm833_vm1, %v2214_v31, 0.0 }
 0x495   : > { %3453 = vmatmul.msk.f32.gmra.mxu3 %vm1180_vm2, %v2027_v5 }
 0x496   : > { %v2092_v53 = vpop.f32.mrf.mxu0 }
 0x497   : > { %v2154_v4 = vpop.f32.mrf.mxu1  ;;  %3461 = vmatmul.msk.f32.gmra.mxu0 %vm1180_vm2, %v2092_v53 }
 0x498   : > { %3468 = vmatmul.msk.f32.gmra.mxu1 %vm1180_vm2, %v2154_v4 }
 0x49b   : > { %v2217_v52 = vpop.f32.mrf.mxu2 }
 0x49c   : > { %v2030_v55 = vpop.f32.mrf.mxu3  ;;  %v2444_v39 = vsel %vm833_vm1, %v2217_v52, 0.0 }
 0x49d   : > { %3454 = vmatmul.msk.f32.gmra.mxu3 %vm1180_vm2, %v2030_v55 }
 0x49e   : > { %v2095_v15 = vpop.f32.mrf.mxu0 }
 0x49f   : > { %v2157_v24 = vpop.f32.mrf.mxu1  ;;  %3462 = vmatmul.msk.f32.gmra.mxu0 %vm1180_vm2, %v2095_v15 }
 0x4a0   : > { %3469 = vmatmul.msk.f32.gmra.mxu1 %vm1180_vm2, %v2157_v24 }
 0x4a4   : > { %v2033_v29 = vpop.f32.mrf.mxu3 }
 0x4a5   : > { %3455 = vmatmul.msk.f32.gmra.mxu3 %vm1180_vm2, %v2033_v29 }
 0x4a6   : > { %v2098_v45 = vpop.f32.mrf.mxu0 }
 0x4a7   : > { %v2160_v33 = vpop.f32.mrf.mxu1  ;;  %3463 = vmatmul.msk.f32.gmra.mxu0 %vm1180_vm2, %v2098_v45 }
 0x4a8   : > { %3470 = vmatmul.msk.f32.gmra.mxu1 %vm1180_vm2, %v2160_v33 }
 0x4ae   : > { %v2211_v8 = vpop.f32.mrf.mxu0 }
 0x4af   : > { %v2163_v61 = vpop.f32.mrf.mxu1  ;;  %v2430_v9 = vsel %vm833_vm1, %v2211_v8, 0.0  ;;  %v3779_v8 = vld [vmem:[%s4026_s11 + $0x18] sm:$0xff] }
 0x4b0   : > { %3471 = vmatmul.msk.f32.gmra.mxu1 %vm1180_vm2, %v2163_v61  ;;  %v2220_v2 = vpop.f32.mrf.mxu2 }
 0x4b1   : > { %v2451_v20 = vsel %vm833_vm1, %v2220_v2, 0.0  ;;  %v3782_v2 = vld [vmem:[%s4026_s11 + $0x30] sm:$0xff] }
 0x4b6   : > { %v2341_v23 = vpop.f32.mrf.mxu0 }
 0x4b7   : > { %v2276_v34 = vpop.f32.mrf.mxu1  ;;  %v2433_v42 = vsel %vm833_vm1, %v2341_v23, 0.0 }
 0x4b8   : > { %v2431_v54 = vsel %vm833_vm1, %v2276_v34, 0.0 }
 0x4b9   : > { %v2432_v16 = vadd.f32 %v2431_v54, %v2430_v9 }
 0x4bb   : > { %v2434_v38 = vadd.f32 %v2433_v42, %v2432_v16 }
 0x4bd   : > { %v2223_v5 = vpop.f32.mrf.mxu2 }
 0x4be   : > { %v2344_v62 = vpop.f32.mrf.mxu0  ;;  %v2458_v45 = vsel %vm833_vm1, %v2223_v5, 0.0 }
 0x4bf   : > { %v2406_v13 = vpop.f32.mrf.mxu1  ;;  %v2440_v26 = vsel %vm833_vm1, %v2344_v62, 0.0 }
 0x4c0   : > { %v2435_v58 = vsel %vm833_vm1, %v2406_v13, 0.0 }
 0x4c1   : > { %v2436_v19 = vadd.f32 %v2435_v58, %v2434_v38 }
 0x4c3   : > { %v2490_v10 = vadd.f32 %v4828_v50, %v2436_v19 }
 0x4c5   : > { %v4833_v60 = vadd.f32 %v3776_v43, %v2490_v10  ;;  %v2226_v42 = vpop.f32.mrf.mxu2 }
 0x4c6   : > { %v2465_v10 = vsel %vm833_vm1, %v2226_v42, 0.0 }
 0x4c7   : > { %v2506_v28 = vsel %vm833_vm1, %v4833_v60, 0.0 }
 0x4c8   : > { %2507 = vadd.xlane.f32.xlu1 %v2506_v28 }
 0x4c9   : > { %v2347_v35 = vpop.f32.mrf.mxu0 }
 0x4ca   : > { %v2447_v46 = vsel %vm833_vm1, %v2347_v35, 0.0 }
 0x4cd   : > { %v2279_v12 = vpop.f32.mrf.mxu3 }
 0x4ce   : > { %v2438_v7 = vsel %vm833_vm1, %v2279_v12, 0.0 }
 0x4cf   : > { %v2439_v51 = vadd.f32 %v2438_v7, %v2437_v6  ;;  %v3780_v7 = vld [vmem:[%s4026_s11 + $0x20] sm:$0xff] }
 0x4d1   : > { %v2441_v37 = vadd.f32 %v2440_v26, %v2439_v51 }
 0x4d5   : > { %v2282_v17 = vpop.f32.mrf.mxu3 }
 0x4d6   : > { %v2445_v30 = vsel %vm833_vm1, %v2282_v17, 0.0 }
 0x4d7   : > { %v2446_v14 = vadd.f32 %v2445_v30, %v2444_v39 }
 0x4d9   : > { %v2448_v11 = vadd.f32 %v2447_v46, %v2446_v14 }
 0x4e1   : > { %v2409_v57 = vpop.f32.mrf.mxu1 }
 0x4e2   : > { %v2442_v40 = vsel %vm833_vm1, %v2409_v57, 0.0 }
 0x4e3   : > { %v2443_v49 = vadd.f32 %v2442_v40, %v2441_v37  ;;  %v3828_v40 = vmov 32.0  }
 0x4e4   : > { %3742 = vrcp.f32 %v3828_v40 }
 0x4e5   : > { %v2491_v56 = vadd.f32 %v4828_v50, %v2443_v49 }
 0x4e7   : > { %v4845_v59 = vadd.f32 %v3777_v27, %v2491_v56  ;;  %v3781_v27 = vld [vmem:[%s4026_s11 + $0x28] sm:$0xff] }
 0x4e9   : > { %v2412_v0 = vpop.f32.mrf.mxu1  ;;  %v2509_v63 = vsel %vm833_vm1, %v4845_v59, 0.0 }
 0x4ea   : > { %v2449_v32 = vsel %vm833_vm1, %v2412_v0, 0.0  ;;  %2510 = vadd.xlane.f32.xlu2 %v2509_v63 }
 0x4eb   : > { %v2450_v21 = vadd.f32 %v2449_v32, %v2448_v11  ;;  %v2350_v25 = vpop.f32.mrf.mxu0  ;;  %v3743_v32 = vpop.eup %3742 }
 0x4ec   : > { %v2454_v3 = vsel %vm833_vm1, %v2350_v25, 0.0  ;;  %vm2535_vm4 = vweird.f32 %v3743_v32 }
 0x4ed   : > { %v2492_v22 = vadd.f32 %v4828_v50, %v2450_v21 }
 0x4ef   : > { %v4853_v36 = vadd.f32 %v3778_v48, %v2492_v22 }
 0x4f1   : > { %v2512_v44 = vsel %vm833_vm1, %v4853_v36, 0.0 }
 0x4f2   : > { %2513 = vadd.xlane.f32.xlu0 %v2512_v44  ;;  %v2531_v44 = vmul.f32 32.0, %v3743_v32 }
 0x4f3   : > { %v2415_v1 = vpop.f32.mrf.mxu1 }
 0x4f4   : > { %v2456_v55 = vsel %vm833_vm1, %v2415_v1, 0.0 }
 0x500   : > { %v2229_v26 = vpop.f32.mrf.mxu2 }
 0x501   : > { %v2472_v49 = vsel %vm833_vm1, %v2229_v26, 0.0 }
 0x508   : > { %v2285_v41 = vpop.f32.mrf.mxu3 }
 0x509   : > { %v2452_v47 = vsel %vm833_vm1, %v2285_v41, 0.0 }
 0x50a   : > { %v2453_v18 = vadd.f32 %v2452_v47, %v2451_v20  ;;  %v2532_v20 = vsub.f32 1.0, %v2531_v44 }
 0x50c   : > { %v2455_v53 = vadd.f32 %v2454_v3, %v2453_v18  ;;  %v2353_v4 = vpop.f32.mrf.mxu0  ;;  %v2533_v1 = vmul.f32 %v3743_v32, %v2532_v20 }
 0x50d   : > { %v2461_v54 = vsel %vm833_vm1, %v2353_v4, 0.0 }
 0x50e   : > { %v2457_v15 = vadd.f32 %v2456_v55, %v2455_v53  ;;  %v2534_v53 = vadd.f32 %v3743_v32, %v2533_v1 }
 0x50f   : > { %v2232_v18 = vpop.f32.mrf.mxu2 }
 0x510   : > { %v2288_v24 = vpop.f32.mrf.mxu3  ;;  %v2493_v29 = vadd.f32 %v4828_v50, %v2457_v15  ;;  %v2479_v5 = vsel %vm833_vm1, %v2232_v18, 0.0 }
 0x511   : > { %v2459_v33 = vsel %vm833_vm1, %v2288_v24, 0.0 }
 0x512   : > { %v2460_v61 = vadd.f32 %v2459_v33, %v2458_v45  ;;  %v4865_v34 = vadd.f32 %v3779_v8, %v2493_v29  ;;  %v4897_v29 = vsel %vm2535_vm4, %v3743_v32, %v2534_v53  ;;  %v2714_v32 = vld [vmem:[%s3999_s20 + $0x8] sm:$0xff] }
 0x514   : > { %v2462_v9 = vadd.f32 %v2461_v54, %v2460_v61  ;;  %v2515_v16 = vsel %vm833_vm1, %v4865_v34, 0.0  ;;  %v2356_v38 = vpop.f32.mrf.mxu0 }
 0x515   : > { %v2418_v23 = vpop.f32.mrf.mxu1  ;;  %2516 = vadd.xlane.f32.xlu1 %v2515_v16  ;;  %v2468_v31 = vsel %vm833_vm1, %v2356_v38, 0.0  ;;  %v3783_v38 = vld [vmem:[%s4026_s11 + $0x38] sm:$0xff] }
 0x516   : > { %v2463_v13 = vsel %vm833_vm1, %v2418_v23, 0.0 }
 0x517   : > { %v2464_v58 = vadd.f32 %v2463_v13, %v2462_v9 }
 0x518   : > { %v2291_v19 = vpop.f32.mrf.mxu3 }
 0x519   : > { %v2494_v43 = vadd.f32 %v4828_v50, %v2464_v58  ;;  %v2466_v28 = vsel %vm833_vm1, %v2291_v19, 0.0 }
 0x51a   : > { %v2467_v12 = vadd.f32 %v2466_v28, %v2465_v10 }
 0x51b   : > { %v4876_v6 = vadd.f32 %v3780_v7, %v2494_v43 }
 0x51c   : > { %v2469_v62 = vadd.f32 %v2468_v31, %v2467_v12  ;;  %v2359_v37 = vpop.f32.mrf.mxu0 }
 0x51d   : > { %v2421_v51 = vpop.f32.mrf.mxu1  ;;  %v2518_v17 = vsel %vm833_vm1, %v4876_v6, 0.0  ;;  %v2475_v56 = vsel %vm833_vm1, %v2359_v37, 0.0 }
 0x51e   : > { %v2470_v52 = vsel %vm833_vm1, %v2421_v51, 0.0  ;;  %2519 = vadd.xlane.f32.xlu2 %v2518_v17 }
 0x51f   : > { %v2471_v57 = vadd.f32 %v2470_v52, %v2469_v62 }
 0x520   : > { %v2294_v30 = vpop.f32.mrf.mxu3 }
 0x521   : > { %v2495_v39 = vadd.f32 %v4828_v50, %v2471_v57  ;;  %v2473_v35 = vsel %vm833_vm1, %v2294_v30, 0.0 }
 0x522   : > { %v2474_v14 = vadd.f32 %v2473_v35, %v2472_v49 }
 0x523   : > { %v4886_v46 = vadd.f32 %v3781_v27, %v2495_v39 }
 0x524   : > { %v2476_v0 = vadd.f32 %v2475_v56, %v2474_v14  ;;  %v2362_v4 = vpop.f32.mrf.mxu0 }
 0x525   : > { %v2424_v11 = vpop.f32.mrf.mxu1  ;;  %v2521_v63 = vsel %vm833_vm1, %v4886_v46, 0.0  ;;  %v2482_v24 = vsel %vm833_vm1, %v2362_v4, 0.0 }
 0x526   : > { %v2477_v21 = vsel %vm833_vm1, %v2424_v11, 0.0  ;;  %2522 = vadd.xlane.f32.xlu0 %v2521_v63  ;;  %v2716_v63 = vld [vmem:[%s3999_s20 + $0x18] sm:$0xff] }
 0x527   : > { %v2478_v22 = vadd.f32 %v2477_v21, %v2476_v0  ;;  %2757 = vmatpush.msrb.mxu2 %v2716_v63  ;;  %v2713_v21 = vld [vmem:[%s3999_s20] sm:$0xff] }
 0x528   : > { %v2297_v47 = vpop.f32.mrf.mxu3 }
 0x529   : > { %v2496_v48 = vadd.f32 %v4828_v50, %v2478_v22  ;;  %v2480_v3 = vsel %vm833_vm1, %v2297_v47, 0.0 }
 0x52a   : > { %v2481_v55 = vadd.f32 %v2480_v3, %v2479_v5 }
 0x52b   : > { %v2504_v25 = vadd.f32 %v3782_v2, %v2496_v48 }
 0x52c   : > { %v2483_v45 = vadd.f32 %v2482_v24, %v2481_v55  ;;  %v4967_v55 = vld [vmem:[%s5264_s1] ss:$0 sm:$0xff] }
 0x52d   : > { %v2524_v41 = vsel %vm833_vm1, %v2504_v25, 0.0  ;;  %v2427_v15 = vpop.f32.mrf.mxu1 }
 0x52e   : > { %2525 = vadd.xlane.f32.xlu2 %v2524_v41  ;;  %v2484_v33 = vsel %vm833_vm1, %v2427_v15, 0.0 }
 0x52f   : > { %v2485_v54 = vadd.f32 %v2484_v33, %v2483_v45  ;;  %v4975_v45 = vld [vmem:[%s5265_s16] ss:$0 sm:$0xff] }
 0x531   : > { %v2497_v23 = vadd.f32 %v4828_v50, %v2485_v54 }
 0x533   : > { %v2505_v13 = vadd.f32 %v3783_v38, %v2497_v23 }
 0x535   : > { %v2527_v58 = vsel %vm833_vm1, %v2505_v13, 0.0 }
 0x53b   : > { %v2508_v61 = vpop.xlane.xlu1 %2507 }
 0x53c   : > { %v2537_v8 = vmul.f32 %v4897_v29, %v2508_v61 }
 0x53e   : > { %v4902_v9 = vsub.f32 %v4833_v60, %v2537_v8 }
 0x540   : > { %v2553_v16 = vmul.f32 %v4902_v9, %v4902_v9 }
 0x542   : > { %v2561_v42 = vsel %vm833_vm1, %v2553_v16, 0.0 }
 0x543   : > { %2562 = vadd.xlane.f32.xlu1 %v2561_v42 }
 0x54b   : > { %2528 = vadd.xlane.f32.xlu1 %v2527_v58 }
 0x55d   : > { %v2511_v19 = vpop.xlane.xlu2 %2510 }
 0x55e   : > { %v2538_v10 = vmul.f32 %v4897_v29, %v2511_v19 }
 0x560   : > { %v4912_v43 = vsub.f32 %v4845_v59, %v2538_v10 }
 0x562   : > { %v2554_v60 = vmul.f32 %v4912_v43, %v4912_v43 }
 0x564   : > { %v2564_v28 = vsel %vm833_vm1, %v2554_v60, 0.0 }
 0x565   : > { %v2514_v50 = vpop.xlane.xlu0 %2513  ;;  %2565 = vadd.xlane.f32.xlu0 %v2564_v28 }
 0x566   : > { %v2539_v12 = vmul.f32 %v4897_v29, %v2514_v50 }
 0x568   : > { %v4919_v31 = vsub.f32 %v4853_v36, %v2539_v12 }
 0x56a   : > { %v2555_v7 = vmul.f32 %v4919_v31, %v4919_v31 }
 0x56c   : > { %v2567_v62 = vsel %vm833_vm1, %v2555_v7, 0.0 }
 0x56d   : > { %2568 = vadd.xlane.f32.xlu2 %v2567_v62 }
 0x588   : > { %v2517_v59 = vpop.xlane.xlu1 %2516 }
 0x589   : > { %v2540_v51 = vmul.f32 %v4897_v29, %v2517_v59 }
 0x58b   : > { %v4926_v17 = vsub.f32 %v4865_v34, %v2540_v51 }
 0x58d   : > { %v2556_v26 = vmul.f32 %v4926_v17, %v4926_v17 }
 0x58f   : > { %v2570_v52 = vsel %vm833_vm1, %v2556_v26, 0.0 }
 0x590   : > { %2571 = vadd.xlane.f32.xlu0 %v2570_v52 }
 0x591   : > { %v2520_v36 = vpop.xlane.xlu2 %2519 }
 0x592   : > { %v2541_v57 = vmul.f32 %v4897_v29, %v2520_v36 }
 0x594   : > { %v4933_v37 = vsub.f32 %v4876_v6, %v2541_v57 }
 0x596   : > { %v2557_v30 = vmul.f32 %v4933_v37, %v4933_v37 }
 0x598   : > { %v2573_v40 = vsel %vm833_vm1, %v2557_v30, 0.0 }
 0x599   : > { %v2523_v34 = vpop.xlane.xlu0 %2522  ;;  %2574 = vadd.xlane.f32.xlu1 %v2573_v40 }
 0x59a   : > { %v2542_v49 = vmul.f32 %v4897_v29, %v2523_v34 }
 0x59c   : > { %v4940_v39 = vsub.f32 %v4886_v46, %v2542_v49  ;;  %v2715_v46 = vld [vmem:[%s3999_s20 + $0x10] sm:$0xff] }
 0x59d   : > { %2758 = vmatpush.msrb.mxu2 %v2715_v46 }
 0x59e   : > { %v2558_v6 = vmul.f32 %v4940_v39, %v4940_v39 }
 0x59f   : > { %2759 = vmatpush.msrb.mxu2 %v2714_v32 }
 0x5a0   : > { %v2576_v35 = vsel %vm833_vm1, %v2558_v6, 0.0 }
 0x5a1   : > { %2577 = vadd.xlane.f32.xlu2 %v2576_v35  ;;  %v2526_v14 = vpop.xlane.xlu2 %2525  ;;  %2760 = vmatpush.msrb.mxu2 %v2713_v21 }
 0x5a2   : > { %v2543_v56 = vmul.f32 %v4897_v29, %v2526_v14 }
 0x5a4   : > { %v4946_v27 = vsub.f32 %v2504_v25, %v2543_v56 }
 0x5a6   : > { %v2559_v0 = vmul.f32 %v4946_v27, %v4946_v27 }
 0x5a8   : > { %v2579_v11 = vsel %vm833_vm1, %v2559_v0, 0.0 }
 0x5a9   : > { %2580 = vadd.xlane.f32.xlu0 %v2579_v11 }
 0x5b6   : > { %v2563_v22 = vpop.xlane.xlu1 %2562 }
 0x5b7   : > { %v2585_v48 = vmul.f32 %v2563_v22, %v4897_v29 }
 0x5b9   : > { %v2593_v44 = vadd.f32 1e-05, %v2585_v48 }
 0x5bb   : > { %3744 = vrsqrt.f32 %v2593_v44  ;;  %vm2607_vm6 = vweird.f32 %v2593_v44 }
 0x5be   : > { %v2529_v2 = vpop.xlane.xlu1 %2528 }
 0x5bf   : > { %v2544_v25 = vmul.f32 %v4897_v29, %v2529_v2 }
 0x5c1   : > { %v3745_v41 = vpop.eup %3744  ;;  %v4957_v20 = vsub.f32 %v2505_v13, %v2544_v25 }
 0x5c2   : > { %v2602_v47 = vmul.f32 %v3745_v41, %v2593_v44  ;;  %vm2608_vm5 = vweird.f32 %v3745_v41 }
 0x5c3   : > { %v2560_v1 = vmul.f32 %v4957_v20, %v4957_v20  ;;  %vm2609_vm7 = vmor %vm2607_vm6, %vm2608_vm5 }
 0x5c4   : > { %v2603_v18 = vmul.f32 %v3745_v41, %v2602_v47 }
 0x5c5   : > { %v2582_v3 = vsel %vm833_vm1, %v2560_v1, 0.0 }
 0x5c6   : > { %v2604_v5 = vmul.f32 0.5, %v2603_v18  ;;  %2583 = vadd.xlane.f32.xlu1 %v2582_v3 }
 0x5c8   : > { %v2605_v53 = vsub.f32 1.5, %v2604_v5 }
 0x5ca   : > { %v2606_v4 = vmul.f32 %v3745_v41, %v2605_v53 }
 0x5cc   : > { %v2610_v15 = vsel %vm2609_vm7, %v3745_v41, %v2606_v4 }
 0x5cd   : > { %v2681_v24 = vmul.f32 %v2610_v15, %v4902_v9 }
 0x5cf   : > { %v2693_v33 = vmul.f32 %v4967_v55, %v2681_v24 }
 0x5d1   : > { %v4979_v61 = vadd.f32 %v4975_v45, %v2693_v33 }
 0x5d3   : > { %3472 = vmatmul.msk.f32.vlgmr.msrb.gmra.mxu2 %vm833_vm1, %v4979_v61 }
 0x5d8   : > { %v2566_v8 = vpop.xlane.xlu0 %2565 }
 0x5d9   : > { %v2586_v54 = vmul.f32 %v2566_v8, %v4897_v29 }
 0x5db   : > { %v2594_v16 = vadd.f32 1e-05, %v2586_v54 }
 0x5dd   : > { %3746 = vrsqrt.f32 %v2594_v16  ;;  %vm2617_vm9 = vweird.f32 %v2594_v16 }
 0x5e0   : > { %v2569_v9 = vpop.xlane.xlu2 %2568 }
 0x5e1   : > { %v2587_v23 = vmul.f32 %v2569_v9, %v4897_v29 }
 0x5e3   : > { %v3747_v42 = vpop.eup %3746  ;;  %v2595_v38 = vadd.f32 1e-05, %v2587_v23 }
 0x5e4   : > { %v2612_v13 = vmul.f32 %v3747_v42, %v2594_v16  ;;  %vm2618_vm8 = vweird.f32 %v3747_v42 }
 0x5e5   : > { %3748 = vrsqrt.f32 %v2595_v38  ;;  %vm2619_vm10 = vmor %vm2617_vm9, %vm2618_vm8  ;;  %vm2627_vm12 = vweird.f32 %v2595_v38 }
 0x5e6   : > { %v2613_v58 = vmul.f32 %v3747_v42, %v2612_v13 }
 0x5e8   : > { %v2614_v19 = vmul.f32 0.5, %v2613_v58 }
 0x5ea   : > { %v2615_v10 = vsub.f32 1.5, %v2614_v19 }
 0x5eb   : > { %v3749_v60 = vpop.eup %3748 }
 0x5ec   : > { %v2616_v28 = vmul.f32 %v3747_v42, %v2615_v10  ;;  %v2622_v50 = vmul.f32 %v3749_v60, %v2595_v38  ;;  %vm2628_vm11 = vweird.f32 %v3749_v60 }
 0x5ed   : > { %vm2629_vm13 = vmor %vm2627_vm12, %vm2628_vm11 }
 0x5ee   : > { %v2620_v12 = vsel %vm2619_vm10, %v3747_v42, %v2616_v28  ;;  %v2623_v7 = vmul.f32 %v3749_v60, %v2622_v50  ;;  %v2801_v28 = vld [vmem:[%s4009_s21 + $0x38] sm:$0xff] }
 0x5ef   : > { %v2682_v62 = vmul.f32 %v2620_v12, %v4912_v43  ;;  %2838 = vmatpush.msrb.mxu3 %v2801_v28 }
 0x5f0   : > { %v2624_v59 = vmul.f32 0.5, %v2623_v7  ;;  %v2800_v7 = vld [vmem:[%s4009_s21 + $0x30] sm:$0xff] }
 0x5f1   : > { %v2694_v51 = vmul.f32 %v4967_v55, %v2682_v62  ;;  %2839 = vmatpush.msrb.mxu3 %v2800_v7 }
 0x5f2   : > { %v2625_v26 = vsub.f32 1.5, %v2624_v59 }
 0x5f3   : > { %v4988_v52 = vadd.f32 %v4975_v45, %v2694_v51  ;;  %v2799_v51 = vld [vmem:[%s4009_s21 + $0x28] sm:$0xff] }
 0x5f4   : > { %v2626_v36 = vmul.f32 %v3749_v60, %v2625_v26  ;;  %2840 = vmatpush.msrb.mxu3 %v2799_v51 }
 0x5f5   : > { %3473 = vmatmul.msk.f32.gmra.mxu2 %vm833_vm1, %v4988_v52 }
 0x5f6   : > { %v2630_v57 = vsel %vm2629_vm13, %v3749_v60, %v2626_v36  ;;  %v2797_v36 = vld [vmem:[%s4009_s21 + $0x18] sm:$0xff] }
 0x5f7   : > { %v2683_v30 = vmul.f32 %v2630_v57, %v4919_v31 }
 0x5f9   : > { %v2695_v40 = vmul.f32 %v4967_v55, %v2683_v30 }
 0x5fb   : > { %v4995_v43 = vadd.f32 %v4975_v45, %v2695_v40 }
 0x5fd   : > { %3474 = vmatmul.msk.f32.gmra.mxu2 %vm833_vm1, %v4995_v43 }
 0x603   : > { %v2572_v34 = vpop.xlane.xlu0 %2571 }
 0x604   : > { %v2588_v49 = vmul.f32 %v2572_v34, %v4897_v29  ;;  %v2796_v34 = vld [vmem:[%s4009_s21 + $0x10] sm:$0xff] }
 0x606   : > { %v2596_v6 = vadd.f32 1e-05, %v2588_v49 }
 0x608   : > { %3750 = vrsqrt.f32 %v2596_v6  ;;  %vm2637_vm15 = vweird.f32 %v2596_v6 }
 0x60c   : > { %v2575_v35 = vpop.xlane.xlu1 %2574 }
 0x60d   : > { %v2589_v14 = vmul.f32 %v2575_v35, %v4897_v29 }
 0x60e   : > { %v3751_v56 = vpop.eup %3750 }
 0x60f   : > { %v2632_v0 = vmul.f32 %v3751_v56, %v2596_v6  ;;  %v2597_v11 = vadd.f32 1e-05, %v2589_v14  ;;  %vm2638_vm14 = vweird.f32 %v3751_v56  ;;  %v2795_v6 = vld [vmem:[%s4009_s21 + $0x8] sm:$0xff]  ;;  %v2794_v14 = vld [vmem:[%s4009_s21] sm:$0xff] }
 0x610   : > { %vm2639_vm0 = vmor %vm2637_vm15, %vm2638_vm14 }
 0x611   : > { %v2633_v31 = vmul.f32 %v3751_v56, %v2632_v0  ;;  %3752 = vrsqrt.f32 %v2597_v11  ;;  %vm2647_vm4 = vweird.f32 %v2597_v11 }
 0x613   : > { %v2634_v63 = vmul.f32 0.5, %v2633_v31 }
 0x614   : > { %v2578_v46 = vpop.xlane.xlu2 %2577 }
 0x615   : > { %v2635_v32 = vsub.f32 1.5, %v2634_v63  ;;  %v2590_v21 = vmul.f32 %v2578_v46, %v4897_v29 }
 0x617   : > { %v3753_v22 = vpop.eup %3752  ;;  %v2636_v48 = vmul.f32 %v3751_v56, %v2635_v32  ;;  %v2598_v44 = vadd.f32 1e-05, %v2590_v21 }
 0x618   : > { %v2642_v2 = vmul.f32 %v3753_v22, %v2597_v11  ;;  %vm2648_vm2 = vweird.f32 %v3753_v22 }
 0x619   : > { %v2640_v25 = vsel %vm2639_vm0, %v3751_v56, %v2636_v48  ;;  %3754 = vrsqrt.f32 %v2598_v44  ;;  %vm2649_vm5 = vmor %vm2647_vm4, %vm2648_vm2  ;;  %vm2657_vm7 = vweird.f32 %v2598_v44 }
 0x61a   : > { %v2684_v41 = vmul.f32 %v2640_v25, %v4926_v17  ;;  %v2643_v47 = vmul.f32 %v3753_v22, %v2642_v2 }
 0x61c   : > { %v2644_v1 = vmul.f32 0.5, %v2643_v47  ;;  %v2581_v18 = vpop.xlane.xlu0 %2580  ;;  %v2696_v3 = vmul.f32 %v4967_v55, %v2684_v41 }
 0x61d   : > { %v2591_v5 = vmul.f32 %v2581_v18, %v4897_v29 }
 0x61e   : > { %v2645_v53 = vsub.f32 1.5, %v2644_v1  ;;  %v5006_v4 = vadd.f32 %v4975_v45, %v2696_v3 }
 0x61f   : > { %v3755_v15 = vpop.eup %3754  ;;  %v2599_v24 = vadd.f32 1e-05, %v2591_v5 }
 0x620   : > { %v2646_v33 = vmul.f32 %v3753_v22, %v2645_v53  ;;  %v2652_v8 = vmul.f32 %v3755_v15, %v2598_v44  ;;  %3475 = vmatmul.msk.f32.gmra.mxu2 %vm833_vm1, %v5006_v4  ;;  %vm2658_vm6 = vweird.f32 %v3755_v15  ;;  %v3610_v44 = vld [vmem:[%s5267_s25] ss:$0 sm:$0xff] }
 0x621   : > { %3756 = vrsqrt.f32 %v2599_v24  ;;  %vm2659_vm8 = vmor %vm2657_vm7, %vm2658_vm6  ;;  %vm2667_vm10 = vweird.f32 %v2599_v24 }
 0x622   : > { %v2650_v17 = vsel %vm2649_vm5, %v3753_v22, %v2646_v33  ;;  %v2653_v54 = vmul.f32 %v3755_v15, %v2652_v8 }
 0x623   : > { %v2685_v16 = vmul.f32 %v2650_v17, %v4933_v37 }
 0x624   : > { %v2654_v9 = vmul.f32 0.5, %v2653_v54 }
 0x625   : > { %v2697_v23 = vmul.f32 %v4967_v55, %v2685_v16 }
 0x626   : > { %v2655_v42 = vsub.f32 1.5, %v2654_v9 }
 0x627   : > { %v3757_v38 = vpop.eup %3756  ;;  %v5013_v13 = vadd.f32 %v4975_v45, %v2697_v23 }
 0x628   : > { %v2656_v58 = vmul.f32 %v3755_v15, %v2655_v42  ;;  %v2662_v19 = vmul.f32 %v3757_v38, %v2599_v24  ;;  %vm2668_vm9 = vweird.f32 %v3757_v38 }
 0x629   : > { %3476 = vmatmul.msk.f32.gmra.mxu2 %vm833_vm1, %v5013_v13  ;;  %vm2669_vm11 = vmor %vm2667_vm10, %vm2668_vm9 }
 0x62a   : > { %v2660_v10 = vsel %vm2659_vm8, %v3755_v15, %v2656_v58  ;;  %v2663_v37 = vmul.f32 %v3757_v38, %v2662_v19  ;;  %v3611_v19 = vld [vmem:[%s768_s30] ss:$0 sm:$0xff] }
 0x62b   : > { %v2686_v60 = vmul.f32 %v2660_v10, %v4940_v39  ;;  %v2798_v39 = vld [vmem:[%s4009_s21 + $0x20] sm:$0xff] }
 0x62c   : > { %v2664_v50 = vmul.f32 0.5, %v2663_v37  ;;  %2841 = vmatpush.msrb.mxu3 %v2798_v39 }
 0x62d   : > { %v2698_v12 = vmul.f32 %v4967_v55, %v2686_v60 }
 0x62e   : > { %v2665_v62 = vsub.f32 1.5, %v2664_v50  ;;  %2842 = vmatpush.msrb.mxu3 %v2797_v36 }
 0x62f   : > { %v5022_v59 = vadd.f32 %v4975_v45, %v2698_v12 }
 0x630   : > { %v2666_v26 = vmul.f32 %v3757_v38, %v2665_v62  ;;  %2843 = vmatpush.msrb.mxu3 %v2796_v34 }
 0x631   : > { %3477 = vmatmul.msk.f32.gmra.mxu2 %vm833_vm1, %v5022_v59 }
 0x632   : > { %v2670_v57 = vsel %vm2669_vm11, %v3757_v38, %v2666_v26  ;;  %2844 = vmatpush.msrb.mxu3 %v2795_v6 }
 0x633   : > { %v2687_v30 = vmul.f32 %v2670_v57, %v4946_v27 }
 0x634   : > { %2845 = vmatpush.msrb.mxu3 %v2794_v14 }
 0x635   : > { %v2699_v40 = vmul.f32 %v4967_v55, %v2687_v30 }
 0x637   : > { %v5033_v49 = vadd.f32 %v4975_v45, %v2699_v40 }
 0x639   : > { %3478 = vmatmul.msk.f32.gmra.mxu2 %vm833_vm1, %v5033_v49  ;;  %v2584_v35 = vpop.xlane.xlu1 %2583 }
 0x63a   : > { %v2592_v56 = vmul.f32 %v2584_v35, %v4897_v29 }
 0x63c   : > { %v2600_v27 = vadd.f32 1e-05, %v2592_v56 }
 0x63e   : > { %3758 = vrsqrt.f32 %v2600_v27  ;;  %vm2677_vm13 = vweird.f32 %v2600_v27 }
 0x644   : > { %v3759_v0 = vpop.eup %3758 }
 0x645   : > { %v2672_v11 = vmul.f32 %v3759_v0, %v2600_v27  ;;  %vm2678_vm12 = vweird.f32 %v3759_v0 }
 0x646   : > { %vm2679_vm14 = vmor %vm2677_vm13, %vm2678_vm12 }
 0x647   : > { %v2673_v31 = vmul.f32 %v3759_v0, %v2672_v11 }
 0x649   : > { %v2674_v63 = vmul.f32 0.5, %v2673_v31 }
 0x64b   : > { %v2675_v46 = vsub.f32 1.5, %v2674_v63 }
 0x64d   : > { %v2676_v32 = vmul.f32 %v3759_v0, %v2675_v46 }
 0x64f   : > { %v2680_v21 = vsel %vm2679_vm14, %v3759_v0, %v2676_v32 }
 0x650   : > { %v2688_v22 = vmul.f32 %v2680_v21, %v4957_v20 }
 0x652   : > { %v2700_v48 = vmul.f32 %v4967_v55, %v2688_v22 }
 0x654   : > { %v5048_v2 = vadd.f32 %v4975_v45, %v2700_v48 }
 0x656   : > { %v2762_v25 = vpop.f32.mrf.mxu2  ;;  %3479 = vmatmul.msk.f32.gmra.mxu2 %vm833_vm1, %v5048_v2 }
 0x657   : > { %v2763_v41 = vadd.f32 %v3610_v44, %v2762_v25 }
 0x659   : > { %v2786_v47 = vmax.f32 %v2763_v41, 0.0 }
 0x65b   : > { %3480 = vmatmul.msk.f32.vlgmr.msrb.gmra.mxu3 %vm1553_vm3, %v2786_v47 }
 0x678   : > { %v2765_v1 = vpop.f32.mrf.mxu2 }
 0x679   : > { %v2766_v20 = vadd.f32 %v3610_v44, %v2765_v1 }
 0x67b   : > { %v2787_v18 = vmax.f32 %v2766_v20, 0.0 }
 0x67d   : > { %3481 = vmatmul.msk.f32.gmra.mxu3 %vm1553_vm3, %v2787_v18 }
 0x680   : > { %v2768_v55 = vpop.f32.mrf.mxu2 }
 0x681   : > { %v2769_v3 = vadd.f32 %v3610_v44, %v2768_v55 }
 0x683   : > { %v2788_v5 = vmax.f32 %v2769_v3, 0.0 }
 0x685   : > { %3482 = vmatmul.msk.f32.gmra.mxu3 %vm1553_vm3, %v2788_v5 }
 0x6a3   : > { %v2771_v45 = vpop.f32.mrf.mxu2 }
 0x6a4   : > { %v2772_v53 = vadd.f32 %v3610_v44, %v2771_v45 }
 0x6a6   : > { %v2789_v15 = vmax.f32 %v2772_v53, 0.0 }
 0x6a8   : > { %3483 = vmatmul.msk.f32.gmra.mxu3 %vm1553_vm3, %v2789_v15 }
 0x6ac   : > { %v2774_v24 = vpop.f32.mrf.mxu2 }
 0x6ad   : > { %v2775_v33 = vadd.f32 %v3610_v44, %v2774_v24 }
 0x6af   : > { %v2790_v8 = vmax.f32 %v2775_v33, 0.0 }
 0x6b1   : > { %3484 = vmatmul.msk.f32.gmra.mxu3 %vm1553_vm3, %v2790_v8 }
 0x6b4   : > { %v2777_v17 = vpop.f32.mrf.mxu2 }
 0x6b5   : > { %v2778_v54 = vadd.f32 %v3610_v44, %v2777_v17 }
 0x6b7   : > { %v2791_v16 = vmax.f32 %v2778_v54, 0.0 }
 0x6b9   : > { %3485 = vmatmul.msk.f32.gmra.mxu3 %vm1553_vm3, %v2791_v16 }
 0x6bc   : > { %v2780_v9 = vpop.f32.mrf.mxu2 }
 0x6bd   : > { %v2781_v23 = vadd.f32 %v3610_v44, %v2780_v9 }
 0x6bf   : > { %v2792_v42 = vmax.f32 %v2781_v23, 0.0 }
 0x6c1   : > { %3486 = vmatmul.msk.f32.gmra.mxu3 %vm1553_vm3, %v2792_v42 }
 0x6d9   : > { %v2783_v38 = vpop.f32.mrf.mxu2 }
 0x6da   : > { %v2784_v58 = vadd.f32 %v3610_v44, %v2783_v38 }
 0x6dc   : > { %v2793_v10 = vmax.f32 %v2784_v58, 0.0 }
 0x6de   : > { %v2847_v37 = vpop.f32.mrf.mxu3  ;;  %3487 = vmatmul.msk.f32.gmra.mxu3 %vm1553_vm3, %v2793_v10 }
 0x6df   : > { %v2848_v60 = vadd.f32 %v3611_v19, %v2847_v37 }
 0x6e1   : > { %v2871_v28 = vadd.f32 %v2848_v60, %v4979_v61 }
 0x6e3   : > { %v2879_v50 = vsel %vm833_vm1, %v2871_v28, 0.0 }
 0x6e4   : > { %2880 = vadd.xlane.f32.xlu2 %v2879_v50 }
 0x700   : > { %v2850_v12 = vpop.f32.mrf.mxu3 }
 0x701   : > { %v2851_v7 = vadd.f32 %v3611_v19, %v2850_v12 }
 0x703   : > { %v2872_v62 = vadd.f32 %v2851_v7, %v4988_v52 }
 0x705   : > { %v2882_v51 = vsel %vm833_vm1, %v2872_v62, 0.0 }
 0x706   : > { %2883 = vadd.xlane.f32.xlu0 %v2882_v51 }
 0x708   : > { %v2853_v26 = vpop.f32.mrf.mxu3 }
 0x709   : > { %v2854_v39 = vadd.f32 %v3611_v19, %v2853_v26 }
 0x70b   : > { %v2873_v36 = vadd.f32 %v2854_v39, %v4995_v43 }
 0x70d   : > { %v2885_v57 = vsel %vm833_vm1, %v2873_v36, 0.0 }
 0x70e   : > { %2886 = vadd.xlane.f32.xlu1 %v2885_v57 }
 0x72b   : > { %v2856_v30 = vpop.f32.mrf.mxu3 }
 0x72c   : > { %v2857_v40 = vadd.f32 %v3611_v19, %v2856_v30 }
 0x72e   : > { %v2874_v61 = vadd.f32 %v2857_v40, %v5006_v4 }
 0x730   : > { %v2888_v34 = vsel %vm833_vm1, %v2874_v61, 0.0 }
 0x731   : > { %2889 = vadd.xlane.f32.xlu2 %v2888_v34 }
 0x734   : > { %v2859_v6 = vpop.f32.mrf.mxu3 }
 0x735   : > { %v2860_v35 = vadd.f32 %v3611_v19, %v2859_v6 }
 0x737   : > { %v2875_v52 = vadd.f32 %v2860_v35, %v5013_v13 }
 0x739   : > { %v2891_v14 = vsel %vm833_vm1, %v2875_v52, 0.0 }
 0x73a   : > { %2892 = vadd.xlane.f32.xlu0 %v2891_v14 }
 0x73c   : > { %v2862_v56 = vpop.f32.mrf.mxu3 }
 0x73d   : > { %v2863_v27 = vadd.f32 %v3611_v19, %v2862_v56  ;;  %v5142_v56 = vld [vmem:[%s774_s10] ss:$0 sm:$0xff] }
 0x73f   : > { %v2876_v43 = vadd.f32 %v2863_v27, %v5022_v59 }
 0x741   : > { %v2894_v0 = vsel %vm833_vm1, %v2876_v43, 0.0 }
 0x742   : > { %2895 = vadd.xlane.f32.xlu1 %v2894_v0 }
 0x744   : > { %v2865_v11 = vpop.f32.mrf.mxu3 }
 0x745   : > { %v2866_v31 = vadd.f32 %v3611_v19, %v2865_v11 }
 0x747   : > { %v2877_v4 = vadd.f32 %v2866_v31, %v5033_v49 }
 0x749   : > { %v2897_v63 = vsel %vm833_vm1, %v2877_v4, 0.0 }
 0x74a   : > { %2898 = vadd.xlane.f32.xlu2 %v2897_v63 }
 0x757   : > { %v2881_v46 = vpop.xlane.xlu2 %2880 }
 0x758   : > { %v2903_v13 = vmul.f32 %v2881_v46, %v4897_v29 }
 0x75a   : > { %v5080_v32 = vsub.f32 %v2871_v28, %v2903_v13 }
 0x75c   : > { %v2919_v21 = vmul.f32 %v5080_v32, %v5080_v32 }
 0x75e   : > { %v2927_v59 = vsel %vm833_vm1, %v2919_v21, 0.0 }
 0x75f   : > { %2928 = vadd.xlane.f32.xlu1 %v2927_v59 }
 0x761   : > { %v2868_v22 = vpop.f32.mrf.mxu3 }
 0x762   : > { %v2869_v48 = vadd.f32 %v3611_v19, %v2868_v22 }
 0x764   : > { %v2878_v44 = vadd.f32 %v2869_v48, %v5048_v2 }
 0x766   : > { %v2900_v49 = vsel %vm833_vm1, %v2878_v44, 0.0 }
 0x767   : > { %2901 = vadd.xlane.f32.xlu0 %v2900_v49 }
 0x779   : > { %v2884_v25 = vpop.xlane.xlu0 %2883 }
 0x77a   : > { %v2904_v41 = vmul.f32 %v2884_v25, %v4897_v29 }
 0x77c   : > { %v5088_v47 = vsub.f32 %v2872_v62, %v2904_v41 }
 0x77e   : > { %v2920_v1 = vmul.f32 %v5088_v47, %v5088_v47 }
 0x780   : > { %v2930_v20 = vsel %vm833_vm1, %v2920_v1, 0.0 }
 0x781   : > { %2931 = vadd.xlane.f32.xlu2 %v2930_v20  ;;  %v2887_v18 = vpop.xlane.xlu1 %2886 }
 0x782   : > { %v2905_v55 = vmul.f32 %v2887_v18, %v4897_v29 }
 0x784   : > { %v5094_v3 = vsub.f32 %v2873_v36, %v2905_v55 }
 0x786   : > { %v2921_v2 = vmul.f32 %v5094_v3, %v5094_v3 }
 0x788   : > { %v2933_v5 = vsel %vm833_vm1, %v2921_v2, 0.0 }
 0x789   : > { %2934 = vadd.xlane.f32.xlu0 %v2933_v5 }
 0x7a4   : > { %v2890_v45 = vpop.xlane.xlu2 %2889 }
 0x7a5   : > { %v2906_v53 = vmul.f32 %v2890_v45, %v4897_v29 }
 0x7a7   : > { %v5100_v15 = vsub.f32 %v2874_v61, %v2906_v53 }
 0x7a9   : > { %v2922_v24 = vmul.f32 %v5100_v15, %v5100_v15 }
 0x7ab   : > { %v2936_v33 = vsel %vm833_vm1, %v2922_v24, 0.0 }
 0x7ac   : > { %2937 = vadd.xlane.f32.xlu1 %v2936_v33 }
 0x7ad   : > { %v2893_v8 = vpop.xlane.xlu0 %2892 }
 0x7ae   : > { %v2907_v17 = vmul.f32 %v2893_v8, %v4897_v29 }
 0x7b0   : > { %v5106_v54 = vsub.f32 %v2875_v52, %v2907_v17  ;;  %v5135_v52 = vld [vmem:[%s771_s17] ss:$0 sm:$0xff] }
 0x7b2   : > { %v2923_v16 = vmul.f32 %v5106_v54, %v5106_v54 }
 0x7b4   : > { %v2939_v9 = vsel %vm833_vm1, %v2923_v16, 0.0 }
 0x7b5   : > { %2940 = vadd.xlane.f32.xlu2 %v2939_v9  ;;  %v2896_v23 = vpop.xlane.xlu1 %2895 }
 0x7b6   : > { %v2908_v42 = vmul.f32 %v2896_v23, %v4897_v29 }
 0x7b8   : > { %v5112_v38 = vsub.f32 %v2876_v43, %v2908_v42 }
 0x7ba   : > { %v2924_v58 = vmul.f32 %v5112_v38, %v5112_v38 }
 0x7bc   : > { %v2942_v19 = vsel %vm833_vm1, %v2924_v58, 0.0 }
 0x7bd   : > { %v2899_v10 = vpop.xlane.xlu2 %2898  ;;  %2943 = vadd.xlane.f32.xlu0 %v2942_v19 }
 0x7be   : > { %v2909_v37 = vmul.f32 %v2899_v10, %v4897_v29 }
 0x7c0   : > { %v5118_v60 = vsub.f32 %v2877_v4, %v2909_v37 }
 0x7c2   : > { %v2925_v28 = vmul.f32 %v5118_v60, %v5118_v60 }
 0x7c4   : > { %v2945_v50 = vsel %vm833_vm1, %v2925_v28, 0.0 }
 0x7c5   : > { %2946 = vadd.xlane.f32.xlu1 %v2945_v50 }
 0x7d2   : > { %v2929_v12 = vpop.xlane.xlu1 %2928 }
 0x7d3   : > { %v2951_v7 = vmul.f32 %v2929_v12, %v4897_v29 }
 0x7d5   : > { %v2959_v62 = vadd.f32 1e-05, %v2951_v7 }
 0x7d7   : > { %3760 = vrsqrt.f32 %v2959_v62  ;;  %vm2973_vm15 = vweird.f32 %v2959_v62 }
 0x7da   : > { %v2902_v51 = vpop.xlane.xlu0 %2901 }
 0x7db   : > { %v2910_v26 = vmul.f32 %v2902_v51, %v4897_v29 }
 0x7dd   : > { %v3761_v39 = vpop.eup %3760  ;;  %v5125_v36 = vsub.f32 %v2878_v44, %v2910_v26 }
 0x7de   : > { %v2968_v57 = vmul.f32 %v3761_v39, %v2959_v62  ;;  %vm2974_vm3 = vweird.f32 %v3761_v39 }
 0x7df   : > { %v2926_v30 = vmul.f32 %v5125_v36, %v5125_v36  ;;  %vm2975_vm0 = vmor %vm2973_vm15, %vm2974_vm3 }
 0x7e0   : > { %v2969_v40 = vmul.f32 %v3761_v39, %v2968_v57 }
 0x7e1   : > { %v2948_v61 = vsel %vm833_vm1, %v2926_v30, 0.0 }
 0x7e2   : > { %v2970_v34 = vmul.f32 0.5, %v2969_v40  ;;  %2949 = vadd.xlane.f32.xlu2 %v2948_v61 }
 0x7e4   : > { %v2971_v6 = vsub.f32 1.5, %v2970_v34 }
 0x7e6   : > { %v2972_v35 = vmul.f32 %v3761_v39, %v2971_v6 }
 0x7e8   : > { %v2976_v14 = vsel %vm2975_vm0, %v3761_v39, %v2972_v35 }
 0x7e9   : > { %v3047_v27 = vmul.f32 %v2976_v14, %v5080_v32 }
 0x7eb   : > { %v3059_v43 = vmul.f32 %v5135_v52, %v3047_v27 }
 0x7ed   : > { %v3071_v0 = vadd.f32 %v5142_v56, %v3059_v43 }
 0x7ef   : > { %3079 = vst.msk [vmem:[%s4026_s11] sm:$0xff] %vm833_vm1, %v3071_v0 }
 0x7f4   : > { %v2932_v11 = vpop.xlane.xlu2 %2931 }
 0x7f5   : > { %v2952_v31 = vmul.f32 %v2932_v11, %v4897_v29 }
 0x7f7   : > { %v2960_v4 = vadd.f32 1e-05, %v2952_v31 }
 0x7f9   : > { %3762 = vrsqrt.f32 %v2960_v4  ;;  %vm2983_vm4 = vweird.f32 %v2960_v4 }
 0x7fc   : > { %v2935_v63 = vpop.xlane.xlu0 %2934 }
 0x7fd   : > { %v2953_v46 = vmul.f32 %v2935_v63, %v4897_v29 }
 0x7ff   : > { %v3763_v13 = vpop.eup %3762  ;;  %v2961_v21 = vadd.f32 1e-05, %v2953_v46 }
 0x800   : > { %v2978_v59 = vmul.f32 %v3763_v13, %v2960_v4  ;;  %vm2984_vm2 = vweird.f32 %v3763_v13 }
 0x801   : > { %3764 = vrsqrt.f32 %v2961_v21  ;;  %vm2985_vm5 = vmor %vm2983_vm4, %vm2984_vm2  ;;  %vm2993_vm7 = vweird.f32 %v2961_v21 }
 0x802   : > { %v2979_v22 = vmul.f32 %v3763_v13, %v2978_v59 }
 0x804   : > { %v2980_v32 = vmul.f32 0.5, %v2979_v22 }
 0x806   : > { %v2981_v48 = vsub.f32 1.5, %v2980_v32 }
 0x807   : > { %v3765_v44 = vpop.eup %3764 }
 0x808   : > { %v2982_v49 = vmul.f32 %v3763_v13, %v2981_v48  ;;  %v2988_v25 = vmul.f32 %v3765_v44, %v2961_v21  ;;  %vm2994_vm6 = vweird.f32 %v3765_v44 }
 0x809   : > { %vm2995_vm8 = vmor %vm2993_vm7, %vm2994_vm6 }
 0x80a   : > { %v2986_v41 = vsel %vm2985_vm5, %v3763_v13, %v2982_v49  ;;  %v2989_v1 = vmul.f32 %v3765_v44, %v2988_v25 }
 0x80b   : > { %v3048_v20 = vmul.f32 %v2986_v41, %v5088_v47 }
 0x80c   : > { %v2990_v18 = vmul.f32 0.5, %v2989_v1 }
 0x80d   : > { %v3060_v55 = vmul.f32 %v5135_v52, %v3048_v20 }
 0x80e   : > { %v2991_v2 = vsub.f32 1.5, %v2990_v18 }
 0x80f   : > { %v3072_v5 = vadd.f32 %v5142_v56, %v3060_v55 }
 0x810   : > { %v2992_v45 = vmul.f32 %v3765_v44, %v2991_v2 }
 0x811   : > { %3080 = vst.msk [vmem:[%s4026_s11 + $0x8] sm:$0xff] %vm833_vm1, %v3072_v5 }
 0x812   : > { %v2996_v53 = vsel %vm2995_vm8, %v3765_v44, %v2992_v45 }
 0x813   : > { %v3049_v24 = vmul.f32 %v2996_v53, %v5094_v3 }
 0x815   : > { %v3061_v33 = vmul.f32 %v5135_v52, %v3049_v24 }
 0x817   : > { %v3073_v8 = vadd.f32 %v5142_v56, %v3061_v33 }
 0x819   : > { %3081 = vst.msk [vmem:[%s4026_s11 + $0x10] sm:$0xff] %vm833_vm1, %v3073_v8 }
 0x81f   : > { %v2938_v47 = vpop.xlane.xlu1 %2937 }
 0x820   : > { %v2954_v17 = vmul.f32 %v2938_v47, %v4897_v29 }
 0x822   : > { %v2962_v16 = vadd.f32 1e-05, %v2954_v17 }
 0x824   : > { %3766 = vrsqrt.f32 %v2962_v16  ;;  %vm3003_vm10 = vweird.f32 %v2962_v16 }
 0x828   : > { %v2941_v9 = vpop.xlane.xlu2 %2940 }
 0x829   : > { %v2955_v23 = vmul.f32 %v2941_v9, %v4897_v29 }
 0x82a   : > { %v3767_v42 = vpop.eup %3766 }
 0x82b   : > { %v2998_v58 = vmul.f32 %v3767_v42, %v2962_v16  ;;  %v2963_v19 = vadd.f32 1e-05, %v2955_v23  ;;  %vm3004_vm9 = vweird.f32 %v3767_v42 }
 0x82c   : > { %vm3005_vm11 = vmor %vm3003_vm10, %vm3004_vm9 }
 0x82d   : > { %v2999_v10 = vmul.f32 %v3767_v42, %v2998_v58  ;;  %3768 = vrsqrt.f32 %v2963_v19  ;;  %vm3013_vm13 = vweird.f32 %v2963_v19 }
 0x82f   : > { %v3000_v3 = vmul.f32 0.5, %v2999_v10 }
 0x830   : > { %v2944_v37 = vpop.xlane.xlu0 %2943 }
 0x831   : > { %v3001_v28 = vsub.f32 1.5, %v3000_v3  ;;  %v2956_v50 = vmul.f32 %v2944_v37, %v4897_v29 }
 0x833   : > { %v3769_v12 = vpop.eup %3768  ;;  %v3002_v7 = vmul.f32 %v3767_v42, %v3001_v28  ;;  %v2964_v62 = vadd.f32 1e-05, %v2956_v50 }
 0x834   : > { %v3008_v51 = vmul.f32 %v3769_v12, %v2963_v19  ;;  %vm3014_vm12 = vweird.f32 %v3769_v12 }
 0x835   : > { %v3006_v26 = vsel %vm3005_vm11, %v3767_v42, %v3002_v7  ;;  %3770 = vrsqrt.f32 %v2964_v62  ;;  %vm3015_vm14 = vmor %vm3013_vm13, %vm3014_vm12  ;;  %vm3023_vm15 = vweird.f32 %v2964_v62 }
 0x836   : > { %v3050_v39 = vmul.f32 %v3006_v26, %v5100_v15  ;;  %v3009_v57 = vmul.f32 %v3769_v12, %v3008_v51 }
 0x838   : > { %v3062_v30 = vmul.f32 %v5135_v52, %v3050_v39  ;;  %v3010_v40 = vmul.f32 0.5, %v3009_v57  ;;  %v2947_v61 = vpop.xlane.xlu1 %2946 }
 0x839   : > { %v2957_v34 = vmul.f32 %v2947_v61, %v4897_v29 }
 0x83a   : > { %v3074_v6 = vadd.f32 %v5142_v56, %v3062_v30  ;;  %v3011_v35 = vsub.f32 1.5, %v3010_v40 }
 0x83b   : > { %v3771_v14 = vpop.eup %3770  ;;  %v2965_v27 = vadd.f32 1e-05, %v2957_v34 }
 0x83c   : > { %3082 = vst.msk [vmem:[%s4026_s11 + $0x18] sm:$0xff] %vm833_vm1, %v3074_v6  ;;  %v3012_v43 = vmul.f32 %v3769_v12, %v3011_v35  ;;  %v3018_v0 = vmul.f32 %v3771_v14, %v2964_v62  ;;  %vm3024_vm3 = vweird.f32 %v3771_v14 }
 0x83d   : > { %3772 = vrsqrt.f32 %v2965_v27  ;;  %vm3025_vm0 = vmor %vm3023_vm15, %vm3024_vm3  ;;  %vm3033_vm4 = vweird.f32 %v2965_v27 }
 0x83e   : > { %v3016_v15 = vsel %vm3015_vm14, %v3769_v12, %v3012_v43  ;;  %v3019_v11 = vmul.f32 %v3771_v14, %v3018_v0 }
 0x83f   : > { %v3051_v31 = vmul.f32 %v3016_v15, %v5106_v54 }
 0x840   : > { %v3020_v4 = vmul.f32 0.5, %v3019_v11 }
 0x841   : > { %v3063_v63 = vmul.f32 %v5135_v52, %v3051_v31 }
 0x842   : > { %v3021_v46 = vsub.f32 1.5, %v3020_v4 }
 0x843   : > { %v3773_v13 = vpop.eup %3772  ;;  %v3075_v21 = vadd.f32 %v5142_v56, %v3063_v63 }
 0x844   : > { %v3022_v59 = vmul.f32 %v3771_v14, %v3021_v46  ;;  %v3028_v22 = vmul.f32 %v3773_v13, %v2965_v27  ;;  %vm3034_vm2 = vweird.f32 %v3773_v13 }
 0x845   : > { %3083 = vst.msk [vmem:[%s4026_s11 + $0x20] sm:$0xff] %vm833_vm1, %v3075_v21  ;;  %vm3035_vm5 = vmor %vm3033_vm4, %vm3034_vm2 }
 0x846   : > { %v3026_v32 = vsel %vm3025_vm0, %v3771_v14, %v3022_v59  ;;  %v3029_v48 = vmul.f32 %v3773_v13, %v3028_v22 }
 0x847   : > { %v3052_v54 = vmul.f32 %v3026_v32, %v5112_v38 }
 0x848   : > { %v3030_v44 = vmul.f32 0.5, %v3029_v48 }
 0x849   : > { %v3064_v49 = vmul.f32 %v5135_v52, %v3052_v54 }
 0x84a   : > { %v3031_v25 = vsub.f32 1.5, %v3030_v44 }
 0x84b   : > { %v3076_v41 = vadd.f32 %v5142_v56, %v3064_v49 }
 0x84c   : > { %v3032_v1 = vmul.f32 %v3773_v13, %v3031_v25 }
 0x84d   : > { %3084 = vst.msk [vmem:[%s4026_s11 + $0x28] sm:$0xff] %vm833_vm1, %v3076_v41 }
 0x84e   : > { %v3036_v20 = vsel %vm3035_vm5, %v3773_v13, %v3032_v1 }
 0x84f   : > { %v3053_v18 = vmul.f32 %v3036_v20, %v5118_v60 }
 0x851   : > { %v3065_v55 = vmul.f32 %v5135_v52, %v3053_v18 }
 0x853   : > { %v3077_v2 = vadd.f32 %v5142_v56, %v3065_v55 }
 0x855   : > { %3085 = vst.msk [vmem:[%s4026_s11 + $0x30] sm:$0xff] %vm833_vm1, %v3077_v2  ;;  %v2950_v38 = vpop.xlane.xlu2 %2949 }
 0x856   : > { %v2958_v5 = vmul.f32 %v2950_v38, %v4897_v29 }
 0x858   : > { %v2966_v45 = vadd.f32 1e-05, %v2958_v5 }
 0x85a   : > { %3774 = vrsqrt.f32 %v2966_v45  ;;  %vm3043_vm7 = vweird.f32 %v2966_v45 }
 0x860   : > { %v3775_v53 = vpop.eup %3774 }
 0x861   : > { %v3038_v24 = vmul.f32 %v3775_v53, %v2966_v45  ;;  %vm3044_vm6 = vweird.f32 %v3775_v53 }
 0x862   : > { %vm3045_vm8 = vmor %vm3043_vm7, %vm3044_vm6 }
 0x863   : > { %v3039_v33 = vmul.f32 %v3775_v53, %v3038_v24 }
 0x865   : > { %v3040_v8 = vmul.f32 0.5, %v3039_v33 }
 0x867   : > { %v3041_v47 = vsub.f32 1.5, %v3040_v8 }
 0x869   : > { %v3042_v17 = vmul.f32 %v3775_v53, %v3041_v47 }
 0x86b   : > { %v3046_v60 = vsel %vm3045_vm8, %v3775_v53, %v3042_v17 }
 0x86c   : > { %v3054_v16 = vmul.f32 %v3046_v60, %v5125_v36 }
 0x86e   : > { %v3066_v9 = vmul.f32 %v5135_v52, %v3054_v16 }
 0x870   : > { %v3078_v23 = vadd.f32 %v5142_v56, %v3066_v9 }
 0x872   : > { %3086 = vst.msk [vmem:[%s4026_s11 + $0x38] sm:$0xff] %vm833_vm1, %v3078_v23 }
 0x873 PF: > { %s5269_s10 = sld [smem:[#allocation5_spill]] }
 0x874   : > { %s5270_s21 = sld [smem:[#allocation3_spill]] }
 0x875   : > { %s5271_s22 = sld [smem:[#allocation4_spill]] }
 0x876   : > { %s5272_s23 = sld [smem:[#allocation6_spill]] }
 0x877   : > { %s5273_s24 = sld [smem:[#allocation7_spill]] }
 0x879   : > { %s26_s25 = sadd.s32 1, %s5269_s10  }
 0x87a   : > { %p23_p8 = scmp.ge.s32.totalorder %s26_s25, 6  }
 0x87c   :  { %25 = sbr.rel (!%p23_p8) target bundleno = 10 (0xa), region = 163 }

</bundles_post_ra>
